<compile_context>
chip_gen: v5e
topology: v5e:2x2
jax: 0.10.0
libtpu: 0.0.40
codegen_flags: <defaults>
</compile_context>

<pallas_src>
import functools

import jax
import jax.numpy as jnp
from jax.experimental import pallas as pl
from jax.experimental.pallas import tpu as pltpu


def _round_up(a, b):
    return -(-a // b) * b


@functools.lru_cache(maxsize=None)
def _vmem_limit_bytes():
    """Generation-aware scoped-VMEM budget: ~3/4 of per-core VMEM, capped at 100 MiB."""
    try:
        cap = int(pltpu.get_tpu_info().vmem_capacity_bytes)
    except Exception:
        cap = 64 << 20          # conservative fallback (safe on v7x too)
    return min(cap * 3 // 4, 100 << 20)


# ------------- fused conv (kh x kw taps) + BN(eval) + ReLU Pallas kernel ------------- #

def _conv_taps_kernel(a_ref, w_ref, scale_ref, shift_ref, o_ref, *, tm, wp_pad, kh, kw):
    """One grid step = one (tm, tn) output tile; all kh*kw conv taps unrolled in-body.

    a_ref     : (a_rows, cin) f32 - whole padded activation, rows flattened as
                n*Hp*Wp_pad + i*Wp_pad + j; VMEM-resident across the grid (DMA'd once).
    w_ref     : (kh*kw, cin, tn) bf16 - all taps of the current Cout tile (index_map
                depends only on the Cout grid index -> resident across the inner M axis).
    scale_ref / shift_ref : (1, tn) f32 folded BN affine (+ conv bias).
    o_ref     : (tm, tn) f32 output tile.
    """
    base = pl.multiple_of(pl.program_id(1) * tm, 8)
    acc = None
    for ty in range(kh):
        for tx in range(kw):
            # ty*Wp_pad is sublane-aligned (Wp_pad % 8 == 0); only tx shifts the window.
            # The f32->bf16 cast rides the VPU and overlaps the MXU dot.
            a_tap = a_ref[pl.ds(base + ty * wp_pad + tx, tm), :].astype(jnp.bfloat16)
            d = jnp.dot(a_tap, w_ref[ty * kw + tx], preferred_element_type=jnp.float32)
            acc = d if acc is None else acc + d
    out = acc * scale_ref[...] + shift_ref[...]            # f32 epilogue
    o_ref[...] = jnp.maximum(out, 0.0).astype(o_ref.dtype)


def _conv_core(xp, w_taps, scale, shift, *, kh, kw):
    """relu(scale * conv_valid(xp, w_taps) + shift) evaluated on the full padded grid.

    xp     : (n, Hp, Wp, cin) already-padded activation (cin lane-padded upstream).
    w_taps : (kh*kw, cin, cout_p) f32, tap index t = ty*kw + tx.
    Returns (n, Hp, Wp_pad, cout_p); only positions [0, Hp-kh] x [0, Wp-kw] are valid.
    """
    n, hpp, wpp, cin_p = xp.shape
    n_taps, _, cout_p = w_taps.shape
    assert n_taps == kh * kw and cin_p % 8 == 0 and cout_p % 128 == 0

    wp_pad = _round_up(wpp, 8)              # sublane-align the ty*Wp tap offsets
    if wp_pad != wpp:
        xp = jnp.pad(xp, ((0, 0), (0, 0), (0, wp_pad - wpp), (0, 0)))

    mp = n * hpp * wp_pad
    tm = min(512, _round_up(mp, 8))
    mp_out = _round_up(mp, tm)
    a_rows = _round_up(mp_out + (kh - 1) * wp_pad + (kw - 1), 8)   # head-room for tap shifts
    a0 = jnp.pad(xp.reshape(mp, cin_p), ((0, a_rows - mp), (0, 0)))   # (a_rows, cin_p) f32

    tn = min(cout_p, 512)
    while cout_p % tn:
        tn -= 128
    grid = (cout_p // tn, mp_out // tm)     # M innermost -> weights revisited, not re-DMA'd

    flops = 2 * mp_out * n_taps * cin_p * cout_p
    bytes_accessed = a0.size * 4 + w_taps.size * 2 + mp_out * cout_p * 4 + 2 * cout_p * 4

    out_flat = pl.pallas_call(
        functools.partial(_conv_taps_kernel, tm=tm, wp_pad=wp_pad, kh=kh, kw=kw),
        out_shape=jax.ShapeDtypeStruct((mp_out, cout_p), jnp.float32),
        grid_spec=pltpu.PrefetchScalarGridSpec(
            num_scalar_prefetch=0,
            grid=grid,
            in_specs=[
                # Resident activation (constant index_map -> copied into VMEM once).
                # TODO(synk): for activations larger than VMEM, stream row slabs with
                # manual pltpu.make_async_copy double-buffering (and/or Buffered(1)).
                pl.BlockSpec((a_rows, cin_p), lambda j, mi: (0, 0)),
                # All taps of one Cout tile; keyed on j only -> resident across M steps.
                pl.BlockSpec((n_taps, cin_p, tn), lambda j, mi: (0, 0, j)),
                pl.BlockSpec((1, tn), lambda j, mi: (0, j)),               # scale
                pl.BlockSpec((1, tn), lambda j, mi: (0, j)),               # shift
            ],
            out_specs=pl.BlockSpec((tm, tn), lambda j, mi: (mi, j)),
        ),
        compiler_params=pltpu.CompilerParams(
            dimension_semantics=("parallel", "parallel"),
            vmem_limit_bytes=_vmem_limit_bytes(),
        ),
        cost_estimate=pl.CostEstimate(flops=flops, transcendentals=0,
                                      bytes_accessed=bytes_accessed),
    )(a0, w_taps.astype(jnp.bfloat16), scale.reshape(1, cout_p), shift.reshape(1, cout_p))

    return out_flat[:mp].reshape(n, hpp, wp_pad, cout_p)


def conv_bn_relu(x_nhwc, params, stride):
    """Conv2d(3x3, stride in {1,2}, pad=1, bias) + BatchNorm2d(eval) + ReLU on NHWC.

    The activation's channel dim may be zero-padded past the layer's true Cin (those
    channels are exactly zero); weights are zero-padded to match.  The output channel
    dim is padded to a multiple of 128 with exactly-zero channels so stores stay
    lane-dense; the zero padding flows through the rest of the network safely.
    """
    w9, scale, shift = params               # w9: (9, cin_true, cout) f32, t = dy*3 + dx
    n, h, w, c_act = x_nhwc.shape
    cin_true, cout = w9.shape[1], w9.shape[2]
    assert c_act >= cin_true

    if c_act != cin_true:
        w9 = jnp.pad(w9, ((0, 0), (0, c_act - cin_true), (0, 0)))
    cout_p = _round_up(cout, 128)
    if cout_p != cout:                       # padded channels: conv=0, shift=0 -> relu 0
        w9 = jnp.pad(w9, ((0, 0), (0, 0), (0, cout_p - cout)))
        scale = jnp.pad(scale, (0, cout_p - cout))
        shift = jnp.pad(shift, (0, cout_p - cout))

    xp = jnp.pad(x_nhwc, ((0, 0), (1, 1), (1, 1), (0, 0)))

    if stride == 1:
        out = _conv_core(xp, w9, scale, shift, kh=3, kw=3)
        return out[:, :h, :w, :]

    # stride == 2: space-to-depth -> stride-1 2x2 "valid" conv on a half-res grid with
    # 4*Cin channels; the kernel writes the compact (n, h/2, w/2, cout) output directly.
    assert stride == 2 and h % 2 == 0 and w % 2 == 0
    h2, w2 = (h + 2) // 2, (w + 2) // 2
    xp2 = xp.reshape(n, h2, 2, w2, 2, c_act).transpose(0, 1, 3, 2, 4, 5)
    xp2 = xp2.reshape(n, h2, w2, 4 * c_act)          # channel = (2*di + dj)*c_act + ci
    w4 = jnp.zeros((2, 2, 2, 2, c_act, cout_p), w9.dtype)   # [ti, tj, di, dj, ci, co]
    for dy in range(3):
        ti, di = dy // 2, dy % 2
        for dx in range(3):
            tj, dj = dx // 2, dx % 2
            w4 = w4.at[ti, tj, di, dj].set(w9[dy * 3 + dx])
    w4 = w4.reshape(4, 4 * c_act, cout_p)            # tap = ti*2 + tj
    out = _conv_core(xp2, w4, scale, shift, kh=2, kw=2)
    return out[:, :h // 2, :w // 2, :]


# ------------------------------ MaxPool2d(2) kernel ---------------------------- #

def _maxpool_kernel(x_ref, o_ref):
    v = x_ref[...]                                   # (tr, 2, wo, 2, c)
    row_max = jnp.maximum(v[:, 0], v[:, 1])          # (tr, wo, 2, c)
    o_ref[...] = jnp.maximum(row_max[:, :, 0, :], row_max[:, :, 1, :])


def maxpool2x2(x_nhwc):
    """nn.MaxPool2d(2): 2x2 taps selected inside the kernel; the only XLA-side op is
    a free (metadata-only) reshape of the contiguous NHWC array - no strided copies."""
    n, h, w, c = x_nhwc.shape
    ho, wo = h // 2, w // 2
    rows = n * ho
    x5 = x_nhwc.reshape(rows, 2, wo, 2, c)           # pure dimension split, no data movement
    tr = min(rows, 256)
    while rows % tr:
        tr -= 1
    out = pl.pallas_call(
        _maxpool_kernel,
        out_shape=jax.ShapeDtypeStruct((rows, wo, c), jnp.float32),
        grid_spec=pltpu.PrefetchScalarGridSpec(
            num_scalar_prefetch=0,
            grid=(rows // tr,),
            in_specs=[pl.BlockSpec((tr, 2, wo, 2, c), lambda i: (i, 0, 0, 0, 0))],
            out_specs=pl.BlockSpec((tr, wo, c), lambda i: (i, 0, 0)),
        ),
        compiler_params=pltpu.CompilerParams(
            dimension_semantics=("parallel",),
            vmem_limit_bytes=_vmem_limit_bytes(),
        ),
        cost_estimate=pl.CostEstimate(flops=3 * rows * wo * c, transcendentals=0,
                                      bytes_accessed=5 * rows * wo * c * 4),
    )(x5)
    return out.reshape(n, ho, wo, c)


# ---------------------------------- params ------------------------------------- #

def init_conv_bn_params(key, cin, cout, eps=1e-5):
    k1, k2, k3, k4 = jax.random.split(key, 4)
    fan_in = 9 * cin
    # Layout: w9[t = dy*3 + dx, ci, co] == torch_conv.weight[co, ci, dy, dx].
    w9 = jax.random.normal(k1, (9, cin, cout), jnp.float32) / jnp.sqrt(float(fan_in))
    b = 0.1 * jax.random.normal(k2, (cout,), jnp.float32)
    gamma = 1.0 + 0.1 * jax.random.normal(k3, (cout,), jnp.float32)
    beta = 0.1 * jax.random.normal(k4, (cout,), jnp.float32)
    running_mean = jnp.zeros((cout,), jnp.float32)
    running_var = jnp.ones((cout,), jnp.float32)
    scale = gamma / jnp.sqrt(running_var + eps)          # eval-mode BN fold
    shift = beta + scale * (b - running_mean)
    return (w9, scale, shift)


def init_params(key, in_channel=1, num_classes=1):
    cfg = [(in_channel, 64), (64, 128), (128, 128), (128, 256),
           (256, 256), (256, 512), (512, 512), (512, 1024)]
    keys = jax.random.split(key, len(cfg) + 1)
    convs = [init_conv_bn_params(k, cin, cout) for k, (cin, cout) in zip(keys[:-1], cfg)]
    kf1, kf2 = jax.random.split(keys[-1])
    w_fc = jax.random.normal(kf1, (1024, num_classes), jnp.float32) / jnp.sqrt(1024.0)
    b_fc = 0.1 * jax.random.normal(kf2, (num_classes,), jnp.float32)
    return {"convs": convs, "fc": (w_fc, b_fc)}


# ---------------------------------- forward ------------------------------------ #

def _to_nhwc_lane_padded(x_nchw):
    x = jnp.transpose(x_nchw, (0, 2, 3, 1)).astype(jnp.float32)   # NCHW -> NHWC
    c = x.shape[-1]
    if c % 8:                                                     # K >= 8 for the MXU
        x = jnp.pad(x, ((0, 0), (0, 0), (0, 0), (0, _round_up(c, 8) - c)))
    return x


def mm_f_2d_forward(x_nchw, params):
    """Equivalent of MM_F_2D.forward(x): get_feature(x) -> fc."""
    x = _to_nhwc_lane_padded(x_nchw)
    c = params["convs"]
    x = conv_bn_relu(x, c[0], stride=1)          # 16x16, 64 (padded to 128 lanes, zeros)
    x = conv_bn_relu(x, c[1], stride=2)          # 8x8, 128  (space-to-depth path)
    x = maxpool2x2(x)                            # 4x4
    x = conv_bn_relu(x, c[2], stride=1)          # 128
    x = conv_bn_relu(x, c[3], stride=1)          # 256
    x = maxpool2x2(x)                            # 2x2
    x = conv_bn_relu(x, c[4], stride=1)          # 256
    x = conv_bn_relu(x, c[5], stride=1)          # 512
    x = maxpool2x2(x)                            # 1x1
    x = conv_bn_relu(x, c[6], stride=1)          # 512
    x = conv_bn_relu(x, c[7], stride=1)          # 1024
    feat = jnp.mean(x, axis=(1, 2))              # AdaptiveAvgPool2d(1) + Flatten
    w_fc, b_fc = params["fc"]
    # Final Linear: num_classes (=1) output lanes -> a Pallas kernel here would force
    # masked 1-lane stores and be pure overhead; plain XLA dot is the right tool.
    return feat @ w_fc + b_fc


# ------------------------------ reference (self-check) -------------------------- #

def _conv_bn_relu_ref(x_nhwc, params, stride):
    """f32 XLA reference for one Conv+BN(eval)+ReLU block (used to sanity-check kernels)."""
    w9, scale, shift = params
    cin, cout = w9.shape[1], w9.shape[2]
    k = w9.reshape(3, 3, cin, cout)              # HWIO: k[dy, dx, ci, co]
    y = jax.lax.conv_general_dilated(
        x_nhwc[..., :cin], k, (stride, stride), ((1, 1), (1, 1)),
        dimension_numbers=("NHWC", "HWIO", "NHWC"))
    return jnp.maximum(y * scale + shift, 0.0)


# ----------------------------------- main --------------------------------------- #

if __name__ == "__main__":
    key = jax.random.PRNGKey(0)
    k_x, k_p = jax.random.split(key)

    batch, in_channel, spatial, num_classes = 2, 1, 16, 1
    x = jax.random.normal(k_x, (batch, in_channel, spatial, spatial), jnp.float32)
    params = init_params(k_p, in_channel=in_channel, num_classes=num_classes)

    def _max_abs_diff(a, b):
        return float(jnp.max(jnp.abs(a - b)))

    # Light self-checks of both conv paths (stride-1 and space-to-depth stride-2) and
    # the in-kernel maxpool against f32 XLA references (bf16 MXU -> generous tolerance).
    conv_p = params["convs"]
    xh = _to_nhwc_lane_padded(x)
    l1 = conv_bn_relu(xh, conv_p[0], stride=1)
    assert _max_abs_diff(l1[..., :64], _conv_bn_relu_ref(xh, conv_p[0], 1)) < 1e-1
    l2 = conv_bn_relu(l1, conv_p[1], stride=2)
    assert _max_abs_diff(l2[..., :128], _conv_bn_relu_ref(l1, conv_p[1], 2)) < 1e-1
    p1 = maxpool2x2(l2)
    p1_ref = jnp.maximum(jnp.maximum(l2[:, 0::2, 0::2, :], l2[:, 0::2, 1::2, :]),
                         jnp.maximum(l2[:, 1::2, 0::2, :], l2[:, 1::2, 1::2, :]))
    assert _max_abs_diff(p1, p1_ref) < 1e-6

    fwd = jax.jit(mm_f_2d_forward)
    out = jax.block_until_ready(fwd(x, params))
    assert out.shape == (batch, num_classes), out.shape
    print("KERNEL_OK")
</pallas_src>

<mosaic_0001>
module attributes {stable_mosaic.version = 11 : i64} {
  func.func @_conv_taps_kernel(%arg0: i32, %arg1: i32, %arg2: memref<1080x8xf32, #tpu.memory_space<vmem>>, %arg3: memref<9x8x128xbf16, #tpu.memory_space<vmem>>, %arg4: memref<1x128xf32, #tpu.memory_space<vmem>>, %arg5: memref<1x128xf32, #tpu.memory_space<vmem>>, %arg6: memref<512x128xf32, #tpu.memory_space<vmem>>) attributes {dimension_semantics = [#tpu.dimension_semantics<parallel>, #tpu.dimension_semantics<parallel>], iteration_bounds = array<i64: 1, 2>, scalar_prefetch = 0 : i64, scratch_operands = 0 : i64, tpu.core_type = #tpu.core_type<tc>, window_params = [{pipeline_mode = #tpu.pipeline_mode<synchronous>, transform_indices = @transform_0, window_bounds = array<i64: 1080, 8>}, {transform_indices = @transform_1, window_bounds = array<i64: 9, 8, 128>}, {transform_indices = @transform_2, window_bounds = array<i64: 1, 128>}, {transform_indices = @transform_3, window_bounds = array<i64: 1, 128>}, {transform_indices = @transform_4, window_bounds = array<i64: 512, 128>}]} {
    %c512_i32 = arith.constant 512 : i32
    %0 = arith.muli %arg1, %c512_i32 : i32
    %1 = tpu.assume_multiple %0, 8 : i32
    %c0_i32 = arith.constant 0 : i32
    %2 = arith.addi %1, %c0_i32 : i32
    %c0_i32_0 = arith.constant 0 : i32
    %3 = arith.addi %2, %c0_i32_0 : i32
    %4 = arith.index_cast %3 : i32 to index
    %c0 = arith.constant 0 : index
    %5 = vector.load %arg2[%4, %c0] : memref<1080x8xf32, #tpu.memory_space<vmem>>, vector<512x8xf32>
    %6 = arith.truncf %5 : vector<512x8xf32> to vector<512x8xbf16>
    %c0_1 = arith.constant 0 : index
    %c0_2 = arith.constant 0 : index
    %c0_3 = arith.constant 0 : index
    %7 = vector.load %arg3[%c0_1, %c0_2, %c0_3] : memref<9x8x128xbf16, #tpu.memory_space<vmem>>, vector<1x8x128xbf16>
    %8 = vector.shape_cast %7 : vector<1x8x128xbf16> to vector<8x128xbf16>
    %cst = arith.constant dense<0.000000e+00> : vector<512x128xf32>
    %9 = tpu.matmul %6, %8, %cst {dimension_numbers = #tpu.dot_dimension_numbers<[1], [0], [0], [1], [0, 0, 1, 1], [], []>} : vector<512x8xbf16>, vector<8x128xbf16>, vector<512x128xf32> -> vector<512x128xf32>
    %c0_i32_4 = arith.constant 0 : i32
    %10 = arith.addi %1, %c0_i32_4 : i32
    %c1_i32 = arith.constant 1 : i32
    %11 = arith.addi %10, %c1_i32 : i32
    %12 = arith.index_cast %11 : i32 to index
    %c0_5 = arith.constant 0 : index
    %13 = vector.load %arg2[%12, %c0_5] : memref<1080x8xf32, #tpu.memory_space<vmem>>, vector<512x8xf32>
    %14 = arith.truncf %13 : vector<512x8xf32> to vector<512x8xbf16>
    %c1 = arith.constant 1 : index
    %c0_6 = arith.constant 0 : index
    %c0_7 = arith.constant 0 : index
    %15 = vector.load %arg3[%c1, %c0_6, %c0_7] : memref<9x8x128xbf16, #tpu.memory_space<vmem>>, vector<1x8x128xbf16>
    %16 = vector.shape_cast %15 : vector<1x8x128xbf16> to vector<8x128xbf16>
    %cst_8 = arith.constant dense<0.000000e+00> : vector<512x128xf32>
    %17 = tpu.matmul %14, %16, %cst_8 {dimension_numbers = #tpu.dot_dimension_numbers<[1], [0], [0], [1], [0, 0, 1, 1], [], []>} : vector<512x8xbf16>, vector<8x128xbf16>, vector<512x128xf32> -> vector<512x128xf32>
    %18 = arith.addf %9, %17 : vector<512x128xf32>
    %c0_i32_9 = arith.constant 0 : i32
    %19 = arith.addi %1, %c0_i32_9 : i32
    %c2_i32 = arith.constant 2 : i32
    %20 = arith.addi %19, %c2_i32 : i32
    %21 = arith.index_cast %20 : i32 to index
    %c0_10 = arith.constant 0 : index
    %22 = vector.load %arg2[%21, %c0_10] : memref<1080x8xf32, #tpu.memory_space<vmem>>, vector<512x8xf32>
    %23 = arith.truncf %22 : vector<512x8xf32> to vector<512x8xbf16>
    %c2 = arith.constant 2 : index
    %c0_11 = arith.constant 0 : index
    %c0_12 = arith.constant 0 : index
    %24 = vector.load %arg3[%c2, %c0_11, %c0_12] : memref<9x8x128xbf16, #tpu.memory_space<vmem>>, vector<1x8x128xbf16>
    %25 = vector.shape_cast %24 : vector<1x8x128xbf16> to vector<8x128xbf16>
    %cst_13 = arith.constant dense<0.000000e+00> : vector<512x128xf32>
    %26 = tpu.matmul %23, %25, %cst_13 {dimension_numbers = #tpu.dot_dimension_numbers<[1], [0], [0], [1], [0, 0, 1, 1], [], []>} : vector<512x8xbf16>, vector<8x128xbf16>, vector<512x128xf32> -> vector<512x128xf32>
    %27 = arith.addf %18, %26 : vector<512x128xf32>
    %c24_i32 = arith.constant 24 : i32
    %28 = arith.addi %1, %c24_i32 : i32
    %c0_i32_14 = arith.constant 0 : i32
    %29 = arith.addi %28, %c0_i32_14 : i32
    %30 = arith.index_cast %29 : i32 to index
    %c0_15 = arith.constant 0 : index
    %31 = vector.load %arg2[%30, %c0_15] : memref<1080x8xf32, #tpu.memory_space<vmem>>, vector<512x8xf32>
    %32 = arith.truncf %31 : vector<512x8xf32> to vector<512x8xbf16>
    %c3 = arith.constant 3 : index
    %c0_16 = arith.constant 0 : index
    %c0_17 = arith.constant 0 : index
    %33 = vector.load %arg3[%c3, %c0_16, %c0_17] : memref<9x8x128xbf16, #tpu.memory_space<vmem>>, vector<1x8x128xbf16>
    %34 = vector.shape_cast %33 : vector<1x8x128xbf16> to vector<8x128xbf16>
    %cst_18 = arith.constant dense<0.000000e+00> : vector<512x128xf32>
    %35 = tpu.matmul %32, %34, %cst_18 {dimension_numbers = #tpu.dot_dimension_numbers<[1], [0], [0], [1], [0, 0, 1, 1], [], []>} : vector<512x8xbf16>, vector<8x128xbf16>, vector<512x128xf32> -> vector<512x128xf32>
    %36 = arith.addf %27, %35 : vector<512x128xf32>
    %c24_i32_19 = arith.constant 24 : i32
    %37 = arith.addi %1, %c24_i32_19 : i32
    %c1_i32_20 = arith.constant 1 : i32
    %38 = arith.addi %37, %c1_i32_20 : i32
    %39 = arith.index_cast %38 : i32 to index
    %c0_21 = arith.constant 0 : index
    %40 = vector.load %arg2[%39, %c0_21] : memref<1080x8xf32, #tpu.memory_space<vmem>>, vector<512x8xf32>
    %41 = arith.truncf %40 : vector<512x8xf32> to vector<512x8xbf16>
    %c4 = arith.constant 4 : index
    %c0_22 = arith.constant 0 : index
    %c0_23 = arith.constant 0 : index
    %42 = vector.load %arg3[%c4, %c0_22, %c0_23] : memref<9x8x128xbf16, #tpu.memory_space<vmem>>, vector<1x8x128xbf16>
    %43 = vector.shape_cast %42 : vector<1x8x128xbf16> to vector<8x128xbf16>
    %cst_24 = arith.constant dense<0.000000e+00> : vector<512x128xf32>
    %44 = tpu.matmul %41, %43, %cst_24 {dimension_numbers = #tpu.dot_dimension_numbers<[1], [0], [0], [1], [0, 0, 1, 1], [], []>} : vector<512x8xbf16>, vector<8x128xbf16>, vector<512x128xf32> -> vector<512x128xf32>
    %45 = arith.addf %36, %44 : vector<512x128xf32>
    %c24_i32_25 = arith.constant 24 : i32
    %46 = arith.addi %1, %c24_i32_25 : i32
    %c2_i32_26 = arith.constant 2 : i32
    %47 = arith.addi %46, %c2_i32_26 : i32
    %48 = arith.index_cast %47 : i32 to index
    %c0_27 = arith.constant 0 : index
    %49 = vector.load %arg2[%48, %c0_27] : memref<1080x8xf32, #tpu.memory_space<vmem>>, vector<512x8xf32>
    %50 = arith.truncf %49 : vector<512x8xf32> to vector<512x8xbf16>
    %c5 = arith.constant 5 : index
    %c0_28 = arith.constant 0 : index
    %c0_29 = arith.constant 0 : index
    %51 = vector.load %arg3[%c5, %c0_28, %c0_29] : memref<9x8x128xbf16, #tpu.memory_space<vmem>>, vector<1x8x128xbf16>
    %52 = vector.shape_cast %51 : vector<1x8x128xbf16> to vector<8x128xbf16>
    %cst_30 = arith.constant dense<0.000000e+00> : vector<512x128xf32>
    %53 = tpu.matmul %50, %52, %cst_30 {dimension_numbers = #tpu.dot_dimension_numbers<[1], [0], [0], [1], [0, 0, 1, 1], [], []>} : vector<512x8xbf16>, vector<8x128xbf16>, vector<512x128xf32> -> vector<512x128xf32>
    %54 = arith.addf %45, %53 : vector<512x128xf32>
    %c48_i32 = arith.constant 48 : i32
    %55 = arith.addi %1, %c48_i32 : i32
    %c0_i32_31 = arith.constant 0 : i32
    %56 = arith.addi %55, %c0_i32_31 : i32
    %57 = arith.index_cast %56 : i32 to index
    %c0_32 = arith.constant 0 : index
    %58 = vector.load %arg2[%57, %c0_32] : memref<1080x8xf32, #tpu.memory_space<vmem>>, vector<512x8xf32>
    %59 = arith.truncf %58 : vector<512x8xf32> to vector<512x8xbf16>
    %c6 = arith.constant 6 : index
    %c0_33 = arith.constant 0 : index
    %c0_34 = arith.constant 0 : index
    %60 = vector.load %arg3[%c6, %c0_33, %c0_34] : memref<9x8x128xbf16, #tpu.memory_space<vmem>>, vector<1x8x128xbf16>
    %61 = vector.shape_cast %60 : vector<1x8x128xbf16> to vector<8x128xbf16>
    %cst_35 = arith.constant dense<0.000000e+00> : vector<512x128xf32>
    %62 = tpu.matmul %59, %61, %cst_35 {dimension_numbers = #tpu.dot_dimension_numbers<[1], [0], [0], [1], [0, 0, 1, 1], [], []>} : vector<512x8xbf16>, vector<8x128xbf16>, vector<512x128xf32> -> vector<512x128xf32>
    %63 = arith.addf %54, %62 : vector<512x128xf32>
    %c48_i32_36 = arith.constant 48 : i32
    %64 = arith.addi %1, %c48_i32_36 : i32
    %c1_i32_37 = arith.constant 1 : i32
    %65 = arith.addi %64, %c1_i32_37 : i32
    %66 = arith.index_cast %65 : i32 to index
    %c0_38 = arith.constant 0 : index
    %67 = vector.load %arg2[%66, %c0_38] : memref<1080x8xf32, #tpu.memory_space<vmem>>, vector<512x8xf32>
    %68 = arith.truncf %67 : vector<512x8xf32> to vector<512x8xbf16>
    %c7 = arith.constant 7 : index
    %c0_39 = arith.constant 0 : index
    %c0_40 = arith.constant 0 : index
    %69 = vector.load %arg3[%c7, %c0_39, %c0_40] : memref<9x8x128xbf16, #tpu.memory_space<vmem>>, vector<1x8x128xbf16>
    %70 = vector.shape_cast %69 : vector<1x8x128xbf16> to vector<8x128xbf16>
    %cst_41 = arith.constant dense<0.000000e+00> : vector<512x128xf32>
    %71 = tpu.matmul %68, %70, %cst_41 {dimension_numbers = #tpu.dot_dimension_numbers<[1], [0], [0], [1], [0, 0, 1, 1], [], []>} : vector<512x8xbf16>, vector<8x128xbf16>, vector<512x128xf32> -> vector<512x128xf32>
    %72 = arith.addf %63, %71 : vector<512x128xf32>
    %c48_i32_42 = arith.constant 48 : i32
    %73 = arith.addi %1, %c48_i32_42 : i32
    %c2_i32_43 = arith.constant 2 : i32
    %74 = arith.addi %73, %c2_i32_43 : i32
    %75 = arith.index_cast %74 : i32 to index
    %c0_44 = arith.constant 0 : index
    %76 = vector.load %arg2[%75, %c0_44] : memref<1080x8xf32, #tpu.memory_space<vmem>>, vector<512x8xf32>
    %77 = arith.truncf %76 : vector<512x8xf32> to vector<512x8xbf16>
    %c8 = arith.constant 8 : index
    %c0_45 = arith.constant 0 : index
    %c0_46 = arith.constant 0 : index
    %78 = vector.load %arg3[%c8, %c0_45, %c0_46] : memref<9x8x128xbf16, #tpu.memory_space<vmem>>, vector<1x8x128xbf16>
    %79 = vector.shape_cast %78 : vector<1x8x128xbf16> to vector<8x128xbf16>
    %cst_47 = arith.constant dense<0.000000e+00> : vector<512x128xf32>
    %80 = tpu.matmul %77, %79, %cst_47 {dimension_numbers = #tpu.dot_dimension_numbers<[1], [0], [0], [1], [0, 0, 1, 1], [], []>} : vector<512x8xbf16>, vector<8x128xbf16>, vector<512x128xf32> -> vector<512x128xf32>
    %81 = arith.addf %72, %80 : vector<512x128xf32>
    %c0_48 = arith.constant 0 : index
    %c0_49 = arith.constant 0 : index
    %82 = vector.load %arg4[%c0_48, %c0_49] : memref<1x128xf32, #tpu.memory_space<vmem>>, vector<1x128xf32>
    %83 = vector.broadcast %82 : vector<1x128xf32> to vector<512x128xf32>
    %84 = arith.mulf %81, %83 : vector<512x128xf32>
    %c0_50 = arith.constant 0 : index
    %c0_51 = arith.constant 0 : index
    %85 = vector.load %arg5[%c0_50, %c0_51] : memref<1x128xf32, #tpu.memory_space<vmem>>, vector<1x128xf32>
    %86 = vector.broadcast %85 : vector<1x128xf32> to vector<512x128xf32>
    %87 = arith.addf %84, %86 : vector<512x128xf32>
    %cst_52 = arith.constant 0.000000e+00 : f32
    %88 = vector.broadcast %cst_52 : f32 to vector<512x128xf32>
    %89 = arith.maximumf %87, %88 : vector<512x128xf32>
    %c0_53 = arith.constant 0 : index
    %c0_54 = arith.constant 0 : index
    %90 = vector.load %arg6[%c0_53, %c0_54] : memref<512x128xf32, #tpu.memory_space<vmem>>, vector<512x128xf32>
    tpu.vector_store %arg6[%c0_53, %c0_54], %89 {strides = array<i32>} : memref<512x128xf32, #tpu.memory_space<vmem>>, vector<512x128xf32>,
    return
  }
  func.func @transform_0(%arg0: i32, %arg1: i32) -> (i32, i32) {
    %c0_i32 = arith.constant 0 : i32
    %c0_i32_0 = arith.constant 0 : i32
    %c0_i32_1 = arith.constant 0 : i32
    return %c0_i32, %c0_i32_0 : i32, i32
  }
  func.func @transform_1(%arg0: i32, %arg1: i32) -> (i32, i32, i32) {
    %c0_i32 = arith.constant 0 : i32
    %c0_i32_0 = arith.constant 0 : i32
    %c0_i32_1 = arith.constant 0 : i32
    return %c0_i32, %c0_i32_0, %arg0 : i32, i32, i32
  }
  func.func @transform_2(%arg0: i32, %arg1: i32) -> (i32, i32) {
    %c0_i32 = arith.constant 0 : i32
    %c0_i32_0 = arith.constant 0 : i32
    return %c0_i32, %arg0 : i32, i32
  }
  func.func @transform_3(%arg0: i32, %arg1: i32) -> (i32, i32) {
    %c0_i32 = arith.constant 0 : i32
    %c0_i32_0 = arith.constant 0 : i32
    return %c0_i32, %arg0 : i32, i32
  }
  func.func @transform_4(%arg0: i32, %arg1: i32) -> (i32, i32) {
    %c0_i32 = arith.constant 0 : i32
    return %arg1, %arg0 : i32, i32
  }
}

</mosaic_0001>

<bundles_post_ra>
// kernel: tpu_custom_call.1
= control target key start
LH: loop header
LB: loop body
LE: loop exit
PB: predicated region body
PF: predicated region fallthrough
CT: control target
= control target key end

     0   :  { %9 = vsyncpa [#allocation3], 0  ;;  %s7183_s0 = inlined_call_operand.vmem [shape: f32[1080,8], index: 0, kind: input, shape index: {}]   ;;  %s7184_s1 = inlined_call_operand.vmem [shape: bf16[9,8,128], index: 1, kind: input, shape index: {}]   ;;  %s7185_s2 = inlined_call_operand.vmem [shape: f32[1,128], index: 2, kind: input, shape index: {}]   ;;  %s7186_s3 = inlined_call_operand.vmem [shape: f32[1,128], index: 3, kind: input, shape index: {}]   ;;  %s7187_s4 = inlined_call_operand.hbm [shape: f32[1024,128], index: 4, kind: output, shape index: {}]  }
   0x1   :  { %11 = vsyncpa [#allocation3 + $0x1], 0  ;;  %s5408_s15 = smov 0   ;;  %s5410_s16 = smov 0  }
   0x2   :  { %s5412_s17 = smov 0   ;;  %s5414_s18 = smov 0  }
   0x3   :  { %s5416_s19 = smov 0   ;;  %s5418_s20 = smov 0  }
   0x4 LB: > { %s4404_s21 = sadd.s32 4294967295, %s5379_s20   ;;  %s4405_s22 = sadd.s32 4294967294, %s5379_s20   ;;  %s5379_s20 = sphi %s5418_s20, %s17_s20   ;;  %s5375_s19 = sphi %s5416_s19, %s7312_s19   ;;  %s5371_s18 = sphi %s5414_s18, %s7311_s18   ;;  %s5367_s17 = sphi %s5412_s17, %s7310_s17   ;;  %s5363_s16 = sphi %s5410_s16, %s7309_s16   ;;  %s5359_s15 = sphi %s5408_s15, %s7308_s15  }
   0x5   : > { %s26_s23 = sadd.s32 1, %s5375_s19  ;;  %s137_s24 = sadd.s32 1, %s5367_s17 }
   0x6   : > { %p27_p0 = scmp.ge.s32.totalorder %s26_s23, 2  ;;  %p147_p1 = scmp.ne.s32.totalorder %s5367_s17, %s5363_s16 }
   0x7   : > { %p148_p2 = scmp.eq.s32.totalorder %s4404_s21, 1  ;;  %p153_p3 = scmp.ne.s32.totalorder %s5363_s16, %s5359_s15 }
   0x8   : > { %s7314_s23 = smov (%p27_p0, %s26_s23), 0  ;;  %p154_p5 = scmp.eq.s32.totalorder %s4405_s22, 1 }
   0x9   : > { %p5448_p4 = por %p148_p2, %p147_p1  ;;  %s132_s26 = ssub.s32 %s5375_s19, %s7314_s23 }
   0xa   : > { %p4410_p6 = scmp.ge.s32.totalorder %s5379_s20, 1  ;;  %p135_p7 = scmp.eq.s32.totalorder %s132_s26, 0 }
   0xb   : > { %p5455_p8 = por %p154_p5, %p153_p3  ;;  %p194_p9 = scmp.lt.s32.totalorder %s5379_s20, 3 }
   0xc   : > { %s5461_s28 = scalar_select %p135_p7, %s5367_s17, %s137_s24  }
   0xd   : > { %p195_p10 = pnand %p4410_p6, %p194_p9 }
   0xf   : > { %198 = sbr.rel (%p195_p10) target bundleno = 1319 (0x527), region = 36 }
  0x14   : > { %v4478_v0 = vld [vmem:[%s7184_s1 + $0x4] sm:$0xf]  ;;  %vm533_vm0 = vcmask 1043456   ;;  %s4412_s5 = sshll.u32 %s5371_s18, 9  ;;  %v4608_v2 = vld [vmem:[%s7184_s1 + $0x8] sm:$0xf] }
  0x15   : > { %v535_v1 = vsel %vm533_vm0, %v4478_v0, 0  ;;  %s5473_s8 = scalar_lea.vmem %s7183_s0, %s4412_s5  ;;  %v4706_v3 = vld [vmem:[%s7184_s1 + $0xc] sm:$0xf]  ;;  %vm436_vm1 = vcmask 64512   ;;  %v1171_v7 = vsel %vm533_vm0, %v4608_v2, 0  ;;  %s222_s13 = sand.u32 1, %s5363_s16  }
  0x16   : > { %5235 = vmatpush.bf16.msra.mxu1 %v535_v1  ;;  %5236 = vmatpush.bf16.msra.mxu2 %v535_v1  ;;  %v5482_v4 = vld [vmem:[%s5473_s8 + $0x81] sm:$0xff]  ;;  %v5485_v5 = vld [vmem:[%s5473_s8 + $0x89] sm:$0xff]  ;;  %v1603_v8 = vsel %vm533_vm0, %v4706_v3, 0  ;;  %v5510_v22 = vld [vmem:[%s5473_s8 + $0x91] sm:$0xff]  ;;  %s4411_s22 = sshll.u32 %s222_s13, 9  ;;  %s4275_s14 = scalar_lea.hbm %s7187_s4, %s4412_s5 }
  0x17   : > { %v4446_v6 = vld [vmem:[%s5473_s8 + $0x101] sm:$0xff]  ;;  %5237 = vmatpush.bf16.msra.mxu3 %v535_v1  ;;  %544 = vmatpush.bf16.msra.mxu0 %v535_v1  ;;  %v410_v9 = vpack.c.bf16 %v5485_v5, %v5482_v4  ;;  %v4447_v10 = vld [vmem:[%s5473_s8 + $0x109] sm:$0xff]  ;;  %v5513_v23 = vld [vmem:[%s5473_s8 + $0x99] sm:$0xff]  ;;  %s6576_s24 = scalar_lea.vmem [#allocation2], %s4411_s22  ;;  %s4278_s22 = sshll.u32 %s4275_s14, 4  ;;  %s4279_s22 = int_to_ptr.hbm [resolvable:$true] %s4278_s22 }
  0x18   : > { %v4462_v11 = vld [vmem:[%s5473_s8 + $0x181] sm:$0xff]  ;;  %v4463_v12 = vld [vmem:[%s5473_s8 + $0x189] sm:$0xff]  ;;  %v418_v13 = vpack.c.bf16 %v4447_v10, %v4446_v6  ;;  %v4448_v24 = vld [vmem:[%s5473_s8 + $0x111] sm:$0xff]  ;;  %v411_v30 = vpack.c.bf16 %v5513_v23, %v5510_v22  ;;  %s4276_s21 = sshll.u32 %s6576_s24, 4  ;;  %s4263_s26 = scalar_lea.sflag [#allocation3], %s222_s13  ;;  %s4277_s21 = int_to_ptr.vmem [resolvable:$true] %s4276_s21 }
  0x19   : > { %v426_v14 = vpack.c.bf16 %v4463_v12, %v4462_v11  ;;  %v4414_v15 = vld [vmem:[%s5473_s8 + $0x1] sm:$0xff]  ;;  %v4415_v16 = vld [vmem:[%s5473_s8 + $0x9] sm:$0xff]  ;;  %4487 = vmatmul.msk.bf16.vlgmr.msra.gmra.mxu1 %vm436_vm1, %v410_v9  ;;  %v4449_v25 = vld [vmem:[%s5473_s8 + $0x119] sm:$0xff]  ;;  %s5315_s29 = sshra.s32 %s4279_s22, 4  ;;  %s5321_s6 = scalar_lea.hbm %s7187_s4, 1024  ;;  %s5316_s29 = int_to_ptr.hbm [resolvable:$true] %s5315_s29 }
  0x1a   : > { %1180 = vmatpush.bf16.msrb.mxu2 %v1171_v7  ;;  %v335_v17 = vld [vmem:[%s7184_s1] sm:$0xf]  ;;  %v402_v18 = vpack.c.bf16 %v4415_v16, %v4414_v15  ;;  %v4804_v20 = vld [vmem:[%s7184_s1 + $0x10] sm:$0xf]  ;;  %v419_v31 = vpack.c.bf16 %v4449_v25, %v4448_v24  ;;  %s5317_s18 = scalar_lea.hbm %s5316_s29, 512  ;;  %p5322_p0 = scmp.lt.s32.totalorder %s5316_s29, %s7187_s4 }
  0x1b   : > { %1612 = vmatpush.bf16.msrb.mxu3 %v1603_v8  ;;  %v803_v19 = vsel %vm533_vm0, %v335_v17, 0  ;;  %4495 = vmatmul.msk.bf16.vlgmr.msra.gmra.mxu2 %vm436_vm1, %v418_v13  ;;  %v2035_v21 = vsel %vm533_vm0, %v4804_v20, 0  ;;  %v4464_v26 = vld [vmem:[%s5473_s8 + $0x191] sm:$0xff]  ;;  %v4465_v27 = vld [vmem:[%s5473_s8 + $0x199] sm:$0xff]  ;;  %v5531_v34 = vld [vmem:[%s5473_s8 + $0xa1] sm:$0xff]  ;;  %p5318_p11 = scmp.ne.s32.totalorder %s5316_s29, %s5317_s18  ;;  %p5323_p1 = scmp.lt.s32.totalorder %s5321_s6, %s5317_s18 }
  0x1c   : > { %4503 = vmatmul.msk.bf16.vlgmr.msra.gmra.mxu3 %vm436_vm1, %v426_v14  ;;  %4479 = vmatmul.msk.bf16.vlgmr.msra.gmra.mxu0 %vm436_vm1, %v402_v18  ;;  %v4416_v28 = vld [vmem:[%s5473_s8 + $0x11] sm:$0xff]  ;;  %v5521_v29 = vld [vmem:[%s5473_s8 + $0x19] sm:$0xff]  ;;  %v427_v32 = vpack.c.bf16 %v4465_v27, %v4464_v26  ;;  %v5534_v35 = vld [vmem:[%s5473_s8 + $0xa9] sm:$0xff] }
  0x1d   : > { %812 = vmatpush.bf16.msrb.mxu1 %v803_v19  ;;  %2044 = vmatpush.bf16.msrb.mxu0 %v2035_v21  ;;  %v403_v33 = vpack.c.bf16 %v5521_v29, %v4416_v28  ;;  %v4450_v36 = vld [vmem:[%s5473_s8 + $0x121] sm:$0xff]  ;;  %v4451_v37 = vld [vmem:[%s5473_s8 + $0x129] sm:$0xff]  ;;  %v412_v42 = vpack.c.bf16 %v5534_v35, %v5531_v34  ;;  %v5555_v46 = vld [vmem:[%s5473_s8 + $0xb1] sm:$0xff]  ;;  %p5319_p12 = pnand %p5318_p11, %p5448_p4  ;;  %p5324_p2 = por %p5323_p1, %p5322_p0 }
  0x1e   : > { %v4466_v38 = vld [vmem:[%s5473_s8 + $0x1a1] sm:$0xff]  ;;  %v4467_v39 = vld [vmem:[%s5473_s8 + $0x1a9] sm:$0xff]  ;;  %v420_v43 = vpack.c.bf16 %v4451_v37, %v4450_v36  ;;  %v5558_v47 = vld [vmem:[%s5473_s8 + $0xb9] sm:$0xff] }
  0x1f   : > { %v5541_v40 = vld [vmem:[%s5473_s8 + $0x21] sm:$0xff]  ;;  %v5544_v41 = vld [vmem:[%s5473_s8 + $0x29] sm:$0xff]  ;;  %v428_v44 = vpack.c.bf16 %v4467_v39, %v4466_v38  ;;  %v4452_v48 = vld [vmem:[%s5473_s8 + $0x131] sm:$0xff]  ;;  %v413_v54 = vpack.c.bf16 %v5558_v47, %v5555_v46  ;;  %p5320_p13 = pneg %p5319_p12 }
  0x20   : > { %v404_v45 = vpack.c.bf16 %v5544_v41, %v5541_v40  ;;  %v4453_v49 = vld [vmem:[%s5473_s8 + $0x139] sm:$0xff]  ;;  %v4468_v50 = vld [vmem:[%s5473_s8 + $0x1b1] sm:$0xff]  ;;  %v5579_v58 = vld [vmem:[%s5473_s8 + $0xc1] sm:$0xff] }
  0x21   : > { %v4469_v51 = vld [vmem:[%s5473_s8 + $0x1b9] sm:$0xff]  ;;  %v5565_v52 = vld [vmem:[%s5473_s8 + $0x31] sm:$0xff]  ;;  %v421_v55 = vpack.c.bf16 %v4453_v49, %v4452_v48  ;;  %v5582_v59 = vld [vmem:[%s5473_s8 + $0xc9] sm:$0xff]  ;;  %p5325_p3 = pnand %p5324_p2, %p5320_p13 }
  0x22   : > { %v5568_v53 = vld [vmem:[%s5473_s8 + $0x39] sm:$0xff]  ;;  %v429_v56 = vpack.c.bf16 %v4469_v51, %v4468_v50  ;;  %v4454_v60 = vld [vmem:[%s5473_s8 + $0x141] sm:$0xff]  ;;  %v4455_v61 = vld [vmem:[%s5473_s8 + $0x149] sm:$0xff]  ;;  %v414_v2 = vpack.c.bf16 %v5582_v59, %v5579_v58 }
  0x23   : > { %v405_v57 = vpack.c.bf16 %v5568_v53, %v5565_v52  ;;  %v4470_v62 = vld [vmem:[%s5473_s8 + $0x1c1] sm:$0xff]  ;;  %v4471_v63 = vld [vmem:[%s5473_s8 + $0x1c9] sm:$0xff]  ;;  %v422_v3 = vpack.c.bf16 %v4455_v61, %v4454_v60  ;;  %v5603_v8 = vld [vmem:[%s5473_s8 + $0xd1] sm:$0xff] }
  0x24   : > { %v5589_v0 = vld [vmem:[%s5473_s8 + $0x41] sm:$0xff]  ;;  %v5592_v1 = vld [vmem:[%s5473_s8 + $0x49] sm:$0xff]  ;;  %v430_v6 = vpack.c.bf16 %v4471_v63, %v4470_v62  ;;  %v5606_v9 = vld [vmem:[%s5473_s8 + $0xd9] sm:$0xff] }
  0x25   : > { %v406_v7 = vpack.c.bf16 %v5592_v1, %v5589_v0  ;;  %v4456_v10 = vld [vmem:[%s5473_s8 + $0x151] sm:$0xff]  ;;  %v4457_v11 = vld [vmem:[%s5473_s8 + $0x159] sm:$0xff]  ;;  %v415_v16 = vpack.c.bf16 %v5606_v9, %v5603_v8  ;;  %v5627_v20 = vld [vmem:[%s5473_s8 + $0xe1] sm:$0xff] }
  0x26   : > { %v4472_v12 = vld [vmem:[%s5473_s8 + $0x1d1] sm:$0xff]  ;;  %v4473_v13 = vld [vmem:[%s5473_s8 + $0x1d9] sm:$0xff]  ;;  %v423_v17 = vpack.c.bf16 %v4457_v11, %v4456_v10  ;;  %v5630_v21 = vld [vmem:[%s5473_s8 + $0xe9] sm:$0xff] }
  0x27   : > { %v5613_v14 = vld [vmem:[%s5473_s8 + $0x51] sm:$0xff]  ;;  %v5616_v15 = vld [vmem:[%s5473_s8 + $0x59] sm:$0xff]  ;;  %v431_v18 = vpack.c.bf16 %v4473_v13, %v4472_v12  ;;  %v4458_v24 = vld [vmem:[%s5473_s8 + $0x161] sm:$0xff] }
  0x28   : > { %v407_v19 = vpack.c.bf16 %v5616_v15, %v5613_v14  ;;  %v4459_v25 = vld [vmem:[%s5473_s8 + $0x169] sm:$0xff]  ;;  %v4474_v26 = vld [vmem:[%s5473_s8 + $0x1e1] sm:$0xff]  ;;  %v5000_v37 = vld [vmem:[%s7184_s1 + $0x18] sm:$0xf] }
  0x29   : > { %4488 = vmatmul.msk.bf16.gmra.mxu1 %vm436_vm1, %v411_v30  ;;  %v4475_v27 = vld [vmem:[%s5473_s8 + $0x1e9] sm:$0xff]  ;;  %v5637_v28 = vld [vmem:[%s5473_s8 + $0x61] sm:$0xff]  ;;  %v2899_v38 = vsel %vm533_vm0, %v5000_v37, 0  ;;  %v5098_v39 = vld [vmem:[%s7184_s1 + $0x1c] sm:$0xf] }
  0x2a   : > { %v5640_v30 = vld [vmem:[%s5473_s8 + $0x69] sm:$0xff]  ;;  %2908 = vmatpush.bf16.msra.mxu2 %v2899_v38  ;;  %v5667_v49 = vld [vmem:[%s5473_s8 + $0xf1] sm:$0xff]  ;;  %v5670_v50 = vld [vmem:[%s5473_s8 + $0xf9] sm:$0xff] }
  0x2b   : > { %4496 = vmatmul.msk.bf16.gmra.mxu2 %vm436_vm1, %v419_v31  ;;  %v416_v31 = vpack.c.bf16 %v5630_v21, %v5627_v20  ;;  %v408_v36 = vpack.c.bf16 %v5640_v30, %v5637_v28  ;;  %v4460_v51 = vld [vmem:[%s5473_s8 + $0x171] sm:$0xff]  ;;  %v5680_v60 = vld [vmem:[%s5473_s8 + $0x79] sm:$0xff]  ;;  %v417_v61 = vpack.c.bf16 %v5670_v50, %v5667_v49 }
  0x2c   : > { %4504 = vmatmul.msk.bf16.gmra.mxu3 %vm436_vm1, %v427_v32  ;;  %4480 = vmatmul.msk.bf16.gmra.mxu0 %vm436_vm1, %v403_v33  ;;  %v424_v32 = vpack.c.bf16 %v4459_v25, %v4458_v24  ;;  %v432_v33 = vpack.c.bf16 %v4475_v27, %v4474_v26  ;;  %v4545_v10 = vld [vmem:[%s5473_s8 + $0xa] sm:$0xff]  ;;  %v4642_v11 = vld [vmem:[%s5473_s8 + $0x18] sm:$0xff]  ;;  %v4643_v12 = vld [vmem:[%s5473_s8 + $0x20] sm:$0xff] }
  0x39   : > { %4489 = vmatmul.msk.bf16.gmra.mxu1 %vm436_vm1, %v412_v42  ;;  %v3331_v42 = vsel %vm533_vm0, %v5098_v39, 0 }
  0x3a   : > { %3340 = vmatpush.bf16.msra.mxu3 %v3331_v42 }
  0x3b   : > { %4497 = vmatmul.msk.bf16.gmra.mxu2 %vm436_vm1, %v420_v43  ;;  %v4902_v43 = vld [vmem:[%s7184_s1 + $0x14] sm:$0xf] }
  0x3c   : > { %4505 = vmatmul.msk.bf16.gmra.mxu3 %vm436_vm1, %v428_v44  ;;  %4481 = vmatmul.msk.bf16.gmra.mxu0 %vm436_vm1, %v404_v45  ;;  %v2467_v44 = vsel %vm533_vm0, %v4902_v43, 0  ;;  %v5196_v45 = vld [vmem:[%s7184_s1 + $0x20] sm:$0xf] }
  0x3d   : > { %2476 = vmatpush.bf16.msra.mxu1 %v2467_v44  ;;  %v3763_v48 = vsel %vm533_vm0, %v5196_v45, 0  ;;  %v1905_v45 = vpack.c.bf16 %v5565_v52, %v5544_v41  ;;  %v4549_v41 = vld [vmem:[%s5473_s8 + $0x2a] sm:$0xff]  ;;  %v4646_v52 = vld [vmem:[%s5473_s8 + $0x38] sm:$0xff] }
  0x3e   : > { %3772 = vmatpush.bf16.msra.mxu0 %v3763_v48 }
  0x49   : > { %4490 = vmatmul.msk.bf16.gmra.mxu1 %vm436_vm1, %v413_v54  ;;  %v4461_v54 = vld [vmem:[%s5473_s8 + $0x179] sm:$0xff] }
  0x4a   : > { %v425_v62 = vpack.c.bf16 %v4461_v54, %v4460_v51 }
  0x4b   : > { %4498 = vmatmul.msk.bf16.gmra.mxu2 %vm436_vm1, %v421_v55  ;;  %v4476_v55 = vld [vmem:[%s5473_s8 + $0x1f1] sm:$0xff] }
  0x4c   : > { %4506 = vmatmul.msk.bf16.gmra.mxu3 %vm436_vm1, %v429_v56  ;;  %4482 = vmatmul.msk.bf16.gmra.mxu0 %vm436_vm1, %v405_v57  ;;  %v4477_v56 = vld [vmem:[%s5473_s8 + $0x1f9] sm:$0xff]  ;;  %v5677_v57 = vld [vmem:[%s5473_s8 + $0x71] sm:$0xff] }
  0x4d   : > { %v433_v63 = vpack.c.bf16 %v4477_v56, %v4476_v55 }
  0x59   : > { %4491 = vmatmul.msk.bf16.gmra.mxu1 %vm436_vm1, %v414_v2  ;;  %v409_v2 = vpack.c.bf16 %v5680_v60, %v5677_v57 }
  0x5b   : > { %4499 = vmatmul.msk.bf16.gmra.mxu2 %vm436_vm1, %v422_v3  ;;  %v239_v3 = vld [vmem:[%s5473_s8] sm:$0xff] }
  0x5c   : > { %4507 = vmatmul.msk.bf16.gmra.mxu3 %vm436_vm1, %v430_v6  ;;  %4483 = vmatmul.msk.bf16.gmra.mxu0 %vm436_vm1, %v406_v7  ;;  %v240_v6 = vld [vmem:[%s5473_s8 + $0x8] sm:$0xff] }
  0x5d   : > { %v4544_v7 = vld [vmem:[%s5473_s8 + $0x2] sm:$0xff]  ;;  %v303_v13 = vpack.c.bf16 %v240_v6, %v239_v3 }
  0x69   : > { %4492 = vmatmul.msk.bf16.gmra.mxu1 %vm436_vm1, %v415_v16 }
  0x6b   : > { %4500 = vmatmul.msk.bf16.gmra.mxu2 %vm436_vm1, %v423_v17  ;;  %v1040_v17 = vpack.c.bf16 %v4545_v10, %v4544_v7 }
  0x6c   : > { %4508 = vmatmul.msk.bf16.gmra.mxu3 %vm436_vm1, %v431_v18  ;;  %4484 = vmatmul.msk.bf16.gmra.mxu0 %vm436_vm1, %v407_v19  ;;  %v1472_v18 = vpack.c.bf16 %v4643_v12, %v4642_v11  ;;  %v1904_v19 = vpack.c.bf16 %v5541_v40, %v5521_v29  ;;  %v4546_v29 = vld [vmem:[%s5473_s8 + $0x12] sm:$0xff]  ;;  %v4547_v40 = vld [vmem:[%s5473_s8 + $0x1a] sm:$0xff] }
  0x6d   : > { %v1041_v43 = vpack.c.bf16 %v4547_v40, %v4546_v29  ;;  %v4649_v29 = vld [vmem:[%s5473_s8 + $0x50] sm:$0xff] }
  0x79   : > { %4493 = vmatmul.msk.bf16.gmra.mxu1 %vm436_vm1, %v416_v31 }
  0x7b   : > { %4501 = vmatmul.msk.bf16.gmra.mxu2 %vm436_vm1, %v424_v32  ;;  %v241_v32 = vld [vmem:[%s5473_s8 + $0x10] sm:$0xff] }
  0x7c   : > { %4509 = vmatmul.msk.bf16.gmra.mxu3 %vm436_vm1, %v432_v33  ;;  %4485 = vmatmul.msk.bf16.gmra.mxu0 %vm436_vm1, %v408_v36  ;;  %v4644_v33 = vld [vmem:[%s5473_s8 + $0x28] sm:$0xff]  ;;  %v4645_v36 = vld [vmem:[%s5473_s8 + $0x30] sm:$0xff]  ;;  %v304_v39 = vpack.c.bf16 %v4642_v11, %v241_v32  ;;  %v1906_v11 = vpack.c.bf16 %v5589_v0, %v5568_v53  ;;  %v4551_v53 = vld [vmem:[%s5473_s8 + $0x3a] sm:$0xff] }
  0x7d   : > { %v1473_v44 = vpack.c.bf16 %v4645_v36, %v4644_v33  ;;  %v305_v3 = vpack.c.bf16 %v4644_v33, %v4643_v12  ;;  %v4550_v32 = vld [vmem:[%s5473_s8 + $0x32] sm:$0xff]  ;;  %v4648_v0 = vld [vmem:[%s5473_s8 + $0x48] sm:$0xff] }
  0x89   : > { %4494 = vmatmul.msk.bf16.gmra.mxu1 %vm436_vm1, %v417_v61  ;;  %v4548_v61 = vld [vmem:[%s5473_s8 + $0x22] sm:$0xff] }
  0x8a   : > { %v1042_v7 = vpack.c.bf16 %v4549_v41, %v4548_v61  ;;  %v1907_v61 = vpack.c.bf16 %v5613_v14, %v5592_v1  ;;  %v4553_v1 = vld [vmem:[%s5473_s8 + $0x4a] sm:$0xff]  ;;  %v4650_v14 = vld [vmem:[%s5473_s8 + $0x58] sm:$0xff] }
  0x8b   : > { %4502 = vmatmul.msk.bf16.gmra.mxu2 %vm436_vm1, %v425_v62  ;;  %v4647_v62 = vld [vmem:[%s5473_s8 + $0x40] sm:$0xff] }
  0x8c   : > { %4510 = vmatmul.msk.bf16.gmra.mxu3 %vm436_vm1, %v433_v63  ;;  %4486 = vmatmul.msk.bf16.gmra.mxu0 %vm436_vm1, %v409_v2  ;;  %v1474_v10 = vpack.c.bf16 %v4647_v62, %v4646_v52 }
  0x96   : > { %v5696_v16 = vpop.f32.mrf.mxu1 }
  0x99   : > { %v5700_v24 = vpop.f32.mrf.mxu0  ;;  %4511 = vmatmul.msk.bf16.vlgmr.msrb.gmra.mxu1 %vm436_vm1, %v303_v13 }
  0x9b   : > { %4609 = vmatmul.msk.bf16.vlgmr.msrb.gmra.mxu2 %vm436_vm1, %v1040_v17 }
  0x9c   : > { %4707 = vmatmul.msk.bf16.vlgmr.msrb.gmra.mxu3 %vm436_vm1, %v1472_v18  ;;  %4805 = vmatmul.msk.bf16.vlgmr.msrb.gmra.mxu0 %vm436_vm1, %v1904_v19 }
  0x9e   : > { %v5706_v25 = vpop.f32.mrf.mxu2  ;;  %v5710_v27 = vpop.f32.mrf.mxu1 }
  0x9f   : > { %7190 = vst [vmem:[#allocation5_spill] sm:$0xff] %v5706_v25  ;;  %v5708_v26 = vpop.f32.mrf.mxu3 }
  0xa0   : > { %7191 = vst [vmem:[#allocation6_spill] sm:$0xff] %v5708_v26  ;;  %v4655_v26 = vld [vmem:[%s5473_s8 + $0x80] sm:$0xff] }
  0xa1   : > { %v5712_v31 = vpop.f32.mrf.mxu0 }
  0xa6   : > { %v5719_v37 = vpop.f32.mrf.mxu2  ;;  %v5723_v42 = vpop.f32.mrf.mxu1 }
  0xa7   : > { %7192 = vst [vmem:[#allocation7_spill] sm:$0xff] %v5719_v37  ;;  %v5721_v38 = vpop.f32.mrf.mxu3  ;;  %v4660_v37 = vld [vmem:[%s5473_s8 + $0xa8] sm:$0xff] }
  0xa8   : > { %7193 = vst [vmem:[#allocation8_spill] sm:$0xff] %v5721_v38 }
  0xa9   : > { %v5727_v48 = vpop.f32.mrf.mxu0  ;;  %4512 = vmatmul.msk.bf16.gmra.mxu1 %vm436_vm1, %v304_v39  ;;  %v306_v39 = vpack.c.bf16 %v4646_v52, %v4645_v36 }
  0xab   : > { %4610 = vmatmul.msk.bf16.gmra.mxu2 %vm436_vm1, %v1041_v43 }
  0xac   : > { %4708 = vmatmul.msk.bf16.gmra.mxu3 %vm436_vm1, %v1473_v44  ;;  %4806 = vmatmul.msk.bf16.gmra.mxu0 %vm436_vm1, %v1905_v45  ;;  %v1043_v44 = vpack.c.bf16 %v4551_v53, %v4550_v32  ;;  %v1475_v45 = vpack.c.bf16 %v4649_v29, %v4648_v0 }
  0xae   : > { %v5733_v51 = vpop.f32.mrf.mxu2  ;;  %v5737_v55 = vpop.f32.mrf.mxu1 }
  0xaf   : > { %7194 = vst [vmem:[#allocation9_spill] sm:$0xff] %v5733_v51  ;;  %v5735_v54 = vpop.f32.mrf.mxu3  ;;  %v4563_v51 = vld [vmem:[%s5473_s8 + $0x9a] sm:$0xff] }
  0xb0   : > { %7195 = vst [vmem:[#allocation10_spill] sm:$0xff] %v5735_v54  ;;  %v1909_v54 = vpack.c.bf16 %v5677_v57, %v5640_v30  ;;  %v4557_v30 = vld [vmem:[%s5473_s8 + $0x6a] sm:$0xff]  ;;  %v4654_v57 = vld [vmem:[%s5473_s8 + $0x78] sm:$0xff] }
  0xb1   : > { %v5739_v56 = vpop.f32.mrf.mxu0 }
  0xb6   : > { %v5745_v63 = vpop.f32.mrf.mxu2  ;;  %v5749_v6 = vpop.f32.mrf.mxu1 }
  0xb7   : > { %7196 = vst [vmem:[#allocation11_spill] sm:$0xff] %v5745_v63  ;;  %v5747_v2 = vpop.f32.mrf.mxu3 }
  0xb8   : > { %7197 = vst [vmem:[#allocation12_spill] sm:$0xff] %v5747_v2 }
  0xb9   : > { %v5753_v13 = vpop.f32.mrf.mxu0  ;;  %4513 = vmatmul.msk.bf16.gmra.mxu1 %vm436_vm1, %v305_v3 }
  0xbb   : > { %4611 = vmatmul.msk.bf16.gmra.mxu2 %vm436_vm1, %v1042_v7 }
  0xbc   : > { %4709 = vmatmul.msk.bf16.gmra.mxu3 %vm436_vm1, %v1474_v10  ;;  %4807 = vmatmul.msk.bf16.gmra.mxu0 %vm436_vm1, %v1906_v11  ;;  %v4552_v10 = vld [vmem:[%s5473_s8 + $0x42] sm:$0xff] }
  0xbd   : > { %v4651_v11 = vld [vmem:[%s5473_s8 + $0x60] sm:$0xff] }
  0xbe   : > { %v5759_v12 = vpop.f32.mrf.mxu2  ;;  %v5763_v18 = vpop.f32.mrf.mxu1 }
  0xbf   : > { %7198 = vst [vmem:[#allocation13_spill] sm:$0xff] %v5759_v12  ;;  %v5761_v17 = vpop.f32.mrf.mxu3 }
  0xc0   : > { %7199 = vst [vmem:[#allocation14_spill] sm:$0xff] %v5761_v17  ;;  %v4653_v17 = vld [vmem:[%s5473_s8 + $0x70] sm:$0xff] }
  0xc1   : > { %v5765_v19 = vpop.f32.mrf.mxu0 }
  0xc6   : > { %v5771_v40 = vpop.f32.mrf.mxu2  ;;  %v5775_v43 = vpop.f32.mrf.mxu1 }
  0xc7   : > { %7200 = vst [vmem:[#allocation15_spill] sm:$0xff] %v5771_v40  ;;  %v5773_v33 = vpop.f32.mrf.mxu3 }
  0xc8   : > { %7201 = vst [vmem:[#allocation16_spill] sm:$0xff] %v5773_v33 }
  0xc9   : > { %v5779_v41 = vpop.f32.mrf.mxu0  ;;  %4514 = vmatmul.msk.bf16.gmra.mxu1 %vm436_vm1, %v306_v39  ;;  %v307_v39 = vpack.c.bf16 %v4648_v0, %v4647_v62 }
  0xcb   : > { %4612 = vmatmul.msk.bf16.gmra.mxu2 %vm436_vm1, %v1043_v44 }
  0xcc   : > { %4710 = vmatmul.msk.bf16.gmra.mxu3 %vm436_vm1, %v1475_v45  ;;  %4808 = vmatmul.msk.bf16.gmra.mxu0 %vm436_vm1, %v1907_v61  ;;  %v1044_v45 = vpack.c.bf16 %v4553_v1, %v4552_v10  ;;  %v1476_v61 = vpack.c.bf16 %v4651_v11, %v4650_v14  ;;  %v4554_v1 = vld [vmem:[%s5473_s8 + $0x52] sm:$0xff] }
  0xce   : > { %v5785_v36 = vpop.f32.mrf.mxu2  ;;  %v5789_v3 = vpop.f32.mrf.mxu1 }
  0xcf   : > { %7202 = vst [vmem:[#allocation17_spill] sm:$0xff] %v5785_v36  ;;  %v5787_v52 = vpop.f32.mrf.mxu3 }
  0xd0   : > { %7203 = vst [vmem:[#allocation18_spill] sm:$0xff] %v5787_v52  ;;  %v1908_v52 = vpack.c.bf16 %v5637_v28, %v5616_v15  ;;  %v4555_v15 = vld [vmem:[%s5473_s8 + $0x5a] sm:$0xff]  ;;  %v4652_v28 = vld [vmem:[%s5473_s8 + $0x68] sm:$0xff] }
  0xd1   : > { %v5791_v7 = vpop.f32.mrf.mxu0 }
  0xd6   : > { %v5797_v32 = vpop.f32.mrf.mxu2  ;;  %v5801_v44 = vpop.f32.mrf.mxu1 }
  0xd7   : > { %7204 = vst [vmem:[#allocation19_spill] sm:$0xff] %v5797_v32  ;;  %v5799_v53 = vpop.f32.mrf.mxu3 }
  0xd8   : > { %7205 = vst [vmem:[#allocation20_spill] sm:$0xff] %v5799_v53 }
  0xd9   : > { %v5805_v33 = vpop.f32.mrf.mxu0  ;;  %4515 = vmatmul.msk.bf16.gmra.mxu1 %vm436_vm1, %v307_v39 }
  0xdb   : > { %4613 = vmatmul.msk.bf16.gmra.mxu2 %vm436_vm1, %v1044_v45  ;;  %v308_v45 = vpack.c.bf16 %v4650_v14, %v4649_v29 }
  0xdc   : > { %4711 = vmatmul.msk.bf16.gmra.mxu3 %vm436_vm1, %v1476_v61  ;;  %4809 = vmatmul.msk.bf16.gmra.mxu0 %vm436_vm1, %v1908_v52  ;;  %v1045_v61 = vpack.c.bf16 %v4555_v15, %v4554_v1  ;;  %v4556_v15 = vld [vmem:[%s5473_s8 + $0x62] sm:$0xff] }
  0xde   : > { %v5811_v62 = vpop.f32.mrf.mxu2  ;;  %v5815_v53 = vpop.f32.mrf.mxu1 }
  0xdf   : > { %7206 = vst [vmem:[#allocation21_spill] sm:$0xff] %v5811_v62  ;;  %v5813_v0 = vpop.f32.mrf.mxu3 }
  0xe0   : > { %7207 = vst [vmem:[#allocation22_spill] sm:$0xff] %v5813_v0  ;;  %v1477_v0 = vpack.c.bf16 %v4653_v17, %v4652_v28 }
  0xe1   : > { %v5817_v10 = vpop.f32.mrf.mxu0 }
  0xe6   : > { %v5823_v2 = vpop.f32.mrf.mxu2  ;;  %v5827_v52 = vpop.f32.mrf.mxu1 }
  0xe7   : > { %7208 = vst [vmem:[#allocation23_spill] sm:$0xff] %v5823_v2  ;;  %v5825_v39 = vpop.f32.mrf.mxu3 }
  0xe8   : > { %7209 = vst [vmem:[#allocation24_spill] sm:$0xff] %v5825_v39 }
  0xe9   : > { %v5831_v38 = vpop.f32.mrf.mxu0  ;;  %4516 = vmatmul.msk.bf16.gmra.mxu1 %vm436_vm1, %v308_v45 }
  0xeb   : > { %4614 = vmatmul.msk.bf16.gmra.mxu2 %vm436_vm1, %v1045_v61  ;;  %v1046_v61 = vpack.c.bf16 %v4557_v30, %v4556_v15  ;;  %v4558_v30 = vld [vmem:[%s5473_s8 + $0x72] sm:$0xff] }
  0xec   : > { %4712 = vmatmul.msk.bf16.gmra.mxu3 %vm436_vm1, %v1477_v0  ;;  %4810 = vmatmul.msk.bf16.gmra.mxu0 %vm436_vm1, %v1909_v54  ;;  %v309_v0 = vpack.c.bf16 %v4652_v28, %v4651_v11 }
  0xee   : > { %v5837_v29 = vpop.f32.mrf.mxu2  ;;  %v5841_v39 = vpop.f32.mrf.mxu1 }
  0xef   : > { %7210 = vst [vmem:[#allocation25_spill] sm:$0xff] %v5837_v29  ;;  %v5839_v14 = vpop.f32.mrf.mxu3  ;;  %v1910_v29 = vpack.c.bf16 %v5482_v4, %v5680_v60  ;;  %v4559_v4 = vld [vmem:[%s5473_s8 + $0x7a] sm:$0xff]  ;;  %v4656_v60 = vld [vmem:[%s5473_s8 + $0x88] sm:$0xff] }
  0xf0   : > { %7211 = vst [vmem:[#allocation26_spill] sm:$0xff] %v5839_v14  ;;  %v1478_v14 = vpack.c.bf16 %v4655_v26, %v4654_v57 }
  0xf1   : > { %v5843_v1 = vpop.f32.mrf.mxu0 }
  0xf6   : > { %v5849_v2 = vpop.f32.mrf.mxu2  ;;  %v5853_v54 = vpop.f32.mrf.mxu1 }
  0xf7   : > { %7212 = vst [vmem:[#allocation27_spill] sm:$0xff] %v5849_v2  ;;  %v5851_v45 = vpop.f32.mrf.mxu3  ;;  %v4657_v2 = vld [vmem:[%s5473_s8 + $0x90] sm:$0xff] }
  0xf8   : > { %7213 = vst [vmem:[#allocation28_spill] sm:$0xff] %v5851_v45 }
  0xf9   : > { %v5857_v62 = vpop.f32.mrf.mxu0  ;;  %4517 = vmatmul.msk.bf16.gmra.mxu1 %vm436_vm1, %v309_v0 }
  0xfb   : > { %4615 = vmatmul.msk.bf16.gmra.mxu2 %vm436_vm1, %v1046_v61  ;;  %v1047_v61 = vpack.c.bf16 %v4559_v4, %v4558_v30  ;;  %v4560_v4 = vld [vmem:[%s5473_s8 + $0x82] sm:$0xff] }
  0xfc   : > { %4713 = vmatmul.msk.bf16.gmra.mxu3 %vm436_vm1, %v1478_v14  ;;  %4811 = vmatmul.msk.bf16.gmra.mxu0 %vm436_vm1, %v1910_v29  ;;  %v310_v14 = vpack.c.bf16 %v4654_v57, %v4653_v17 }
  0xfe   : > { %v5863_v11 = vpop.f32.mrf.mxu2  ;;  %v5867_v45 = vpop.f32.mrf.mxu1 }
  0xff   : > { %7214 = vst [vmem:[#allocation29_spill] sm:$0xff] %v5863_v11  ;;  %v5865_v28 = vpop.f32.mrf.mxu3  ;;  %v1911_v11 = vpack.c.bf16 %v5510_v22, %v5485_v5  ;;  %v4561_v5 = vld [vmem:[%s5473_s8 + $0x8a] sm:$0xff]  ;;  %v4658_v22 = vld [vmem:[%s5473_s8 + $0x98] sm:$0xff] }
 0x100   : > { %7215 = vst [vmem:[#allocation30_spill] sm:$0xff] %v5865_v28  ;;  %v1479_v28 = vpack.c.bf16 %v4657_v2, %v4656_v60 }
 0x101   : > { %v5869_v15 = vpop.f32.mrf.mxu0 }
 0x106   : > { %v5875_v32 = vpop.f32.mrf.mxu2  ;;  %v5879_v29 = vpop.f32.mrf.mxu1 }
 0x107   : > { %7216 = vst [vmem:[#allocation31_spill] sm:$0xff] %v5875_v32  ;;  %v5877_v0 = vpop.f32.mrf.mxu3  ;;  %v5901_v32 = vld [vmem:[%s5473_s8 + $0xa0] sm:$0xff] }
 0x108   : > { %7217 = vst [vmem:[#allocation32_spill] sm:$0xff] %v5877_v0 }
 0x109   : > { %v5883_v36 = vpop.f32.mrf.mxu0  ;;  %4518 = vmatmul.msk.bf16.gmra.mxu1 %vm436_vm1, %v310_v14 }
 0x10b   : > { %4616 = vmatmul.msk.bf16.gmra.mxu2 %vm436_vm1, %v1047_v61 }
 0x10c   : > { %4714 = vmatmul.msk.bf16.gmra.mxu3 %vm436_vm1, %v1479_v28  ;;  %4812 = vmatmul.msk.bf16.gmra.mxu0 %vm436_vm1, %v1911_v11  ;;  %v311_v28 = vpack.c.bf16 %v4656_v60, %v4655_v26  ;;  %v1048_v11 = vpack.c.bf16 %v4561_v5, %v4560_v4 }
 0x10e   : > { %v5889_v17 = vpop.f32.mrf.mxu2  ;;  %v5893_v0 = vpop.f32.mrf.mxu1 }
 0x10f   : > { %7218 = vst [vmem:[#allocation33_spill] sm:$0xff] %v5889_v17  ;;  %v5891_v57 = vpop.f32.mrf.mxu3  ;;  %v1480_v17 = vpack.c.bf16 %v5901_v32, %v4658_v22 }
 0x110   : > { %7219 = vst [vmem:[#allocation34_spill] sm:$0xff] %v5891_v57  ;;  %v1912_v57 = vpack.c.bf16 %v5531_v34, %v5513_v23  ;;  %v4562_v23 = vld [vmem:[%s5473_s8 + $0x92] sm:$0xff] }
 0x111   : > { %7220 = vst [vmem:[#allocation35_spill] sm:$0xff] %v5893_v0  ;;  %v5895_v30 = vpop.f32.mrf.mxu0 }
 0x116   : > { %v5903_v14 = vpop.f32.mrf.mxu2  ;;  %v814_v40 = vpop.f32.mrf.mxu1 }
 0x117   : > { %7221 = vst [vmem:[#allocation36_spill] sm:$0xff] %v5903_v14  ;;  %v5905_v61 = vpop.f32.mrf.mxu3  ;;  %v815_v26 = vadd.f32 %v814_v40, %v5700_v24  ;;  %v1049_v40 = vpack.c.bf16 %v4563_v51, %v4562_v23  ;;  %v4662_v23 = vld [vmem:[%s5473_s8 + $0xb8] sm:$0xff] }
 0x118   : > { %7222 = vst [vmem:[#allocation37_spill] sm:$0xff] %v5905_v61 }
 0x119   : > { %v2046_v12 = vpop.f32.mrf.mxu0  ;;  %4519 = vmatmul.msk.bf16.gmra.mxu1 %vm436_vm1, %v311_v28  ;;  %v5921_v28 = vld [vmem:[%s5473_s8 + $0xb0] sm:$0xff] }
 0x11b   : > { %4617 = vmatmul.msk.bf16.gmra.mxu2 %vm436_vm1, %v1048_v11 }
 0x11c   : > { %4715 = vmatmul.msk.bf16.gmra.mxu3 %vm436_vm1, %v1480_v17  ;;  %4813 = vmatmul.msk.bf16.gmra.mxu0 %vm436_vm1, %v1912_v57  ;;  %v312_v57 = vpack.c.bf16 %v4658_v22, %v4657_v2 }
 0x11e   : > { %v1182_v60 = vpop.f32.mrf.mxu2  ;;  %v816_v61 = vpop.f32.mrf.mxu1 }
 0x11f   : > { %v1614_v4 = vpop.f32.mrf.mxu3  ;;  %v1342_v5 = vadd.f32 %v1182_v60, %v815_v26  ;;  %v817_v11 = vadd.f32 %v816_v61, %v5712_v31  ;;  %v1481_v26 = vpack.c.bf16 %v5921_v28, %v4660_v37  ;;  %v1913_v60 = vpack.c.bf16 %v5555_v46, %v5534_v35  ;;  %v4564_v61 = vld [vmem:[%s5473_s8 + $0xa2] sm:$0xff] }
 0x121   : > { %v1774_v14 = vadd.f32 %v1614_v4, %v1342_v5  ;;  %v2048_v63 = vpop.f32.mrf.mxu0  ;;  %v4565_v5 = vld [vmem:[%s5473_s8 + $0xaa] sm:$0xff] }
 0x123   : > { %v5916_v34 = vadd.f32 %v2046_v12, %v1774_v14 }
 0x126   : > { %v1184_v17 = vpop.f32.mrf.mxu2  ;;  %v819_v24 = vpop.f32.mrf.mxu1 }
 0x127   : > { %v1616_v25 = vpop.f32.mrf.mxu3  ;;  %v1343_v0 = vadd.f32 %v1184_v17, %v817_v11  ;;  %v820_v51 = vadd.f32 %v819_v24, %v5727_v48  ;;  %v5940_v11 = vld [vmem:[%s5473_s8 + $0xc0] sm:$0xff] }
 0x129   : > { %v1775_v12 = vadd.f32 %v1616_v25, %v1343_v0  ;;  %v2051_v14 = vpop.f32.mrf.mxu0  ;;  %4520 = vmatmul.msk.bf16.gmra.mxu1 %vm436_vm1, %v312_v57 }
 0x12b   : > { %4618 = vmatmul.msk.bf16.gmra.mxu2 %vm436_vm1, %v1049_v40  ;;  %v5930_v31 = vadd.f32 %v2048_v63, %v1775_v12  ;;  %v313_v40 = vpack.c.bf16 %v4660_v37, %v5901_v32  ;;  %v1914_v12 = vpack.c.bf16 %v5579_v58, %v5558_v47 }
 0x12c   : > { %4716 = vmatmul.msk.bf16.gmra.mxu3 %vm436_vm1, %v1481_v26  ;;  %4814 = vmatmul.msk.bf16.gmra.mxu0 %vm436_vm1, %v1913_v60  ;;  %v1050_v26 = vpack.c.bf16 %v4565_v5, %v4564_v61  ;;  %v1482_v60 = vpack.c.bf16 %v5940_v11, %v4662_v23  ;;  %v4567_v61 = vld [vmem:[%s5473_s8 + $0xba] sm:$0xff]  ;;  %v4664_v5 = vld [vmem:[%s5473_s8 + $0xc8] sm:$0xff] }
 0x12e   : > { %v1187_v2 = vpop.f32.mrf.mxu2  ;;  %v821_v46 = vpop.f32.mrf.mxu1 }
 0x12f   : > { %v1619_v22 = vpop.f32.mrf.mxu3  ;;  %v1344_v35 = vadd.f32 %v1187_v2, %v820_v51  ;;  %v822_v63 = vadd.f32 %v821_v46, %v5739_v56  ;;  %v4566_v46 = vld [vmem:[%s5473_s8 + $0xb2] sm:$0xff] }
 0x131   : > { %v1776_v25 = vadd.f32 %v1619_v22, %v1344_v35  ;;  %v2053_v0 = vpop.f32.mrf.mxu0 }
 0x133   : > { %v5935_v4 = vadd.f32 %v2051_v14, %v1776_v25 }
 0x136   : > { %v1189_v17 = vpop.f32.mrf.mxu2  ;;  %v824_v24 = vpop.f32.mrf.mxu1 }
 0x137   : > { %v1621_v57 = vpop.f32.mrf.mxu3  ;;  %v1345_v48 = vadd.f32 %v1189_v17, %v822_v63  ;;  %v825_v56 = vadd.f32 %v824_v24, %v5753_v13  ;;  %v5960_v63 = vld [vmem:[%s5473_s8 + $0xd0] sm:$0xff]  ;;  %v1051_v24 = vpack.c.bf16 %v4567_v61, %v4566_v46  ;;  %v5980_v46 = vld [vmem:[%s5473_s8 + $0xe0] sm:$0xff] }
 0x139   : > { %v1777_v14 = vadd.f32 %v1621_v57, %v1345_v48  ;;  %v2056_v51 = vpop.f32.mrf.mxu0  ;;  %4521 = vmatmul.msk.bf16.gmra.mxu1 %vm436_vm1, %v313_v40  ;;  %v314_v40 = vpack.c.bf16 %v4662_v23, %v5921_v28 }
 0x13b   : > { %4619 = vmatmul.msk.bf16.gmra.mxu2 %vm436_vm1, %v1050_v26  ;;  %v5950_v37 = vadd.f32 %v2053_v0, %v1777_v14  ;;  %v1483_v26 = vpack.c.bf16 %v5960_v63, %v4664_v5 }
 0x13c   : > { %4717 = vmatmul.msk.bf16.gmra.mxu3 %vm436_vm1, %v1482_v60  ;;  %4815 = vmatmul.msk.bf16.gmra.mxu0 %vm436_vm1, %v1914_v12  ;;  %v1915_v60 = vpack.c.bf16 %v5603_v8, %v5582_v59 }
 0x13e   : > { %v1192_v32 = vpop.f32.mrf.mxu2  ;;  %v826_v58 = vpop.f32.mrf.mxu1 }
 0x13f   : > { %v1624_v2 = vpop.f32.mrf.mxu3  ;;  %v1346_v47 = vadd.f32 %v1192_v32, %v825_v56  ;;  %v827_v0 = vadd.f32 %v826_v58, %v5765_v19  ;;  %v4569_v58 = vld [vmem:[%s5473_s8 + $0xca] sm:$0xff] }
 0x141   : > { %v1778_v22 = vadd.f32 %v1624_v2, %v1346_v47  ;;  %v2058_v35 = vpop.f32.mrf.mxu0  ;;  %v4568_v2 = vld [vmem:[%s5473_s8 + $0xc2] sm:$0xff] }
 0x143   : > { %v5955_v25 = vadd.f32 %v2056_v51, %v1778_v22  ;;  %v4666_v22 = vld [vmem:[%s5473_s8 + $0xd8] sm:$0xff] }
 0x146   : > { %v1194_v17 = vpop.f32.mrf.mxu2  ;;  %v829_v48 = vpop.f32.mrf.mxu1 }
 0x147   : > { %v1626_v57 = vpop.f32.mrf.mxu3  ;;  %v1347_v13 = vadd.f32 %v1194_v17, %v827_v0  ;;  %v830_v28 = vadd.f32 %v829_v48, %v5779_v41  ;;  %v315_v17 = vpack.c.bf16 %v4664_v5, %v5940_v11  ;;  %v1916_v48 = vpack.c.bf16 %v5627_v20, %v5606_v9 }
 0x149   : > { %v1779_v12 = vadd.f32 %v1626_v57, %v1347_v13  ;;  %v2061_v14 = vpop.f32.mrf.mxu0  ;;  %4522 = vmatmul.msk.bf16.gmra.mxu1 %vm436_vm1, %v314_v40  ;;  %v1052_v40 = vpack.c.bf16 %v4569_v58, %v4568_v2  ;;  %v1484_v13 = vpack.c.bf16 %v5980_v46, %v4666_v22  ;;  %v316_v58 = vpack.c.bf16 %v4666_v22, %v5960_v63 }
 0x14b   : > { %4620 = vmatmul.msk.bf16.gmra.mxu2 %vm436_vm1, %v1051_v24  ;;  %v5970_v19 = vadd.f32 %v2058_v35, %v1779_v12 }
 0x14c   : > { %4718 = vmatmul.msk.bf16.gmra.mxu3 %vm436_vm1, %v1483_v26  ;;  %4816 = vmatmul.msk.bf16.gmra.mxu0 %vm436_vm1, %v1915_v60 }
 0x14e   : > { %v1197_v23 = vpop.f32.mrf.mxu2  ;;  %v831_v8 = vpop.f32.mrf.mxu1 }
 0x14f   : > { %v1629_v51 = vpop.f32.mrf.mxu3  ;;  %v1348_v59 = vadd.f32 %v1197_v23, %v830_v28  ;;  %v832_v35 = vadd.f32 %v831_v8, %v5791_v7  ;;  %v4570_v28 = vld [vmem:[%s5473_s8 + $0xd2] sm:$0xff] }
 0x150   : > { %v6000_v8 = vld [vmem:[%s5473_s8 + $0xf0] sm:$0xff] }
 0x151   : > { %v1780_v56 = vadd.f32 %v1629_v51, %v1348_v59  ;;  %v2063_v32 = vpop.f32.mrf.mxu0  ;;  %v4571_v51 = vld [vmem:[%s5473_s8 + $0xda] sm:$0xff]  ;;  %v4668_v59 = vld [vmem:[%s5473_s8 + $0xe8] sm:$0xff] }
 0x153   : > { %v5975_v47 = vadd.f32 %v2061_v14, %v1780_v56 }
 0x156   : > { %v1199_v61 = vpop.f32.mrf.mxu2  ;;  %v834_v57 = vpop.f32.mrf.mxu1 }
 0x157   : > { %v1631_v0 = vpop.f32.mrf.mxu3  ;;  %v1349_v41 = vadd.f32 %v1199_v61, %v832_v35  ;;  %v835_v11 = vadd.f32 %v834_v57, %v5805_v33  ;;  %v1053_v61 = vpack.c.bf16 %v4571_v51, %v4570_v28 }
 0x159   : > { %v1781_v24 = vadd.f32 %v1631_v0, %v1349_v41  ;;  %v2066_v26 = vpop.f32.mrf.mxu0  ;;  %4523 = vmatmul.msk.bf16.gmra.mxu1 %vm436_vm1, %v315_v17  ;;  %v1485_v0 = vpack.c.bf16 %v6000_v8, %v4668_v59  ;;  %v1917_v17 = vpack.c.bf16 %v5667_v49, %v5630_v21 }
 0x15b   : > { %4621 = vmatmul.msk.bf16.gmra.mxu2 %vm436_vm1, %v1052_v40  ;;  %v5990_v7 = vadd.f32 %v2063_v32, %v1781_v24  ;;  %v4572_v24 = vld [vmem:[%s5473_s8 + $0xe2] sm:$0xff] }
 0x15c   : > { %4719 = vmatmul.msk.bf16.gmra.mxu3 %vm436_vm1, %v1484_v13  ;;  %4817 = vmatmul.msk.bf16.gmra.mxu0 %vm436_vm1, %v1916_v48 }
 0x15e   : > { %v1202_v5 = vpop.f32.mrf.mxu2  ;;  %v836_v20 = vpop.f32.mrf.mxu1 }
 0x15f   : > { %v1634_v60 = vpop.f32.mrf.mxu3  ;;  %v1350_v9 = vadd.f32 %v1202_v5, %v835_v11  ;;  %v837_v56 = vadd.f32 %v836_v20, %v5817_v10  ;;  %v4573_v11 = vld [vmem:[%s5473_s8 + $0xea] sm:$0xff]  ;;  %v4670_v5 = vld [vmem:[%s5473_s8 + $0xf8] sm:$0xff]  ;;  %v4769_v20 = vld [vmem:[%s5473_s8 + $0x101] sm:$0xff] }
 0x161   : > { %v1782_v12 = vadd.f32 %v1634_v60, %v1350_v9  ;;  %v2068_v14 = vpop.f32.mrf.mxu0  ;;  %v6020_v60 = vld [vmem:[%s5473_s8 + $0x100] sm:$0xff] }
 0x163   : > { %v5995_v23 = vadd.f32 %v2066_v26, %v1782_v12 }
 0x166   : > { %v1204_v32 = vpop.f32.mrf.mxu2  ;;  %v839_v35 = vpop.f32.mrf.mxu1 }
 0x167   : > { %v1636_v2 = vpop.f32.mrf.mxu3  ;;  %v1351_v33 = vadd.f32 %v1204_v32, %v837_v56  ;;  %v840_v63 = vadd.f32 %v839_v35, %v5831_v38  ;;  %v317_v38 = vpack.c.bf16 %v4668_v59, %v5980_v46  ;;  %v1054_v56 = vpack.c.bf16 %v4573_v11, %v4572_v24 }
 0x168   : > { %v1486_v32 = vpack.c.bf16 %v6020_v60, %v4670_v5 }
 0x169   : > { %v1783_v41 = vadd.f32 %v1636_v2, %v1351_v33  ;;  %v2071_v57 = vpop.f32.mrf.mxu0  ;;  %4524 = vmatmul.msk.bf16.gmra.mxu1 %vm436_vm1, %v316_v58  ;;  %v1918_v2 = vpack.c.bf16 %v4769_v20, %v5670_v50 }
 0x16b   : > { %4622 = vmatmul.msk.bf16.gmra.mxu2 %vm436_vm1, %v1053_v61  ;;  %v6010_v10 = vadd.f32 %v2068_v14, %v1783_v41  ;;  %v4574_v41 = vld [vmem:[%s5473_s8 + $0xf2] sm:$0xff] }
 0x16c   : > { %4720 = vmatmul.msk.bf16.gmra.mxu3 %vm436_vm1, %v1485_v0  ;;  %4818 = vmatmul.msk.bf16.gmra.mxu0 %vm436_vm1, %v1917_v17 }
 0x16e   : > { %v1207_v22 = vpop.f32.mrf.mxu2  ;;  %v841_v40 = vpop.f32.mrf.mxu1 }
 0x16f   : > { %v1639_v21 = vpop.f32.mrf.mxu3  ;;  %v1352_v49 = vadd.f32 %v1207_v22, %v840_v63  ;;  %v842_v9 = vadd.f32 %v841_v40, %v5843_v1  ;;  %v4575_v63 = vld [vmem:[%s5473_s8 + $0xfa] sm:$0xff]  ;;  %v4672_v22 = vld [vmem:[%s5473_s8 + $0x108] sm:$0xff] }
 0x170   : > { %v4770_v40 = vld [vmem:[%s5473_s8 + $0x109] sm:$0xff]  ;;  %v1055_v20 = vpack.c.bf16 %v4575_v63, %v4574_v41 }
 0x171   : > { %v1784_v13 = vadd.f32 %v1639_v21, %v1352_v49  ;;  %v2073_v48 = vpop.f32.mrf.mxu0  ;;  %v6040_v21 = vld [vmem:[%s5473_s8 + $0x110] sm:$0xff] }
 0x173   : > { %v6015_v26 = vadd.f32 %v2071_v57, %v1784_v13  ;;  %v4771_v13 = vld [vmem:[%s5473_s8 + $0x111] sm:$0xff] }
 0x176   : > { %v1209_v12 = vpop.f32.mrf.mxu2  ;;  %v844_v51 = vpop.f32.mrf.mxu1 }
 0x177   : > { %v1641_v14 = vpop.f32.mrf.mxu3  ;;  %v1353_v28 = vadd.f32 %v1209_v12, %v842_v9  ;;  %v845_v46 = vadd.f32 %v844_v51, %v5857_v62  ;;  %v318_v62 = vpack.c.bf16 %v4670_v5, %v6000_v8  ;;  %v1487_v12 = vpack.c.bf16 %v6040_v21, %v4672_v22 }
 0x179   : > { %v1785_v58 = vadd.f32 %v1641_v14, %v1353_v28  ;;  %v2076_v33 = vpop.f32.mrf.mxu0  ;;  %4525 = vmatmul.msk.bf16.gmra.mxu1 %vm436_vm1, %v317_v38  ;;  %v1919_v14 = vpack.c.bf16 %v4771_v13, %v4770_v40 }
 0x17b   : > { %4623 = vmatmul.msk.bf16.gmra.mxu2 %vm436_vm1, %v1054_v56  ;;  %v6030_v1 = vadd.f32 %v2073_v48, %v1785_v58 }
 0x17c   : > { %4721 = vmatmul.msk.bf16.gmra.mxu3 %vm436_vm1, %v1486_v32  ;;  %4819 = vmatmul.msk.bf16.gmra.mxu0 %vm436_vm1, %v1918_v2 }
 0x17e   : > { %v1212_v50 = vpop.f32.mrf.mxu2  ;;  %v846_v61 = vpop.f32.mrf.mxu1 }
 0x17f   : > { %v1644_v59 = vpop.f32.mrf.mxu3  ;;  %v1354_v35 = vadd.f32 %v1212_v50, %v845_v46  ;;  %v847_v49 = vadd.f32 %v846_v61, %v5869_v15  ;;  %v4577_v50 = vld [vmem:[%s5473_s8 + $0x10a] sm:$0xff] }
 0x181   : > { %v1786_v0 = vadd.f32 %v1644_v59, %v1354_v35  ;;  %v2078_v17 = vpop.f32.mrf.mxu0  ;;  %v4674_v59 = vld [vmem:[%s5473_s8 + $0x118] sm:$0xff]  ;;  %v6060_v35 = vld [vmem:[%s5473_s8 + $0x120] sm:$0xff] }
 0x183   : > { %v6035_v57 = vadd.f32 %v2076_v33, %v1786_v0  ;;  %v4576_v33 = vld [vmem:[%s5473_s8 + $0x102] sm:$0xff]  ;;  %v4772_v0 = vld [vmem:[%s5473_s8 + $0x119] sm:$0xff] }
 0x184   : > { %v1056_v13 = vpack.c.bf16 %v4577_v50, %v4576_v33 }
 0x186   : > { %v1214_v48 = vpop.f32.mrf.mxu2  ;;  %v849_v9 = vpop.f32.mrf.mxu1 }
 0x187   : > { %v1646_v24 = vpop.f32.mrf.mxu3  ;;  %v1355_v11 = vadd.f32 %v1214_v48, %v847_v49  ;;  %v850_v8 = vadd.f32 %v849_v9, %v5883_v36  ;;  %v319_v36 = vpack.c.bf16 %v4672_v22, %v6020_v60  ;;  %v1488_v48 = vpack.c.bf16 %v6060_v35, %v4674_v59 }
 0x189   : > { %v1787_v38 = vadd.f32 %v1646_v24, %v1355_v11  ;;  %v2081_v28 = vpop.f32.mrf.mxu0  ;;  %4526 = vmatmul.msk.bf16.gmra.mxu1 %vm436_vm1, %v318_v62 }
 0x18b   : > { %4624 = vmatmul.msk.bf16.gmra.mxu2 %vm436_vm1, %v1055_v20  ;;  %v6050_v15 = vadd.f32 %v2078_v17, %v1787_v38  ;;  %v4773_v17 = vld [vmem:[%s5473_s8 + $0x121] sm:$0xff] }
 0x18c   : > { %4722 = vmatmul.msk.bf16.gmra.mxu3 %vm436_vm1, %v1487_v12  ;;  %4820 = vmatmul.msk.bf16.gmra.mxu0 %vm436_vm1, %v1919_v14  ;;  %v1920_v24 = vpack.c.bf16 %v4773_v17, %v4772_v0 }
 0x18e   : > { %v1217_v5 = vpop.f32.mrf.mxu2  ;;  %v851_v32 = vpop.f32.mrf.mxu1 }
 0x18f   : > { %v1649_v51 = vpop.f32.mrf.mxu3  ;;  %v1356_v56 = vadd.f32 %v1217_v5, %v850_v8  ;;  %v852_v61 = vadd.f32 %v851_v32, %v5895_v30  ;;  %v4579_v5 = vld [vmem:[%s5473_s8 + $0x11a] sm:$0xff] }
 0x191   : > { %v1788_v2 = vadd.f32 %v1649_v51, %v1356_v56  ;;  %v2083_v58 = vpop.f32.mrf.mxu0  ;;  %v4676_v51 = vld [vmem:[%s5473_s8 + $0x128] sm:$0xff]  ;;  %v6080_v56 = vld [vmem:[%s5473_s8 + $0x130] sm:$0xff] }
 0x193   : > { %v6055_v46 = vadd.f32 %v2081_v28, %v1788_v2  ;;  %v4578_v28 = vld [vmem:[%s5473_s8 + $0x112] sm:$0xff]  ;;  %v4774_v2 = vld [vmem:[%s5473_s8 + $0x129] sm:$0xff] }
 0x194   : > { %v1057_v17 = vpack.c.bf16 %v4579_v5, %v4578_v28 }
 0x196   : > { %v1219_v41 = vpop.f32.mrf.mxu2  ;;  %v854_v40 = vpop.f32.mrf.mxu1 }
 0x197   : > { %v1651_v63 = vpop.f32.mrf.mxu3  ;;  %v1357_v49 = vadd.f32 %v1219_v41, %v852_v61  ;;  %v855_v60 = vadd.f32 %v854_v40, %v5696_v16  ;;  %v320_v16 = vpack.c.bf16 %v4674_v59, %v6040_v21  ;;  %v1489_v41 = vpack.c.bf16 %v6080_v56, %v4676_v51 }
 0x199   : > { %v1789_v62 = vadd.f32 %v1651_v63, %v1357_v49  ;;  %v2086_v11 = vpop.f32.mrf.mxu0  ;;  %4527 = vmatmul.msk.bf16.gmra.mxu1 %vm436_vm1, %v319_v36 }
 0x19b   : > { %4625 = vmatmul.msk.bf16.gmra.mxu2 %vm436_vm1, %v1056_v13  ;;  %v6070_v30 = vadd.f32 %v2083_v58, %v1789_v62  ;;  %v4775_v58 = vld [vmem:[%s5473_s8 + $0x131] sm:$0xff] }
 0x19c   : > { %4723 = vmatmul.msk.bf16.gmra.mxu3 %vm436_vm1, %v1488_v48  ;;  %4821 = vmatmul.msk.bf16.gmra.mxu0 %vm436_vm1, %v1920_v24  ;;  %v1921_v63 = vpack.c.bf16 %v4775_v58, %v4774_v2 }
 0x19e   : > { %v1222_v22 = vpop.f32.mrf.mxu2  ;;  %v856_v12 = vpop.f32.mrf.mxu1 }
 0x19f   : > { %v1654_v9 = vpop.f32.mrf.mxu3  ;;  %v1358_v20 = vadd.f32 %v1222_v22, %v855_v60  ;;  %v857_v32 = vadd.f32 %v856_v12, %v5710_v27  ;;  %v4581_v22 = vld [vmem:[%s5473_s8 + $0x12a] sm:$0xff] }
 0x1a1   : > { %v1790_v14 = vadd.f32 %v1654_v9, %v1358_v20  ;;  %v2088_v38 = vpop.f32.mrf.mxu0  ;;  %v4678_v9 = vld [vmem:[%s5473_s8 + $0x138] sm:$0xff]  ;;  %v6100_v20 = vld [vmem:[%s5473_s8 + $0x140] sm:$0xff] }
 0x1a3   : > { %v6075_v8 = vadd.f32 %v2086_v11, %v1790_v14  ;;  %v4580_v11 = vld [vmem:[%s5473_s8 + $0x122] sm:$0xff]  ;;  %v4776_v14 = vld [vmem:[%s5473_s8 + $0x139] sm:$0xff] }
 0x1a4   : > { %v1058_v58 = vpack.c.bf16 %v4581_v22, %v4580_v11 }
 0x1a6   : > { %v1224_v33 = vpop.f32.mrf.mxu2  ;;  %v859_v0 = vpop.f32.mrf.mxu1 }
 0x1a7   : > { %v1656_v50 = vpop.f32.mrf.mxu3  ;;  %v1359_v61 = vadd.f32 %v1224_v33, %v857_v32  ;;  %v860_v21 = vadd.f32 %v859_v0, %v5723_v42  ;;  %v321_v42 = vpack.c.bf16 %v4676_v51, %v6060_v35  ;;  %v1490_v33 = vpack.c.bf16 %v6100_v20, %v4678_v9 }
 0x1a9   : > { %v1791_v36 = vadd.f32 %v1656_v50, %v1359_v61  ;;  %v2091_v49 = vpop.f32.mrf.mxu0  ;;  %4528 = vmatmul.msk.bf16.gmra.mxu1 %vm436_vm1, %v320_v16 }
 0x1ab   : > { %4626 = vmatmul.msk.bf16.gmra.mxu2 %vm436_vm1, %v1057_v17  ;;  %v6090_v27 = vadd.f32 %v2088_v38, %v1791_v36  ;;  %v4777_v38 = vld [vmem:[%s5473_s8 + $0x141] sm:$0xff] }
 0x1ac   : > { %4724 = vmatmul.msk.bf16.gmra.mxu3 %vm436_vm1, %v1489_v41  ;;  %4822 = vmatmul.msk.bf16.gmra.mxu0 %vm436_vm1, %v1921_v63  ;;  %v1922_v50 = vpack.c.bf16 %v4777_v38, %v4776_v14 }
 0x1ae   : > { %v1227_v59 = vpop.f32.mrf.mxu2  ;;  %v861_v48 = vpop.f32.mrf.mxu1 }
 0x1af   : > { %v1659_v40 = vpop.f32.mrf.mxu3  ;;  %v1360_v13 = vadd.f32 %v1227_v59, %v860_v21  ;;  %v862_v12 = vadd.f32 %v861_v48, %v5737_v55  ;;  %v4583_v59 = vld [vmem:[%s5473_s8 + $0x13a] sm:$0xff] }
 0x1b1   : > { %v1792_v24 = vadd.f32 %v1659_v40, %v1360_v13  ;;  %v2093_v62 = vpop.f32.mrf.mxu0  ;;  %v4680_v40 = vld [vmem:[%s5473_s8 + $0x148] sm:$0xff]  ;;  %v6120_v13 = vld [vmem:[%s5473_s8 + $0x150] sm:$0xff] }
 0x1b3   : > { %v6095_v60 = vadd.f32 %v2091_v49, %v1792_v24  ;;  %v4582_v49 = vld [vmem:[%s5473_s8 + $0x132] sm:$0xff]  ;;  %v4778_v24 = vld [vmem:[%s5473_s8 + $0x149] sm:$0xff] }
 0x1b4   : > { %v1059_v38 = vpack.c.bf16 %v4583_v59, %v4582_v49 }
 0x1b6   : > { %v1229_v28 = vpop.f32.mrf.mxu2  ;;  %v864_v2 = vpop.f32.mrf.mxu1 }
 0x1b7   : > { %v1661_v5 = vpop.f32.mrf.mxu3  ;;  %v1361_v32 = vadd.f32 %v1229_v28, %v862_v12  ;;  %v865_v35 = vadd.f32 %v864_v2, %v5749_v6  ;;  %v322_v6 = vpack.c.bf16 %v4678_v9, %v6080_v56  ;;  %v1491_v28 = vpack.c.bf16 %v6120_v13, %v4680_v40 }
 0x1b9   : > { %v1793_v16 = vadd.f32 %v1661_v5, %v1361_v32  ;;  %v2096_v61 = vpop.f32.mrf.mxu0  ;;  %4529 = vmatmul.msk.bf16.gmra.mxu1 %vm436_vm1, %v321_v42 }
 0x1bb   : > { %4627 = vmatmul.msk.bf16.gmra.mxu2 %vm436_vm1, %v1058_v58  ;;  %v6110_v55 = vadd.f32 %v2093_v62, %v1793_v16  ;;  %v4779_v62 = vld [vmem:[%s5473_s8 + $0x151] sm:$0xff] }
 0x1bc   : > { %4725 = vmatmul.msk.bf16.gmra.mxu3 %vm436_vm1, %v1490_v33  ;;  %4823 = vmatmul.msk.bf16.gmra.mxu0 %vm436_vm1, %v1922_v50  ;;  %v1923_v5 = vpack.c.bf16 %v4779_v62, %v4778_v24 }
 0x1be   : > { %v1232_v51 = vpop.f32.mrf.mxu2  ;;  %v866_v41 = vpop.f32.mrf.mxu1 }
 0x1bf   : > { %v1664_v0 = vpop.f32.mrf.mxu3  ;;  %v1362_v17 = vadd.f32 %v1232_v51, %v865_v35  ;;  %v867_v48 = vadd.f32 %v866_v41, %v5763_v18  ;;  %v4585_v51 = vld [vmem:[%s5473_s8 + $0x14a] sm:$0xff] }
 0x1c1   : > { %v1794_v63 = vadd.f32 %v1664_v0, %v1362_v17  ;;  %v2098_v36 = vpop.f32.mrf.mxu0  ;;  %v4682_v0 = vld [vmem:[%s5473_s8 + $0x158] sm:$0xff]  ;;  %v6140_v17 = vld [vmem:[%s5473_s8 + $0x160] sm:$0xff] }
 0x1c3   : > { %v6115_v21 = vadd.f32 %v2096_v61, %v1794_v63  ;;  %v4584_v61 = vld [vmem:[%s5473_s8 + $0x142] sm:$0xff]  ;;  %v4780_v63 = vld [vmem:[%s5473_s8 + $0x159] sm:$0xff] }
 0x1c4   : > { %v1060_v62 = vpack.c.bf16 %v4585_v51, %v4584_v61 }
 0x1c6   : > { %v1234_v11 = vpop.f32.mrf.mxu2  ;;  %v869_v14 = vpop.f32.mrf.mxu1 }
 0x1c7   : > { %v1666_v22 = vpop.f32.mrf.mxu3  ;;  %v1363_v12 = vadd.f32 %v1234_v11, %v867_v48  ;;  %v870_v56 = vadd.f32 %v869_v14, %v5775_v43  ;;  %v323_v43 = vpack.c.bf16 %v4680_v40, %v6100_v20  ;;  %v1492_v11 = vpack.c.bf16 %v6140_v17, %v4682_v0 }
 0x1c9   : > { %v1795_v42 = vadd.f32 %v1666_v22, %v1363_v12  ;;  %v2101_v32 = vpop.f32.mrf.mxu0  ;;  %4530 = vmatmul.msk.bf16.gmra.mxu1 %vm436_vm1, %v322_v6 }
 0x1cb   : > { %4628 = vmatmul.msk.bf16.gmra.mxu2 %vm436_vm1, %v1059_v38  ;;  %v6130_v18 = vadd.f32 %v2098_v36, %v1795_v42  ;;  %v4781_v36 = vld [vmem:[%s5473_s8 + $0x161] sm:$0xff] }
 0x1cc   : > { %4726 = vmatmul.msk.bf16.gmra.mxu3 %vm436_vm1, %v1491_v28  ;;  %4824 = vmatmul.msk.bf16.gmra.mxu0 %vm436_vm1, %v1923_v5  ;;  %v1924_v22 = vpack.c.bf16 %v4781_v36, %v4780_v63 }
 0x1ce   : > { %v1237_v9 = vpop.f32.mrf.mxu2  ;;  %v871_v33 = vpop.f32.mrf.mxu1 }
 0x1cf   : > { %v1669_v2 = vpop.f32.mrf.mxu3  ;;  %v1364_v58 = vadd.f32 %v1237_v9, %v870_v56  ;;  %v872_v41 = vadd.f32 %v871_v33, %v5789_v3  ;;  %v4587_v9 = vld [vmem:[%s5473_s8 + $0x15a] sm:$0xff] }
 0x1d1   : > { %v1796_v50 = vadd.f32 %v1669_v2, %v1364_v58  ;;  %v2103_v16 = vpop.f32.mrf.mxu0  ;;  %v4684_v2 = vld [vmem:[%s5473_s8 + $0x168] sm:$0xff]  ;;  %v6160_v58 = vld [vmem:[%s5473_s8 + $0x170] sm:$0xff] }
 0x1d3   : > { %v6135_v35 = vadd.f32 %v2101_v32, %v1796_v50  ;;  %v4586_v32 = vld [vmem:[%s5473_s8 + $0x152] sm:$0xff]  ;;  %v4782_v50 = vld [vmem:[%s5473_s8 + $0x169] sm:$0xff] }
 0x1d4   : > { %v1061_v36 = vpack.c.bf16 %v4587_v9, %v4586_v32 }
 0x1d6   : > { %v1239_v49 = vpop.f32.mrf.mxu2  ;;  %v874_v24 = vpop.f32.mrf.mxu1 }
 0x1d7   : > { %v1671_v59 = vpop.f32.mrf.mxu3  ;;  %v1365_v48 = vadd.f32 %v1239_v49, %v872_v41  ;;  %v875_v20 = vadd.f32 %v874_v24, %v5801_v44  ;;  %v324_v44 = vpack.c.bf16 %v4682_v0, %v6120_v13  ;;  %v1493_v49 = vpack.c.bf16 %v6160_v58, %v4684_v2 }
 0x1d9   : > { %v1797_v6 = vadd.f32 %v1671_v59, %v1365_v48  ;;  %v2106_v12 = vpop.f32.mrf.mxu0  ;;  %4531 = vmatmul.msk.bf16.gmra.mxu1 %vm436_vm1, %v323_v43 }
 0x1db   : > { %4629 = vmatmul.msk.bf16.gmra.mxu2 %vm436_vm1, %v1060_v62  ;;  %v6150_v3 = vadd.f32 %v2103_v16, %v1797_v6  ;;  %v4783_v16 = vld [vmem:[%s5473_s8 + $0x171] sm:$0xff] }
 0x1dc   : > { %4727 = vmatmul.msk.bf16.gmra.mxu3 %vm436_vm1, %v1492_v11  ;;  %4825 = vmatmul.msk.bf16.gmra.mxu0 %vm436_vm1, %v1924_v22  ;;  %v1925_v59 = vpack.c.bf16 %v4783_v16, %v4782_v50 }
 0x1de   : > { %v1242_v40 = vpop.f32.mrf.mxu2  ;;  %v876_v28 = vpop.f32.mrf.mxu1 }
 0x1df   : > { %v1674_v14 = vpop.f32.mrf.mxu3  ;;  %v1366_v38 = vadd.f32 %v1242_v40, %v875_v20  ;;  %v877_v33 = vadd.f32 %v876_v28, %v5815_v53  ;;  %v4589_v40 = vld [vmem:[%s5473_s8 + $0x16a] sm:$0xff] }
 0x1e1   : > { %v1798_v5 = vadd.f32 %v1674_v14, %v1366_v38  ;;  %v2108_v42 = vpop.f32.mrf.mxu0  ;;  %v4686_v14 = vld [vmem:[%s5473_s8 + $0x178] sm:$0xff]  ;;  %v6180_v38 = vld [vmem:[%s5473_s8 + $0x180] sm:$0xff] }
 0x1e3   : > { %v6155_v56 = vadd.f32 %v2106_v12, %v1798_v5  ;;  %v4588_v12 = vld [vmem:[%s5473_s8 + $0x162] sm:$0xff]  ;;  %v4784_v5 = vld [vmem:[%s5473_s8 + $0x179] sm:$0xff] }
 0x1e4   : > { %v1062_v16 = vpack.c.bf16 %v4589_v40, %v4588_v12 }
 0x1e6   : > { %v1244_v61 = vpop.f32.mrf.mxu2  ;;  %v879_v63 = vpop.f32.mrf.mxu1 }
 0x1e7   : > { %v1676_v51 = vpop.f32.mrf.mxu3  ;;  %v1367_v41 = vadd.f32 %v1244_v61, %v877_v33  ;;  %v880_v13 = vadd.f32 %v879_v63, %v5827_v52  ;;  %v325_v52 = vpack.c.bf16 %v4684_v2, %v6140_v17  ;;  %v1494_v61 = vpack.c.bf16 %v6180_v38, %v4686_v14 }
 0x1e9   : > { %v1799_v43 = vadd.f32 %v1676_v51, %v1367_v41  ;;  %v2111_v48 = vpop.f32.mrf.mxu0  ;;  %4532 = vmatmul.msk.bf16.gmra.mxu1 %vm436_vm1, %v324_v44 }
 0x1eb   : > { %4630 = vmatmul.msk.bf16.gmra.mxu2 %vm436_vm1, %v1061_v36  ;;  %v6170_v53 = vadd.f32 %v2108_v42, %v1799_v43  ;;  %v4785_v42 = vld [vmem:[%s5473_s8 + $0x181] sm:$0xff] }
 0x1ec   : > { %4728 = vmatmul.msk.bf16.gmra.mxu3 %vm436_vm1, %v1493_v49  ;;  %4826 = vmatmul.msk.bf16.gmra.mxu0 %vm436_vm1, %v1925_v59  ;;  %v1926_v51 = vpack.c.bf16 %v4785_v42, %v4784_v5 }
 0x1ee   : > { %v1247_v0 = vpop.f32.mrf.mxu2  ;;  %v881_v11 = vpop.f32.mrf.mxu1 }
 0x1ef   : > { %v1679_v24 = vpop.f32.mrf.mxu3  ;;  %v1368_v62 = vadd.f32 %v1247_v0, %v880_v13  ;;  %v882_v28 = vadd.f32 %v881_v11, %v5841_v39  ;;  %v4591_v0 = vld [vmem:[%s5473_s8 + $0x17a] sm:$0xff] }
 0x1f1   : > { %v1800_v22 = vadd.f32 %v1679_v24, %v1368_v62  ;;  %v2113_v6 = vpop.f32.mrf.mxu0  ;;  %v4688_v24 = vld [vmem:[%s5473_s8 + $0x188] sm:$0xff]  ;;  %v6200_v62 = vld [vmem:[%s5473_s8 + $0x190] sm:$0xff] }
 0x1f3   : > { %v6175_v20 = vadd.f32 %v2111_v48, %v1800_v22  ;;  %v4590_v48 = vld [vmem:[%s5473_s8 + $0x172] sm:$0xff]  ;;  %v4786_v22 = vld [vmem:[%s5473_s8 + $0x189] sm:$0xff] }
 0x1f4   : > { %v1063_v42 = vpack.c.bf16 %v4591_v0, %v4590_v48  ;;  %v4789_v48 = vld [vmem:[%s5473_s8 + $0x1a1] sm:$0xff] }
 0x1f6   : > { %v1249_v32 = vpop.f32.mrf.mxu2  ;;  %v884_v50 = vpop.f32.mrf.mxu1 }
 0x1f7   : > { %v1681_v9 = vpop.f32.mrf.mxu3  ;;  %v1369_v33 = vadd.f32 %v1249_v32, %v882_v28  ;;  %v885_v17 = vadd.f32 %v884_v50, %v5853_v54  ;;  %v326_v54 = vpack.c.bf16 %v4686_v14, %v6160_v58  ;;  %v1495_v32 = vpack.c.bf16 %v6200_v62, %v4688_v24 }
 0x1f9   : > { %v1801_v44 = vadd.f32 %v1681_v9, %v1369_v33  ;;  %v2116_v41 = vpop.f32.mrf.mxu0  ;;  %4533 = vmatmul.msk.bf16.gmra.mxu1 %vm436_vm1, %v325_v52 }
 0x1fb   : > { %4631 = vmatmul.msk.bf16.gmra.mxu2 %vm436_vm1, %v1062_v16  ;;  %v6190_v39 = vadd.f32 %v2113_v6, %v1801_v44  ;;  %v4787_v6 = vld [vmem:[%s5473_s8 + $0x191] sm:$0xff] }
 0x1fc   : > { %4729 = vmatmul.msk.bf16.gmra.mxu3 %vm436_vm1, %v1494_v61  ;;  %4827 = vmatmul.msk.bf16.gmra.mxu0 %vm436_vm1, %v1926_v51  ;;  %v1927_v9 = vpack.c.bf16 %v4787_v6, %v4786_v22 }
 0x1fe   : > { %v1252_v2 = vpop.f32.mrf.mxu2  ;;  %v886_v49 = vpop.f32.mrf.mxu1 }
 0x1ff   : > { %v1684_v63 = vpop.f32.mrf.mxu3  ;;  %v1370_v36 = vadd.f32 %v1252_v2, %v885_v17  ;;  %v887_v11 = vadd.f32 %v886_v49, %v5867_v45  ;;  %v4593_v2 = vld [vmem:[%s5473_s8 + $0x18a] sm:$0xff] }
 0x200   : > { %v7223_v49 = vld [vmem:[#allocation35_spill] sm:$0xff] }
 0x201   : > { %v1802_v59 = vadd.f32 %v1684_v63, %v1370_v36  ;;  %v2118_v43 = vpop.f32.mrf.mxu0  ;;  %v4690_v63 = vld [vmem:[%s5473_s8 + $0x198] sm:$0xff]  ;;  %v6220_v36 = vld [vmem:[%s5473_s8 + $0x1a0] sm:$0xff] }
 0x203   : > { %v6195_v13 = vadd.f32 %v2116_v41, %v1802_v59  ;;  %v4592_v41 = vld [vmem:[%s5473_s8 + $0x182] sm:$0xff] }
 0x206   : > { %v1254_v12 = vpop.f32.mrf.mxu2  ;;  %v889_v5 = vpop.f32.mrf.mxu1 }
 0x207   : > { %v1686_v40 = vpop.f32.mrf.mxu3  ;;  %v1371_v28 = vadd.f32 %v1254_v12, %v887_v11  ;;  %v890_v58 = vadd.f32 %v889_v5, %v5879_v29  ;;  %v327_v29 = vpack.c.bf16 %v4688_v24, %v6180_v38  ;;  %v1064_v12 = vpack.c.bf16 %v4593_v2, %v4592_v41  ;;  %v7224_v24 = vld [vmem:[#allocation5_spill] sm:$0xff]  ;;  %v6240_v41 = vld [vmem:[%s5473_s8 + $0x1b0] sm:$0xff] }
 0x209   : > { %v1803_v52 = vadd.f32 %v1686_v40, %v1371_v28  ;;  %v2121_v33 = vpop.f32.mrf.mxu0  ;;  %4534 = vmatmul.msk.bf16.gmra.mxu1 %vm436_vm1, %v326_v54  ;;  %v1496_v40 = vpack.c.bf16 %v6220_v36, %v4690_v63 }
 0x20b   : > { %4632 = vmatmul.msk.bf16.gmra.mxu2 %vm436_vm1, %v1063_v42  ;;  %v6210_v45 = vadd.f32 %v2118_v43, %v1803_v52  ;;  %v4788_v43 = vld [vmem:[%s5473_s8 + $0x199] sm:$0xff] }
 0x20c   : > { %4730 = vmatmul.msk.bf16.gmra.mxu3 %vm436_vm1, %v1495_v32  ;;  %4828 = vmatmul.msk.bf16.gmra.mxu0 %vm436_vm1, %v1927_v9  ;;  %v1928_v54 = vpack.c.bf16 %v4789_v48, %v4788_v43 }
 0x20e   : > { %v1257_v14 = vpop.f32.mrf.mxu2  ;;  %v891_v61 = vpop.f32.mrf.mxu1 }
 0x20f   : > { %v1689_v50 = vpop.f32.mrf.mxu3  ;;  %v1372_v16 = vadd.f32 %v1257_v14, %v890_v58  ;;  %v892_v59 = vadd.f32 %v891_v61, %v7223_v49  ;;  %v4595_v61 = vld [vmem:[%s5473_s8 + $0x19a] sm:$0xff]  ;;  %v4790_v49 = vld [vmem:[%s5473_s8 + $0x1a9] sm:$0xff] }
 0x211   : > { %v1804_v51 = vadd.f32 %v1689_v50, %v1372_v16  ;;  %v2123_v44 = vpop.f32.mrf.mxu0  ;;  %v4594_v50 = vld [vmem:[%s5473_s8 + $0x192] sm:$0xff] }
 0x213   : > { %v6215_v17 = vadd.f32 %v2121_v33, %v1804_v51  ;;  %v4692_v51 = vld [vmem:[%s5473_s8 + $0x1a8] sm:$0xff] }
 0x216   : > { %v1259_v0 = vpop.f32.mrf.mxu2  ;;  %v894_v6 = vpop.f32.mrf.mxu1 }
 0x217   : > { %v1691_v11 = vpop.f32.mrf.mxu3  ;;  %v1373_v22 = vadd.f32 %v1259_v0, %v892_v59  ;;  %v895_v42 = vadd.f32 %v894_v6, %v7224_v24  ;;  %v4791_v59 = vld [vmem:[%s5473_s8 + $0x1b1] sm:$0xff]  ;;  %v328_v0 = vpack.c.bf16 %v4690_v63, %v6200_v62  ;;  %v1497_v6 = vpack.c.bf16 %v6240_v41, %v4692_v51  ;;  %v7226_v63 = vld [vmem:[#allocation9_spill] sm:$0xff] }
 0x219   : > { %v1805_v28 = vadd.f32 %v1691_v11, %v1373_v22  ;;  %v2126_v5 = vpop.f32.mrf.mxu0  ;;  %4535 = vmatmul.msk.bf16.gmra.mxu1 %vm436_vm1, %v327_v29  ;;  %v1065_v22 = vpack.c.bf16 %v4595_v61, %v4594_v50  ;;  %v4597_v50 = vld [vmem:[%s5473_s8 + $0x1aa] sm:$0xff]  ;;  %v4694_v61 = vld [vmem:[%s5473_s8 + $0x1b8] sm:$0xff] }
 0x21b   : > { %4633 = vmatmul.msk.bf16.gmra.mxu2 %vm436_vm1, %v1064_v12  ;;  %v6230_v38 = vadd.f32 %v2123_v44, %v1805_v28  ;;  %v7225_v44 = vld [vmem:[#allocation7_spill] sm:$0xff]  ;;  %v1929_v12 = vpack.c.bf16 %v4791_v59, %v4790_v49  ;;  %v4792_v49 = vld [vmem:[%s5473_s8 + $0x1b9] sm:$0xff]  ;;  %v4793_v59 = vld [vmem:[%s5473_s8 + $0x1c1] sm:$0xff] }
 0x21c   : > { %4731 = vmatmul.msk.bf16.gmra.mxu3 %vm436_vm1, %v1496_v40  ;;  %4829 = vmatmul.msk.bf16.gmra.mxu0 %vm436_vm1, %v1928_v54 }
 0x21e   : > { %v1262_v32 = vpop.f32.mrf.mxu2  ;;  %v896_v33 = vpop.f32.mrf.mxu1 }
 0x21f   : > { %v1694_v9 = vpop.f32.mrf.mxu3  ;;  %v1374_v52 = vadd.f32 %v1262_v32, %v895_v42  ;;  %v897_v2 = vadd.f32 %v896_v33, %v7225_v44  ;;  %v4596_v33 = vld [vmem:[%s5473_s8 + $0x1a2] sm:$0xff] }
 0x220   : > { %v6260_v44 = vld [vmem:[%s5473_s8 + $0x1c0] sm:$0xff] }
 0x221   : > { %v1806_v58 = vadd.f32 %v1694_v9, %v1374_v52  ;;  %v2128_v14 = vpop.f32.mrf.mxu0 }
 0x223   : > { %v6235_v16 = vadd.f32 %v2126_v5, %v1806_v58 }
 0x226   : > { %v1264_v43 = vpop.f32.mrf.mxu2  ;;  %v899_v29 = vpop.f32.mrf.mxu1 }
 0x227   : > { %v1696_v48 = vpop.f32.mrf.mxu3  ;;  %v1375_v11 = vadd.f32 %v1264_v43, %v897_v2  ;;  %v900_v28 = vadd.f32 %v899_v29, %v7226_v63 }
 0x229   : > { %v1807_v40 = vadd.f32 %v1696_v48, %v1375_v11  ;;  %v2131_v54 = vpop.f32.mrf.mxu0  ;;  %4536 = vmatmul.msk.bf16.gmra.mxu1 %vm436_vm1, %v328_v0  ;;  %v329_v0 = vpack.c.bf16 %v4692_v51, %v6220_v36  ;;  %v7228_v51 = vld [vmem:[#allocation13_spill] sm:$0xff] }
 0x22b   : > { %4634 = vmatmul.msk.bf16.gmra.mxu2 %vm436_vm1, %v1065_v22  ;;  %v6250_v62 = vadd.f32 %v2128_v14, %v1807_v40  ;;  %v7227_v14 = vld [vmem:[#allocation11_spill] sm:$0xff]  ;;  %v1066_v22 = vpack.c.bf16 %v4597_v50, %v4596_v33 }
 0x22c   : > { %4732 = vmatmul.msk.bf16.gmra.mxu3 %vm436_vm1, %v1497_v6  ;;  %4830 = vmatmul.msk.bf16.gmra.mxu0 %vm436_vm1, %v1929_v12  ;;  %v1498_v6 = vpack.c.bf16 %v6260_v44, %v4694_v61  ;;  %v1930_v12 = vpack.c.bf16 %v4793_v59, %v4792_v49  ;;  %v4598_v33 = vld [vmem:[%s5473_s8 + $0x1b2] sm:$0xff] }
 0x22d   : > { %v6280_v49 = vld [vmem:[%s5473_s8 + $0x1d0] sm:$0xff] }
 0x22e   : > { %v1267_v5 = vpop.f32.mrf.mxu2  ;;  %v901_v32 = vpop.f32.mrf.mxu1 }
 0x22f   : > { %v1699_v24 = vpop.f32.mrf.mxu3  ;;  %v1376_v42 = vadd.f32 %v1267_v5, %v900_v28  ;;  %v902_v2 = vadd.f32 %v901_v32, %v7227_v14  ;;  %v4599_v14 = vld [vmem:[%s5473_s8 + $0x1ba] sm:$0xff] }
 0x231   : > { %v1808_v9 = vadd.f32 %v1699_v24, %v1376_v42  ;;  %v2133_v52 = vpop.f32.mrf.mxu0 }
 0x233   : > { %v6255_v58 = vadd.f32 %v2131_v54, %v1808_v9 }
 0x236   : > { %v1269_v43 = vpop.f32.mrf.mxu2  ;;  %v904_v29 = vpop.f32.mrf.mxu1 }
 0x237   : > { %v1701_v48 = vpop.f32.mrf.mxu3  ;;  %v1377_v11 = vadd.f32 %v1269_v43, %v902_v2  ;;  %v905_v63 = vadd.f32 %v904_v29, %v7228_v51  ;;  %v4696_v2 = vld [vmem:[%s5473_s8 + $0x1c8] sm:$0xff]  ;;  %v330_v29 = vpack.c.bf16 %v4694_v61, %v6240_v41  ;;  %v7230_v61 = vld [vmem:[#allocation17_spill] sm:$0xff] }
 0x238   : > { %v4794_v43 = vld [vmem:[%s5473_s8 + $0x1c9] sm:$0xff] }
 0x239   : > { %v1809_v40 = vadd.f32 %v1701_v48, %v1377_v11  ;;  %v2136_v54 = vpop.f32.mrf.mxu0  ;;  %4537 = vmatmul.msk.bf16.gmra.mxu1 %vm436_vm1, %v329_v0  ;;  %v4795_v48 = vld [vmem:[%s5473_s8 + $0x1d1] sm:$0xff] }
 0x23b   : > { %4635 = vmatmul.msk.bf16.gmra.mxu2 %vm436_vm1, %v1066_v22  ;;  %v6270_v36 = vadd.f32 %v2133_v52, %v1809_v40  ;;  %v7229_v52 = vld [vmem:[#allocation15_spill] sm:$0xff]  ;;  %v1499_v40 = vpack.c.bf16 %v6280_v49, %v4696_v2 }
 0x23c   : > { %4733 = vmatmul.msk.bf16.gmra.mxu3 %vm436_vm1, %v1498_v6  ;;  %4831 = vmatmul.msk.bf16.gmra.mxu0 %vm436_vm1, %v1930_v12  ;;  %v1067_v12 = vpack.c.bf16 %v4599_v14, %v4598_v33 }
 0x23e   : > { %v1272_v28 = vpop.f32.mrf.mxu2  ;;  %v906_v42 = vpop.f32.mrf.mxu1 }
 0x23f   : > { %v1704_v5 = vpop.f32.mrf.mxu3  ;;  %v1378_v24 = vadd.f32 %v1272_v28, %v905_v63  ;;  %v907_v59 = vadd.f32 %v906_v42, %v7229_v52  ;;  %v4600_v52 = vld [vmem:[%s5473_s8 + $0x1c2] sm:$0xff] }
 0x241   : > { %v1810_v32 = vadd.f32 %v1704_v5, %v1378_v24  ;;  %v2138_v9 = vpop.f32.mrf.mxu0 }
 0x243   : > { %v6275_v50 = vadd.f32 %v2136_v54, %v1810_v32  ;;  %v1931_v54 = vpack.c.bf16 %v4795_v48, %v4794_v43  ;;  %v4601_v43 = vld [vmem:[%s5473_s8 + $0x1ca] sm:$0xff]  ;;  %v4698_v48 = vld [vmem:[%s5473_s8 + $0x1d8] sm:$0xff] }
 0x246   : > { %v1274_v0 = vpop.f32.mrf.mxu2  ;;  %v909_v6 = vpop.f32.mrf.mxu1 }
 0x247   : > { %v1706_v11 = vpop.f32.mrf.mxu3  ;;  %v1379_v22 = vadd.f32 %v1274_v0, %v907_v59  ;;  %v910_v28 = vadd.f32 %v909_v6, %v7230_v61  ;;  %v6300_v0 = vld [vmem:[%s5473_s8 + $0x1e0] sm:$0xff]  ;;  %v331_v6 = vpack.c.bf16 %v4696_v2, %v6260_v44  ;;  %v1068_v61 = vpack.c.bf16 %v4601_v43, %v4600_v52 }
 0x248   : > { %v7234_v2 = vld [vmem:[#allocation21_spill] sm:$0xff] }
 0x249   : > { %v1811_v51 = vadd.f32 %v1706_v11, %v1379_v22  ;;  %v2141_v63 = vpop.f32.mrf.mxu0  ;;  %4538 = vmatmul.msk.bf16.gmra.mxu1 %vm436_vm1, %v330_v29  ;;  %v4796_v29 = vld [vmem:[%s5473_s8 + $0x1d9] sm:$0xff]  ;;  %v4797_v22 = vld [vmem:[%s5473_s8 + $0x1e1] sm:$0xff] }
 0x24b   : > { %4636 = vmatmul.msk.bf16.gmra.mxu2 %vm436_vm1, %v1067_v12  ;;  %v6290_v41 = vadd.f32 %v2138_v9, %v1811_v51  ;;  %v7232_v9 = vld [vmem:[#allocation19_spill] sm:$0xff] }
 0x24c   : > { %4734 = vmatmul.msk.bf16.gmra.mxu3 %vm436_vm1, %v1499_v40  ;;  %4832 = vmatmul.msk.bf16.gmra.mxu0 %vm436_vm1, %v1931_v54 }
 0x24e   : > { %v1277_v5 = vpop.f32.mrf.mxu2  ;;  %v911_v32 = vpop.f32.mrf.mxu1 }
 0x24f   : > { %v1709_v24 = vpop.f32.mrf.mxu3  ;;  %v1380_v42 = vadd.f32 %v1277_v5, %v910_v28  ;;  %v912_v11 = vadd.f32 %v911_v32, %v7232_v9  ;;  %v1500_v28 = vpack.c.bf16 %v6300_v0, %v4698_v48 }
 0x251   : > { %v1812_v33 = vadd.f32 %v1709_v24, %v1380_v42  ;;  %v2143_v14 = vpop.f32.mrf.mxu0 }
 0x253   : > { %v6295_v59 = vadd.f32 %v2141_v63, %v1812_v33  ;;  %v1932_v63 = vpack.c.bf16 %v4797_v22, %v4796_v29  ;;  %v4602_v29 = vld [vmem:[%s5473_s8 + $0x1d2] sm:$0xff] }
 0x255   : > { %7231 = vst [vmem:[#allocation35_spill] sm:$0xff] %v6295_v59 }
 0x256   : > { %v1279_v12 = vpop.f32.mrf.mxu2  ;;  %v914_v51 = vpop.f32.mrf.mxu1 }
 0x257   : > { %v1711_v40 = vpop.f32.mrf.mxu3  ;;  %v1381_v54 = vadd.f32 %v1279_v12, %v912_v11  ;;  %v915_v42 = vadd.f32 %v914_v51, %v7234_v2  ;;  %v4603_v12 = vld [vmem:[%s5473_s8 + $0x1da] sm:$0xff]  ;;  %v332_v51 = vpack.c.bf16 %v4698_v48, %v6280_v49 }
 0x258   : > { %v7238_v48 = vld [vmem:[#allocation25_spill] sm:$0xff] }
 0x259   : > { %v1813_v5 = vadd.f32 %v1711_v40, %v1381_v54  ;;  %v2146_v24 = vpop.f32.mrf.mxu0  ;;  %4539 = vmatmul.msk.bf16.gmra.mxu1 %vm436_vm1, %v331_v6  ;;  %v4700_v40 = vld [vmem:[%s5473_s8 + $0x1e8] sm:$0xff]  ;;  %v6320_v6 = vld [vmem:[%s5473_s8 + $0x1f0] sm:$0xff] }
 0x25b   : > { %4637 = vmatmul.msk.bf16.gmra.mxu2 %vm436_vm1, %v1068_v61  ;;  %v6310_v44 = vadd.f32 %v2143_v14, %v1813_v5  ;;  %v7236_v14 = vld [vmem:[#allocation23_spill] sm:$0xff] }
 0x25c   : > { %4735 = vmatmul.msk.bf16.gmra.mxu3 %vm436_vm1, %v1500_v28  ;;  %4833 = vmatmul.msk.bf16.gmra.mxu0 %vm436_vm1, %v1932_v63  ;;  %v4798_v61 = vld [vmem:[%s5473_s8 + $0x1e9] sm:$0xff]  ;;  %v4799_v28 = vld [vmem:[%s5473_s8 + $0x1f1] sm:$0xff] }
 0x25d   : > { %7233 = vst [vmem:[#allocation5_spill] sm:$0xff] %v6310_v44 }
 0x25e   : > { %v1282_v32 = vpop.f32.mrf.mxu2  ;;  %v916_v43 = vpop.f32.mrf.mxu1 }
 0x25f   : > { %v1714_v33 = vpop.f32.mrf.mxu3  ;;  %v1382_v52 = vadd.f32 %v1282_v32, %v915_v42  ;;  %v917_v54 = vadd.f32 %v916_v43, %v7236_v14  ;;  %v1069_v32 = vpack.c.bf16 %v4603_v12, %v4602_v29 }
 0x261   : > { %v1814_v9 = vadd.f32 %v1714_v33, %v1382_v52  ;;  %v2148_v11 = vpop.f32.mrf.mxu0  ;;  %v1501_v33 = vpack.c.bf16 %v6320_v6, %v4700_v40 }
 0x263   : > { %v6315_v22 = vadd.f32 %v2146_v24, %v1814_v9  ;;  %v1933_v24 = vpack.c.bf16 %v4799_v28, %v4798_v61 }
 0x265   : > { %7235 = vst [vmem:[#allocation7_spill] sm:$0xff] %v6315_v22 }
 0x266   : > { %v1284_v63 = vpop.f32.mrf.mxu2  ;;  %v919_v42 = vpop.f32.mrf.mxu1 }
 0x267   : > { %v1716_v5 = vpop.f32.mrf.mxu3  ;;  %v1383_v2 = vadd.f32 %v1284_v63, %v917_v54  ;;  %v920_v43 = vadd.f32 %v919_v42, %v7238_v48  ;;  %v4604_v63 = vld [vmem:[%s5473_s8 + $0x1e2] sm:$0xff]  ;;  %v333_v42 = vpack.c.bf16 %v4700_v40, %v6300_v0 }
 0x268   : > { %v7242_v0 = vld [vmem:[#allocation29_spill] sm:$0xff] }
 0x269   : > { %v1815_v52 = vadd.f32 %v1716_v5, %v1383_v2  ;;  %v2151_v9 = vpop.f32.mrf.mxu0  ;;  %4540 = vmatmul.msk.bf16.gmra.mxu1 %vm436_vm1, %v332_v51  ;;  %v4605_v51 = vld [vmem:[%s5473_s8 + $0x1ea] sm:$0xff]  ;;  %v4702_v2 = vld [vmem:[%s5473_s8 + $0x1f8] sm:$0xff] }
 0x26b   : > { %4638 = vmatmul.msk.bf16.gmra.mxu2 %vm436_vm1, %v1069_v32  ;;  %v6330_v49 = vadd.f32 %v2148_v11, %v1815_v52  ;;  %v4703_v32 = vld [vmem:[%s5473_s8 + $0x200] sm:$0xff] }
 0x26c   : > { %4736 = vmatmul.msk.bf16.gmra.mxu3 %vm436_vm1, %v1501_v33  ;;  %4834 = vmatmul.msk.bf16.gmra.mxu0 %vm436_vm1, %v1933_v24  ;;  %v7240_v33 = vld [vmem:[#allocation27_spill] sm:$0xff]  ;;  %v4800_v52 = vld [vmem:[%s5473_s8 + $0x1f9] sm:$0xff] }
 0x26d   : > { %7237 = vst [vmem:[#allocation9_spill] sm:$0xff] %v6330_v49  ;;  %v4801_v49 = vld [vmem:[%s5473_s8 + $0x201] sm:$0xff] }
 0x26e   : > { %v1287_v29 = vpop.f32.mrf.mxu2  ;;  %v921_v54 = vpop.f32.mrf.mxu1 }
 0x26f   : > { %v1719_v12 = vpop.f32.mrf.mxu3  ;;  %v1384_v14 = vadd.f32 %v1287_v29, %v920_v43  ;;  %v922_v11 = vadd.f32 %v921_v54, %v7240_v33  ;;  %v1070_v43 = vpack.c.bf16 %v4605_v51, %v4604_v63  ;;  %v1502_v29 = vpack.c.bf16 %v4703_v32, %v4702_v2  ;;  %v4606_v33 = vld [vmem:[%s5473_s8 + $0x1f2] sm:$0xff] }
 0x271   : > { %v1816_v61 = vadd.f32 %v1719_v12, %v1384_v14  ;;  %v2153_v28 = vpop.f32.mrf.mxu0  ;;  %v1934_v12 = vpack.c.bf16 %v4801_v49, %v4800_v52  ;;  %v4607_v52 = vld [vmem:[%s5473_s8 + $0x1fa] sm:$0xff] }
 0x273   : > { %v6335_v5 = vadd.f32 %v2151_v9, %v1816_v61 }
 0x275   : > { %7239 = vst [vmem:[#allocation11_spill] sm:$0xff] %v6335_v5 }
 0x276   : > { %v1289_v22 = vpop.f32.mrf.mxu2  ;;  %v924_v44 = vpop.f32.mrf.mxu1 }
 0x277   : > { %v1721_v24 = vpop.f32.mrf.mxu3  ;;  %v1385_v48 = vadd.f32 %v1289_v22, %v922_v11  ;;  %v925_v22 = vadd.f32 %v924_v44, %v7242_v0  ;;  %v334_v44 = vpack.c.bf16 %v4702_v2, %v6320_v6  ;;  %v7246_v2 = vld [vmem:[#allocation33_spill] sm:$0xff] }
 0x279   : > { %v1817_v14 = vadd.f32 %v1721_v24, %v1385_v48  ;;  %v2156_v9 = vpop.f32.mrf.mxu0  ;;  %4541 = vmatmul.msk.bf16.gmra.mxu1 %vm436_vm1, %v333_v42  ;;  %v4704_v24 = vld [vmem:[%s5473_s8 + $0x208] sm:$0xff]  ;;  %v4705_v42 = vld [vmem:[%s5473_s8 + $0x210] sm:$0xff] }
 0x27a   : > { %v7244_v48 = vld [vmem:[#allocation31_spill] sm:$0xff] }
 0x27b   : > { %4639 = vmatmul.msk.bf16.gmra.mxu2 %vm436_vm1, %v1070_v43  ;;  %v6347_v54 = vadd.f32 %v2153_v28, %v1817_v14  ;;  %v4802_v43 = vld [vmem:[%s5473_s8 + $0x209] sm:$0xff] }
 0x27c   : > { %4737 = vmatmul.msk.bf16.gmra.mxu3 %vm436_vm1, %v1502_v29  ;;  %4835 = vmatmul.msk.bf16.gmra.mxu0 %vm436_vm1, %v1934_v12  ;;  %v4803_v29 = vld [vmem:[%s5473_s8 + $0x211] sm:$0xff] }
 0x27d   : > { %7241 = vst [vmem:[#allocation13_spill] sm:$0xff] %v6347_v54 }
 0x27e   : > { %v1292_v40 = vpop.f32.mrf.mxu2  ;;  %v926_v63 = vpop.f32.mrf.mxu1 }
 0x27f   : > { %v1724_v49 = vpop.f32.mrf.mxu3  ;;  %v1386_v61 = vadd.f32 %v1292_v40, %v925_v22  ;;  %v927_v28 = vadd.f32 %v926_v63, %v7244_v48  ;;  %v1071_v22 = vpack.c.bf16 %v4607_v52, %v4606_v33  ;;  %v1503_v40 = vpack.c.bf16 %v4705_v42, %v4704_v24 }
 0x281   : > { %v1818_v51 = vadd.f32 %v1724_v49, %v1386_v61  ;;  %v2158_v32 = vpop.f32.mrf.mxu0  ;;  %v1935_v49 = vpack.c.bf16 %v4803_v29, %v4802_v43  ;;  %v4839_v43 = vld [vmem:[%s5473_s8 + $0x22] sm:$0xff]  ;;  %v4936_v29 = vld [vmem:[%s5473_s8 + $0x30] sm:$0xff] }
 0x283   : > { %v6352_v11 = vadd.f32 %v2156_v9, %v1818_v51 }
 0x285   : > { %7243 = vst [vmem:[#allocation15_spill] sm:$0xff] %v6352_v11 }
 0x286   : > { %v1294_v14 = vpop.f32.mrf.mxu2  ;;  %v929_v54 = vpop.f32.mrf.mxu1 }
 0x287   : > { %v1726_v12 = vpop.f32.mrf.mxu3  ;;  %v1387_v0 = vadd.f32 %v1294_v14, %v927_v28  ;;  %v930_v63 = vadd.f32 %v929_v54, %v7246_v2  ;;  %v4838_v28 = vld [vmem:[%s5473_s8 + $0x1a] sm:$0xff] }
 0x288   : > { %v2336_v2 = vpack.c.bf16 %v4839_v43, %v4838_v28  ;;  %v7250_v28 = vld [vmem:[#allocation6_spill] sm:$0xff] }
 0x289   : > { %v1819_v9 = vadd.f32 %v1726_v12, %v1387_v0  ;;  %v2161_v61 = vpop.f32.mrf.mxu0  ;;  %4542 = vmatmul.msk.bf16.gmra.mxu1 %vm436_vm1, %v334_v44  ;;  %v4937_v12 = vld [vmem:[%s5473_s8 + $0x38] sm:$0xff] }
 0x28a   : > { %v5035_v44 = vld [vmem:[%s5473_s8 + $0x39] sm:$0xff] }
 0x28b   : > { %4640 = vmatmul.msk.bf16.gmra.mxu2 %vm436_vm1, %v1071_v22  ;;  %v6364_v6 = vadd.f32 %v2158_v32, %v1819_v9  ;;  %v5034_v32 = vld [vmem:[%s5473_s8 + $0x31] sm:$0xff] }
 0x28c   : > { %4738 = vmatmul.msk.bf16.gmra.mxu3 %vm436_vm1, %v1503_v40  ;;  %4836 = vmatmul.msk.bf16.gmra.mxu0 %vm436_vm1, %v1935_v49  ;;  %v7248_v0 = vld [vmem:[#allocation36_spill] sm:$0xff] }
 0x28d   : > { %7245 = vst [vmem:[#allocation17_spill] sm:$0xff] %v6364_v6  ;;  %v5132_v40 = vld [vmem:[%s5473_s8 + $0x32] sm:$0xff]  ;;  %v6379_v49 = vld [vmem:[%s5473_s8 + $0x3a] sm:$0xff] }
 0x28e   : > { %v1297_v51 = vpop.f32.mrf.mxu2  ;;  %v931_v24 = vpop.f32.mrf.mxu1  ;;  %v3632_v6 = vpack.c.bf16 %v6379_v49, %v5132_v40 }
 0x28f   : > { %v1729_v33 = vpop.f32.mrf.mxu3  ;;  %v1388_v52 = vadd.f32 %v1297_v51, %v930_v63  ;;  %v932_v22 = vadd.f32 %v931_v24, %v7248_v0 }
 0x291   : > { %v1820_v42 = vadd.f32 %v1729_v33, %v1388_v52  ;;  %v2163_v48 = vpop.f32.mrf.mxu0  ;;  %v2768_v33 = vpack.c.bf16 %v4937_v12, %v4936_v29  ;;  %v3200_v52 = vpack.c.bf16 %v5035_v44, %v5034_v32 }
 0x293   : > { %v6371_v14 = vadd.f32 %v2161_v61, %v1820_v42 }
 0x295   : > { %7247 = vst [vmem:[#allocation19_spill] sm:$0xff] %v6371_v14 }
 0x296   : > { %v1299_v54 = vpop.f32.mrf.mxu2  ;;  %v934_v51 = vpop.f32.mrf.mxu1 }
 0x297   : > { %v1731_v9 = vpop.f32.mrf.mxu3  ;;  %v1389_v63 = vadd.f32 %v1299_v54, %v932_v22  ;;  %v935_v43 = vadd.f32 %v934_v51, %v7250_v28  ;;  %v4840_v54 = vld [vmem:[%s5473_s8 + $0x2a] sm:$0xff] }
 0x298   : > { %v2337_v28 = vpack.c.bf16 %v5132_v40, %v4840_v54 }
 0x299   : > { %v1821_v61 = vadd.f32 %v1731_v9, %v1389_v63  ;;  %v2166_v42 = vpop.f32.mrf.mxu0  ;;  %4903 = vmatmul.msk.bf16.vlgmr.msra.gmra.mxu1 %vm436_vm1, %v2336_v2  ;;  %v4938_v9 = vld [vmem:[%s5473_s8 + $0x40] sm:$0xff]  ;;  %v4939_v63 = vld [vmem:[%s5473_s8 + $0x48] sm:$0xff] }
 0x29b   : > { %5001 = vmatmul.msk.bf16.vlgmr.msra.gmra.mxu2 %vm436_vm1, %v2768_v33  ;;  %v6385_v24 = vadd.f32 %v2163_v48, %v1821_v61  ;;  %v5036_v33 = vld [vmem:[%s5473_s8 + $0x41] sm:$0xff]  ;;  %v5037_v48 = vld [vmem:[%s5473_s8 + $0x49] sm:$0xff] }
 0x29c   : > { %5099 = vmatmul.msk.bf16.vlgmr.msra.gmra.mxu3 %vm436_vm1, %v3200_v52  ;;  %5197 = vmatmul.msk.bf16.vlgmr.msra.gmra.mxu0 %vm436_vm1, %v3632_v6  ;;  %v7252_v52 = vld [vmem:[#allocation8_spill] sm:$0xff]  ;;  %v6399_v6 = vld [vmem:[%s5473_s8 + $0x4a] sm:$0xff] }
 0x29d   : > { %7249 = vst [vmem:[#allocation21_spill] sm:$0xff] %v6385_v24  ;;  %v5134_v24 = vld [vmem:[%s5473_s8 + $0x42] sm:$0xff] }
 0x29e   : > { %v1302_v29 = vpop.f32.mrf.mxu2  ;;  %v936_v44 = vpop.f32.mrf.mxu1 }
 0x29f   : > { %v1734_v12 = vpop.f32.mrf.mxu3  ;;  %v1390_v32 = vadd.f32 %v1302_v29, %v935_v43  ;;  %v937_v61 = vadd.f32 %v936_v44, %v7252_v52  ;;  %v2769_v29 = vpack.c.bf16 %v4939_v63, %v4938_v9  ;;  %v4940_v52 = vld [vmem:[%s5473_s8 + $0x50] sm:$0xff] }
 0x2a1   : > { %v1822_v0 = vadd.f32 %v1734_v12, %v1390_v32  ;;  %v2168_v22 = vpop.f32.mrf.mxu0  ;;  %v3201_v12 = vpack.c.bf16 %v5037_v48, %v5036_v33  ;;  %v3633_v32 = vpack.c.bf16 %v6399_v6, %v5134_v24 }
 0x2a3   : > { %v6391_v2 = vadd.f32 %v2166_v42, %v1822_v0 }
 0x2a5   : > { %7251 = vst [vmem:[#allocation23_spill] sm:$0xff] %v6391_v2 }
 0x2a6   : > { %v1304_v14 = vpop.f32.mrf.mxu2  ;;  %v939_v43 = vpop.f32.mrf.mxu1 }
 0x2a7   : > { %v1736_v51 = vpop.f32.mrf.mxu3  ;;  %v1391_v11 = vadd.f32 %v1304_v14, %v937_v61  ;;  %v7254_v14 = vld [vmem:[#allocation10_spill] sm:$0xff] }
 0x2a8   : > { %v940_v44 = vadd.f32 %v939_v43, %v7254_v14  ;;  %v2338_v43 = vpack.c.bf16 %v5134_v24, %v6379_v49  ;;  %v7258_v24 = vld [vmem:[#allocation14_spill] sm:$0xff] }
 0x2a9   : > { %v1823_v42 = vadd.f32 %v1736_v51, %v1391_v11  ;;  %v2171_v0 = vpop.f32.mrf.mxu0  ;;  %4904 = vmatmul.msk.bf16.gmra.mxu1 %vm436_vm1, %v2337_v28  ;;  %v4941_v51 = vld [vmem:[%s5473_s8 + $0x58] sm:$0xff] }
 0x2aa   : > { %v5038_v28 = vld [vmem:[%s5473_s8 + $0x51] sm:$0xff] }
 0x2ab   : > { %5002 = vmatmul.msk.bf16.gmra.mxu2 %vm436_vm1, %v2769_v29  ;;  %v6405_v40 = vadd.f32 %v2168_v22, %v1823_v42  ;;  %v5039_v29 = vld [vmem:[%s5473_s8 + $0x59] sm:$0xff] }
 0x2ac   : > { %5100 = vmatmul.msk.bf16.gmra.mxu3 %vm436_vm1, %v3201_v12  ;;  %5198 = vmatmul.msk.bf16.gmra.mxu0 %vm436_vm1, %v3633_v32  ;;  %v7256_v12 = vld [vmem:[#allocation12_spill] sm:$0xff] }
 0x2ad   : > { %7253 = vst [vmem:[#allocation25_spill] sm:$0xff] %v6405_v40  ;;  %v5136_v42 = vld [vmem:[%s5473_s8 + $0x52] sm:$0xff]  ;;  %v6418_v40 = vld [vmem:[%s5473_s8 + $0x5a] sm:$0xff] }
 0x2ae   : > { %v1307_v54 = vpop.f32.mrf.mxu2  ;;  %v941_v63 = vpop.f32.mrf.mxu1 }
 0x2af   : > { %v1739_v11 = vpop.f32.mrf.mxu3  ;;  %v1392_v9 = vadd.f32 %v1307_v54, %v940_v44  ;;  %v942_v22 = vadd.f32 %v941_v63, %v7256_v12  ;;  %v2770_v54 = vpack.c.bf16 %v4941_v51, %v4940_v52 }
 0x2b1   : > { %v1824_v33 = vadd.f32 %v1739_v11, %v1392_v9  ;;  %v2173_v48 = vpop.f32.mrf.mxu0  ;;  %v3202_v11 = vpack.c.bf16 %v5039_v29, %v5038_v28 }
 0x2b3   : > { %v6410_v61 = vadd.f32 %v2171_v0, %v1824_v33  ;;  %v3634_v0 = vpack.c.bf16 %v6418_v40, %v5136_v42 }
 0x2b5   : > { %7255 = vst [vmem:[#allocation27_spill] sm:$0xff] %v6410_v61 }
 0x2b6   : > { %v1309_v32 = vpop.f32.mrf.mxu2  ;;  %v944_v44 = vpop.f32.mrf.mxu1 }
 0x2b7   : > { %v1741_v2 = vpop.f32.mrf.mxu3  ;;  %v1393_v14 = vadd.f32 %v1309_v32, %v942_v22  ;;  %v945_v63 = vadd.f32 %v944_v44, %v7258_v24  ;;  %v4942_v22 = vld [vmem:[%s5473_s8 + $0x60] sm:$0xff]  ;;  %v2339_v44 = vpack.c.bf16 %v5136_v42, %v6399_v6  ;;  %v7262_v42 = vld [vmem:[#allocation18_spill] sm:$0xff] }
 0x2b9   : > { %v1825_v9 = vadd.f32 %v1741_v2, %v1393_v14  ;;  %v2176_v33 = vpop.f32.mrf.mxu0  ;;  %4905 = vmatmul.msk.bf16.gmra.mxu1 %vm436_vm1, %v2338_v43  ;;  %v4943_v43 = vld [vmem:[%s5473_s8 + $0x68] sm:$0xff] }
 0x2ba   : > { %v5040_v14 = vld [vmem:[%s5473_s8 + $0x61] sm:$0xff] }
 0x2bb   : > { %5003 = vmatmul.msk.bf16.gmra.mxu2 %vm436_vm1, %v2770_v54  ;;  %v6425_v49 = vadd.f32 %v2173_v48, %v1825_v9  ;;  %v5041_v54 = vld [vmem:[%s5473_s8 + $0x69] sm:$0xff] }
 0x2bc   : > { %5101 = vmatmul.msk.bf16.gmra.mxu3 %vm436_vm1, %v3202_v11  ;;  %5199 = vmatmul.msk.bf16.gmra.mxu0 %vm436_vm1, %v3634_v0  ;;  %v7260_v11 = vld [vmem:[#allocation16_spill] sm:$0xff]  ;;  %v5138_v9 = vld [vmem:[%s5473_s8 + $0x62] sm:$0xff] }
 0x2bd   : > { %7257 = vst [vmem:[#allocation29_spill] sm:$0xff] %v6425_v49  ;;  %v6438_v49 = vld [vmem:[%s5473_s8 + $0x6a] sm:$0xff] }
 0x2be   : > { %v1312_v52 = vpop.f32.mrf.mxu2  ;;  %v946_v28 = vpop.f32.mrf.mxu1 }
 0x2bf   : > { %v1744_v2 = vpop.f32.mrf.mxu3  ;;  %v1394_v51 = vadd.f32 %v1312_v52, %v945_v63  ;;  %v947_v48 = vadd.f32 %v946_v28, %v7260_v11  ;;  %v2771_v52 = vpack.c.bf16 %v4943_v43, %v4942_v22 }
 0x2c1   : > { %v1826_v29 = vadd.f32 %v1744_v2, %v1394_v51  ;;  %v2178_v12 = vpop.f32.mrf.mxu0  ;;  %v3203_v2 = vpack.c.bf16 %v5041_v54, %v5040_v14 }
 0x2c3   : > { %v6430_v32 = vadd.f32 %v2176_v33, %v1826_v29  ;;  %v3635_v33 = vpack.c.bf16 %v6438_v49, %v5138_v9 }
 0x2c5   : > { %7259 = vst [vmem:[#allocation31_spill] sm:$0xff] %v6430_v32 }
 0x2c6   : > { %v1314_v0 = vpop.f32.mrf.mxu2  ;;  %v949_v63 = vpop.f32.mrf.mxu1 }
 0x2c7   : > { %v1746_v61 = vpop.f32.mrf.mxu3  ;;  %v1395_v24 = vadd.f32 %v1314_v0, %v947_v48  ;;  %v950_v28 = vadd.f32 %v949_v63, %v7262_v42  ;;  %v4944_v48 = vld [vmem:[%s5473_s8 + $0x70] sm:$0xff]  ;;  %v2340_v63 = vpack.c.bf16 %v5138_v9, %v6418_v40  ;;  %v7266_v9 = vld [vmem:[#allocation22_spill] sm:$0xff] }
 0x2c9   : > { %v1827_v51 = vadd.f32 %v1746_v61, %v1395_v24  ;;  %v2181_v29 = vpop.f32.mrf.mxu0  ;;  %4906 = vmatmul.msk.bf16.gmra.mxu1 %vm436_vm1, %v2339_v44  ;;  %v4945_v44 = vld [vmem:[%s5473_s8 + $0x78] sm:$0xff] }
 0x2ca   : > { %v5042_v24 = vld [vmem:[%s5473_s8 + $0x71] sm:$0xff] }
 0x2cb   : > { %5004 = vmatmul.msk.bf16.gmra.mxu2 %vm436_vm1, %v2771_v52  ;;  %v6445_v6 = vadd.f32 %v2178_v12, %v1827_v51  ;;  %v5043_v52 = vld [vmem:[%s5473_s8 + $0x79] sm:$0xff] }
 0x2cc   : > { %5102 = vmatmul.msk.bf16.gmra.mxu3 %vm436_vm1, %v3203_v2  ;;  %5200 = vmatmul.msk.bf16.gmra.mxu0 %vm436_vm1, %v3635_v33  ;;  %v7264_v2 = vld [vmem:[#allocation20_spill] sm:$0xff] }
 0x2cd   : > { %7261 = vst [vmem:[#allocation33_spill] sm:$0xff] %v6445_v6  ;;  %v5140_v51 = vld [vmem:[%s5473_s8 + $0x72] sm:$0xff]  ;;  %v6458_v6 = vld [vmem:[%s5473_s8 + $0x7a] sm:$0xff] }
 0x2ce   : > { %v1317_v22 = vpop.f32.mrf.mxu2  ;;  %v951_v14 = vpop.f32.mrf.mxu1 }
 0x2cf   : > { %v1749_v61 = vpop.f32.mrf.mxu3  ;;  %v1396_v43 = vadd.f32 %v1317_v22, %v950_v28  ;;  %v952_v12 = vadd.f32 %v951_v14, %v7264_v2  ;;  %v2772_v22 = vpack.c.bf16 %v4945_v44, %v4944_v48 }
 0x2d1   : > { %v1828_v54 = vadd.f32 %v1749_v61, %v1396_v43  ;;  %v2183_v11 = vpop.f32.mrf.mxu0  ;;  %v3204_v61 = vpack.c.bf16 %v5043_v52, %v5042_v24 }
 0x2d3   : > { %v6450_v0 = vadd.f32 %v2181_v29, %v1828_v54  ;;  %v3636_v29 = vpack.c.bf16 %v6458_v6, %v5140_v51 }
 0x2d5   : > { %7263 = vst [vmem:[#allocation36_spill] sm:$0xff] %v6450_v0 }
 0x2d6   : > { %v1319_v33 = vpop.f32.mrf.mxu2  ;;  %v954_v28 = vpop.f32.mrf.mxu1 }
 0x2d7   : > { %v1751_v32 = vpop.f32.mrf.mxu3  ;;  %v1397_v42 = vadd.f32 %v1319_v33, %v952_v12  ;;  %v955_v14 = vadd.f32 %v954_v28, %v7266_v9  ;;  %v4946_v12 = vld [vmem:[%s5473_s8 + $0x80] sm:$0xff]  ;;  %v2341_v28 = vpack.c.bf16 %v5140_v51, %v6438_v49  ;;  %v7270_v51 = vld [vmem:[#allocation26_spill] sm:$0xff] }
 0x2d9   : > { %v1829_v43 = vadd.f32 %v1751_v32, %v1397_v42  ;;  %v2186_v54 = vpop.f32.mrf.mxu0  ;;  %4907 = vmatmul.msk.bf16.gmra.mxu1 %vm436_vm1, %v2340_v63  ;;  %v4947_v63 = vld [vmem:[%s5473_s8 + $0x88] sm:$0xff] }
 0x2da   : > { %v5044_v42 = vld [vmem:[%s5473_s8 + $0x81] sm:$0xff] }
 0x2db   : > { %5005 = vmatmul.msk.bf16.gmra.mxu2 %vm436_vm1, %v2772_v22  ;;  %v6465_v40 = vadd.f32 %v2183_v11, %v1829_v43  ;;  %v5045_v22 = vld [vmem:[%s5473_s8 + $0x89] sm:$0xff] }
 0x2dc   : > { %5103 = vmatmul.msk.bf16.gmra.mxu3 %vm436_vm1, %v3204_v61  ;;  %5201 = vmatmul.msk.bf16.gmra.mxu0 %vm436_vm1, %v3636_v29  ;;  %v7268_v61 = vld [vmem:[#allocation24_spill] sm:$0xff]  ;;  %v5142_v43 = vld [vmem:[%s5473_s8 + $0x82] sm:$0xff] }
 0x2dd   : > { %7265 = vst [vmem:[#allocation6_spill] sm:$0xff] %v6465_v40  ;;  %v6478_v40 = vld [vmem:[%s5473_s8 + $0x8a] sm:$0xff] }
 0x2de   : > { %v1322_v48 = vpop.f32.mrf.mxu2  ;;  %v956_v24 = vpop.f32.mrf.mxu1 }
 0x2df   : > { %v1754_v32 = vpop.f32.mrf.mxu3  ;;  %v1398_v44 = vadd.f32 %v1322_v48, %v955_v14  ;;  %v957_v11 = vadd.f32 %v956_v24, %v7268_v61  ;;  %v2773_v48 = vpack.c.bf16 %v4947_v63, %v4946_v12 }
 0x2e1   : > { %v1830_v52 = vadd.f32 %v1754_v32, %v1398_v44  ;;  %v2188_v2 = vpop.f32.mrf.mxu0  ;;  %v3205_v32 = vpack.c.bf16 %v5045_v22, %v5044_v42 }
 0x2e3   : > { %v6470_v33 = vadd.f32 %v2186_v54, %v1830_v52  ;;  %v3637_v54 = vpack.c.bf16 %v6478_v40, %v5142_v43 }
 0x2e5   : > { %7267 = vst [vmem:[#allocation8_spill] sm:$0xff] %v6470_v33 }
 0x2e6   : > { %v1324_v29 = vpop.f32.mrf.mxu2  ;;  %v959_v14 = vpop.f32.mrf.mxu1 }
 0x2e7   : > { %v1756_v0 = vpop.f32.mrf.mxu3  ;;  %v1399_v9 = vadd.f32 %v1324_v29, %v957_v11  ;;  %v960_v24 = vadd.f32 %v959_v14, %v7270_v51  ;;  %v4948_v11 = vld [vmem:[%s5473_s8 + $0x90] sm:$0xff]  ;;  %v2342_v14 = vpack.c.bf16 %v5142_v43, %v6458_v6  ;;  %v7274_v43 = vld [vmem:[#allocation30_spill] sm:$0xff] }
 0x2e9   : > { %v1831_v44 = vadd.f32 %v1756_v0, %v1399_v9  ;;  %v2191_v52 = vpop.f32.mrf.mxu0  ;;  %4908 = vmatmul.msk.bf16.gmra.mxu1 %vm436_vm1, %v2341_v28  ;;  %v4949_v28 = vld [vmem:[%s5473_s8 + $0x98] sm:$0xff] }
 0x2ea   : > { %v5046_v9 = vld [vmem:[%s5473_s8 + $0x91] sm:$0xff] }
 0x2eb   : > { %5006 = vmatmul.msk.bf16.gmra.mxu2 %vm436_vm1, %v2773_v48  ;;  %v6485_v49 = vadd.f32 %v2188_v2, %v1831_v44  ;;  %v5047_v48 = vld [vmem:[%s5473_s8 + $0x99] sm:$0xff] }
 0x2ec   : > { %5104 = vmatmul.msk.bf16.gmra.mxu3 %vm436_vm1, %v3205_v32  ;;  %5202 = vmatmul.msk.bf16.gmra.mxu0 %vm436_vm1, %v3637_v54  ;;  %v7272_v32 = vld [vmem:[#allocation28_spill] sm:$0xff] }
 0x2ed   : > { %7269 = vst [vmem:[#allocation10_spill] sm:$0xff] %v6485_v49  ;;  %v5144_v44 = vld [vmem:[%s5473_s8 + $0x92] sm:$0xff]  ;;  %v6498_v49 = vld [vmem:[%s5473_s8 + $0x9a] sm:$0xff] }
 0x2ee   : > { %v1327_v12 = vpop.f32.mrf.mxu2  ;;  %v961_v42 = vpop.f32.mrf.mxu1 }
 0x2ef   : > { %v1759_v0 = vpop.f32.mrf.mxu3  ;;  %v1400_v63 = vadd.f32 %v1327_v12, %v960_v24  ;;  %v962_v2 = vadd.f32 %v961_v42, %v7272_v32  ;;  %v2774_v12 = vpack.c.bf16 %v4949_v28, %v4948_v11 }
 0x2f1   : > { %v1832_v22 = vadd.f32 %v1759_v0, %v1400_v63  ;;  %v2193_v61 = vpop.f32.mrf.mxu0  ;;  %v3206_v0 = vpack.c.bf16 %v5047_v48, %v5046_v9 }
 0x2f3   : > { %v6490_v29 = vadd.f32 %v2191_v52, %v1832_v22  ;;  %v3638_v52 = vpack.c.bf16 %v6498_v49, %v5144_v44 }
 0x2f5   : > { %7271 = vst [vmem:[#allocation12_spill] sm:$0xff] %v6490_v29 }
 0x2f6   : > { %v1329_v54 = vpop.f32.mrf.mxu2  ;;  %v964_v24 = vpop.f32.mrf.mxu1 }
 0x2f7   : > { %v1761_v33 = vpop.f32.mrf.mxu3  ;;  %v1401_v51 = vadd.f32 %v1329_v54, %v962_v2  ;;  %v965_v42 = vadd.f32 %v964_v24, %v7274_v43  ;;  %v4950_v2 = vld [vmem:[%s5473_s8 + $0xa0] sm:$0xff]  ;;  %v2343_v24 = vpack.c.bf16 %v5144_v44, %v6478_v40  ;;  %v7278_v44 = vld [vmem:[#allocation34_spill] sm:$0xff] }
 0x2f9   : > { %v1833_v63 = vadd.f32 %v1761_v33, %v1401_v51  ;;  %v2196_v22 = vpop.f32.mrf.mxu0  ;;  %4909 = vmatmul.msk.bf16.gmra.mxu1 %vm436_vm1, %v2342_v14  ;;  %v4951_v14 = vld [vmem:[%s5473_s8 + $0xa8] sm:$0xff] }
 0x2fa   : > { %v5048_v51 = vld [vmem:[%s5473_s8 + $0xa1] sm:$0xff] }
 0x2fb   : > { %5007 = vmatmul.msk.bf16.gmra.mxu2 %vm436_vm1, %v2774_v12  ;;  %v6505_v6 = vadd.f32 %v2193_v61, %v1833_v63  ;;  %v5049_v12 = vld [vmem:[%s5473_s8 + $0xa9] sm:$0xff] }
 0x2fc   : > { %5105 = vmatmul.msk.bf16.gmra.mxu3 %vm436_vm1, %v3206_v0  ;;  %5203 = vmatmul.msk.bf16.gmra.mxu0 %vm436_vm1, %v3638_v52  ;;  %v7276_v0 = vld [vmem:[#allocation32_spill] sm:$0xff]  ;;  %v5146_v63 = vld [vmem:[%s5473_s8 + $0xa2] sm:$0xff] }
 0x2fd   : > { %7273 = vst [vmem:[#allocation14_spill] sm:$0xff] %v6505_v6  ;;  %v6518_v6 = vld [vmem:[%s5473_s8 + $0xaa] sm:$0xff] }
 0x2fe   : > { %v1332_v11 = vpop.f32.mrf.mxu2  ;;  %v966_v9 = vpop.f32.mrf.mxu1 }
 0x2ff   : > { %v1764_v33 = vpop.f32.mrf.mxu3  ;;  %v1402_v28 = vadd.f32 %v1332_v11, %v965_v42  ;;  %v967_v61 = vadd.f32 %v966_v9, %v7276_v0  ;;  %v2775_v11 = vpack.c.bf16 %v4951_v14, %v4950_v2 }
 0x301   : > { %v1834_v48 = vadd.f32 %v1764_v33, %v1402_v28  ;;  %v2198_v32 = vpop.f32.mrf.mxu0  ;;  %v3207_v33 = vpack.c.bf16 %v5049_v12, %v5048_v51 }
 0x303   : > { %v6510_v54 = vadd.f32 %v2196_v22, %v1834_v48  ;;  %v3639_v22 = vpack.c.bf16 %v6518_v6, %v5146_v63 }
 0x305   : > { %7275 = vst [vmem:[#allocation16_spill] sm:$0xff] %v6510_v54 }
 0x306   : > { %v1334_v52 = vpop.f32.mrf.mxu2  ;;  %v969_v42 = vpop.f32.mrf.mxu1 }
 0x307   : > { %v1766_v29 = vpop.f32.mrf.mxu3  ;;  %v1403_v43 = vadd.f32 %v1334_v52, %v967_v61  ;;  %v970_v9 = vadd.f32 %v969_v42, %v7278_v44  ;;  %v4952_v61 = vld [vmem:[%s5473_s8 + $0xb0] sm:$0xff]  ;;  %v2344_v42 = vpack.c.bf16 %v5146_v63, %v6498_v49 }
 0x309   : > { %v1835_v28 = vadd.f32 %v1766_v29, %v1403_v43  ;;  %v2201_v48 = vpop.f32.mrf.mxu0  ;;  %4910 = vmatmul.msk.bf16.gmra.mxu1 %vm436_vm1, %v2343_v24  ;;  %v4953_v24 = vld [vmem:[%s5473_s8 + $0xb8] sm:$0xff] }
 0x30a   : > { %v5050_v43 = vld [vmem:[%s5473_s8 + $0xb1] sm:$0xff] }
 0x30b   : > { %5008 = vmatmul.msk.bf16.gmra.mxu2 %vm436_vm1, %v2775_v11  ;;  %v6525_v40 = vadd.f32 %v2198_v32, %v1835_v28  ;;  %v5051_v11 = vld [vmem:[%s5473_s8 + $0xb9] sm:$0xff] }
 0x30c   : > { %5106 = vmatmul.msk.bf16.gmra.mxu3 %vm436_vm1, %v3207_v33  ;;  %5204 = vmatmul.msk.bf16.gmra.mxu0 %vm436_vm1, %v3639_v22  ;;  %v7280_v33 = vld [vmem:[#allocation37_spill] sm:$0xff]  ;;  %v5148_v28 = vld [vmem:[%s5473_s8 + $0xb2] sm:$0xff] }
 0x30d   : > { %7277 = vst [vmem:[#allocation18_spill] sm:$0xff] %v6525_v40  ;;  %v6538_v40 = vld [vmem:[%s5473_s8 + $0xba] sm:$0xff] }
 0x30e   : > { %v1337_v2 = vpop.f32.mrf.mxu2  ;;  %v971_v51 = vpop.f32.mrf.mxu1 }
 0x30f   : > { %v1769_v29 = vpop.f32.mrf.mxu3  ;;  %v1404_v14 = vadd.f32 %v1337_v2, %v970_v9  ;;  %v972_v32 = vadd.f32 %v971_v51, %v7280_v33  ;;  %v2776_v2 = vpack.c.bf16 %v4953_v24, %v4952_v61 }
 0x311   : > { %v1836_v12 = vadd.f32 %v1769_v29, %v1404_v14  ;;  %v2203_v0 = vpop.f32.mrf.mxu0  ;;  %v3208_v29 = vpack.c.bf16 %v5051_v11, %v5050_v43  ;;  %v3640_v14 = vpack.c.bf16 %v6538_v40, %v5148_v28  ;;  %v6552_v11 = vld [vmem:[%s7185_s2] ss:$0 sm:$0xff] }
 0x313   : > { %v6530_v52 = vadd.f32 %v2201_v48, %v1836_v12 }
 0x315   : > { %7279 = vst [vmem:[#allocation20_spill] sm:$0xff] %v6530_v52 }
 0x316   : > { %v1339_v22 = vpop.f32.mrf.mxu2  ;;  %v2478_v9 = vpop.f32.mrf.mxu1 }
 0x317   : > { %v1771_v54 = vpop.f32.mrf.mxu3  ;;  %v1405_v44 = vadd.f32 %v1339_v22, %v972_v32  ;;  %v2638_v49 = vadd.f32 %v2478_v9, %v5916_v34  ;;  %v6558_v32 = vld [vmem:[%s7186_s3] ss:$0 sm:$0xff]  ;;  %v4955_v22 = vld [vmem:[%s5473_s8 + $0xc8] sm:$0xff] }
 0x318   : > { %v4954_v34 = vld [vmem:[%s5473_s8 + $0xc0] sm:$0xff] }
 0x319   : > { %v1837_v48 = vadd.f32 %v1771_v54, %v1405_v44  ;;  %v3774_v12 = vpop.f32.mrf.mxu0  ;;  %4911 = vmatmul.msk.bf16.gmra.mxu1 %vm436_vm1, %v2344_v42  ;;  %v5052_v42 = vld [vmem:[%s5473_s8 + $0xc1] sm:$0xff]  ;;  %v5053_v44 = vld [vmem:[%s5473_s8 + $0xc9] sm:$0xff] }
 0x31b   : > { %5009 = vmatmul.msk.bf16.gmra.mxu2 %vm436_vm1, %v2776_v2  ;;  %v6545_v51 = vadd.f32 %v2203_v0, %v1837_v48 }
 0x31c   : > { %5107 = vmatmul.msk.bf16.gmra.mxu3 %vm436_vm1, %v3208_v29  ;;  %5205 = vmatmul.msk.bf16.gmra.mxu0 %vm436_vm1, %v3640_v14  ;;  %v5150_v29 = vld [vmem:[%s5473_s8 + $0xc2] sm:$0xff]  ;;  %v6570_v14 = vld [vmem:[%s5473_s8 + $0xca] sm:$0xff] }
 0x31d   : > { %7281 = vst [vmem:[#allocation22_spill] sm:$0xff] %v6545_v51  ;;  %v3209_v51 = vpack.c.bf16 %v5053_v44, %v5052_v42  ;;  %v3641_v52 = vpack.c.bf16 %v6570_v14, %v5150_v29 }
 0x31e   : > { %v2910_v63 = vpop.f32.mrf.mxu2  ;;  %v2480_v24 = vpop.f32.mrf.mxu1 }
 0x31f   : > { %v3342_v54 = vpop.f32.mrf.mxu3  ;;  %v3070_v61 = vadd.f32 %v2910_v63, %v2638_v49  ;;  %v2639_v2 = vadd.f32 %v2480_v24, %v5930_v31  ;;  %v2345_v49 = vpack.c.bf16 %v5148_v28, %v6518_v6 }
 0x321   : > { %v3502_v43 = vadd.f32 %v3342_v54, %v3070_v61  ;;  %v3776_v0 = vpop.f32.mrf.mxu0 }
 0x323   : > { %v3934_v33 = vadd.f32 %v3774_v12, %v3502_v43  ;;  %v2777_v43 = vpack.c.bf16 %v4955_v22, %v4954_v34 }
 0x325   : > { %v4002_v9 = vmul.f32 %v6552_v11, %v3934_v33 }
 0x326   : > { %v2912_v48 = vpop.f32.mrf.mxu2  ;;  %v2483_v61 = vpop.f32.mrf.mxu1 }
 0x327   : > { %v3344_v12 = vpop.f32.mrf.mxu3  ;;  %v4070_v63 = vadd.f32 %v6558_v32, %v4002_v9  ;;  %v3071_v54 = vadd.f32 %v2912_v48, %v2639_v2  ;;  %v2640_v28 = vadd.f32 %v2483_v61, %v5935_v4  ;;  %v4956_v9 = vld [vmem:[%s5473_s8 + $0xd0] sm:$0xff]  ;;  %v5055_v48 = vld [vmem:[%s5473_s8 + $0xd9] sm:$0xff] }
 0x328   : > { %v5054_v2 = vld [vmem:[%s5473_s8 + $0xd1] sm:$0xff] }
 0x329   : > { %v4134_v5 = vmax.f32 %v4070_v63, 0.0  ;;  %v3503_v59 = vadd.f32 %v3344_v12, %v3071_v54  ;;  %v3779_v33 = vpop.f32.mrf.mxu0  ;;  %4912 = vmatmul.msk.bf16.gmra.mxu1 %vm436_vm1, %v2345_v49  ;;  %v5152_v49 = vld [vmem:[%s5473_s8 + $0xd2] sm:$0xff]  ;;  %v6594_v63 = vld [vmem:[%s5473_s8 + $0xda] sm:$0xff] }
 0x32b   : > { %4198 = vst [vmem:[%s6576_s24] sm:$0xff] %v4134_v5  ;;  %v3935_v31 = vadd.f32 %v3776_v0, %v3503_v59  ;;  %5010 = vmatmul.msk.bf16.gmra.mxu2 %vm436_vm1, %v2777_v43  ;;  %v2346_v43 = vpack.c.bf16 %v5150_v29, %v6538_v40 }
 0x32c   : > { %5108 = vmatmul.msk.bf16.gmra.mxu3 %vm436_vm1, %v3209_v51  ;;  %5206 = vmatmul.msk.bf16.gmra.mxu0 %vm436_vm1, %v3641_v52  ;;  %v4957_v52 = vld [vmem:[%s5473_s8 + $0xd8] sm:$0xff] }
 0x32d   : > { %v4003_v6 = vmul.f32 %v6552_v11, %v3935_v31 }
 0x32e   : > { %v2915_v24 = vpop.f32.mrf.mxu2  ;;  %v2485_v0 = vpop.f32.mrf.mxu1 }
 0x32f   : > { %v3347_v34 = vpop.f32.mrf.mxu3  ;;  %v4071_v59 = vadd.f32 %v6558_v32, %v4003_v6  ;;  %v3072_v5 = vadd.f32 %v2915_v24, %v2640_v28  ;;  %v2641_v4 = vadd.f32 %v2485_v0, %v5950_v37  ;;  %v2778_v28 = vpack.c.bf16 %v4957_v52, %v4956_v9 }
 0x330   : > { %v3210_v24 = vpack.c.bf16 %v5055_v48, %v5054_v2 }
 0x331   : > { %v4135_v22 = vmax.f32 %v4071_v59, 0.0  ;;  %v3504_v42 = vadd.f32 %v3347_v34, %v3072_v5  ;;  %v3781_v44 = vpop.f32.mrf.mxu0  ;;  %v3642_v34 = vpack.c.bf16 %v6594_v63, %v5152_v49 }
 0x333   : > { %4199 = vst [vmem:[%s6576_s24 + $0x8] sm:$0xff] %v4135_v22  ;;  %v3936_v51 = vadd.f32 %v3779_v33, %v3504_v42 }
 0x335   : > { %v4004_v12 = vmul.f32 %v6552_v11, %v3936_v51 }
 0x336   : > { %v2917_v54 = vpop.f32.mrf.mxu2  ;;  %v2488_v33 = vpop.f32.mrf.mxu1 }
 0x337   : > { %v3349_v61 = vpop.f32.mrf.mxu3  ;;  %v4072_v31 = vadd.f32 %v6558_v32, %v4004_v12  ;;  %v3073_v6 = vadd.f32 %v2917_v54, %v2641_v4  ;;  %v2642_v29 = vadd.f32 %v2488_v33, %v5955_v25  ;;  %v4958_v4 = vld [vmem:[%s5473_s8 + $0xe0] sm:$0xff]  ;;  %v4959_v54 = vld [vmem:[%s5473_s8 + $0xe8] sm:$0xff] }
 0x338   : > { %v6616_v33 = vld [vmem:[%s5473_s8 + $0xea] sm:$0xff] }
 0x339   : > { %v4136_v59 = vmax.f32 %v4072_v31, 0.0  ;;  %v3505_v5 = vadd.f32 %v3349_v61, %v3073_v6  ;;  %v3784_v22 = vpop.f32.mrf.mxu0  ;;  %4913 = vmatmul.msk.bf16.gmra.mxu1 %vm436_vm1, %v2346_v43  ;;  %v5056_v61 = vld [vmem:[%s5473_s8 + $0xe1] sm:$0xff]  ;;  %v5057_v43 = vld [vmem:[%s5473_s8 + $0xe9] sm:$0xff] }
 0x33a   : > { %v5154_v6 = vld [vmem:[%s5473_s8 + $0xe2] sm:$0xff] }
 0x33b   : > { %4200 = vst [vmem:[%s6576_s24 + $0x10] sm:$0xff] %v4136_v59  ;;  %v3937_v37 = vadd.f32 %v3781_v44, %v3505_v5  ;;  %5011 = vmatmul.msk.bf16.gmra.mxu2 %vm436_vm1, %v2778_v28 }
 0x33c   : > { %5109 = vmatmul.msk.bf16.gmra.mxu3 %vm436_vm1, %v3210_v24  ;;  %5207 = vmatmul.msk.bf16.gmra.mxu0 %vm436_vm1, %v3642_v34  ;;  %v2347_v34 = vpack.c.bf16 %v5152_v49, %v6570_v14 }
 0x33d   : > { %v4005_v40 = vmul.f32 %v6552_v11, %v3937_v37  ;;  %v2779_v37 = vpack.c.bf16 %v4959_v54, %v4958_v4 }
 0x33e   : > { %v2920_v0 = vpop.f32.mrf.mxu2  ;;  %v2490_v9 = vpop.f32.mrf.mxu1 }
 0x33f   : > { %v3352_v42 = vpop.f32.mrf.mxu3  ;;  %v4073_v44 = vadd.f32 %v6558_v32, %v4005_v40  ;;  %v3074_v51 = vadd.f32 %v2920_v0, %v2642_v29  ;;  %v2643_v25 = vadd.f32 %v2490_v9, %v5970_v19  ;;  %v3211_v40 = vpack.c.bf16 %v5057_v43, %v5056_v61  ;;  %v4960_v43 = vld [vmem:[%s5473_s8 + $0xf0] sm:$0xff] }
 0x340   : > { %v3643_v29 = vpack.c.bf16 %v6616_v33, %v5154_v6 }
 0x341   : > { %v4137_v52 = vmax.f32 %v4073_v44, 0.0  ;;  %v3506_v2 = vadd.f32 %v3352_v42, %v3074_v51  ;;  %v3786_v48 = vpop.f32.mrf.mxu0 }
 0x343   : > { %4201 = vst [vmem:[%s6576_s24 + $0x18] sm:$0xff] %v4137_v52  ;;  %v3938_v12 = vadd.f32 %v3784_v22, %v3506_v2 }
 0x345   : > { %v4006_v31 = vmul.f32 %v6552_v11, %v3938_v12 }
 0x346   : > { %v2922_v28 = vpop.f32.mrf.mxu2  ;;  %v2493_v22 = vpop.f32.mrf.mxu1 }
 0x347   : > { %v3354_v24 = vpop.f32.mrf.mxu3  ;;  %v4074_v59 = vadd.f32 %v6558_v32, %v4006_v31  ;;  %v3075_v5 = vadd.f32 %v2922_v28, %v2643_v25  ;;  %v2644_v49 = vadd.f32 %v2493_v22, %v5975_v47  ;;  %v4961_v31 = vld [vmem:[%s5473_s8 + $0xf8] sm:$0xff] }
 0x348   : > { %v5058_v25 = vld [vmem:[%s5473_s8 + $0xf1] sm:$0xff]  ;;  %v5059_v28 = vld [vmem:[%s5473_s8 + $0xf9] sm:$0xff] }
 0x349   : > { %v4138_v0 = vmax.f32 %v4074_v59, 0.0  ;;  %v3507_v42 = vadd.f32 %v3354_v24, %v3075_v5  ;;  %v3789_v44 = vpop.f32.mrf.mxu0  ;;  %4914 = vmatmul.msk.bf16.gmra.mxu1 %vm436_vm1, %v2347_v34  ;;  %v5156_v34 = vld [vmem:[%s5473_s8 + $0xf2] sm:$0xff]  ;;  %v6638_v59 = vld [vmem:[%s5473_s8 + $0xfa] sm:$0xff] }
 0x34b   : > { %4202 = vst [vmem:[%s6576_s24 + $0x20] sm:$0xff] %v4138_v0  ;;  %v3939_v19 = vadd.f32 %v3786_v48, %v3507_v42  ;;  %5012 = vmatmul.msk.bf16.gmra.mxu2 %vm436_vm1, %v2779_v37  ;;  %v2348_v37 = vpack.c.bf16 %v5154_v6, %v6594_v63  ;;  %v2780_v42 = vpack.c.bf16 %v4961_v31, %v4960_v43  ;;  %v4962_v31 = vld [vmem:[%s5473_s8 + $0x100] sm:$0xff] }
 0x34c   : > { %5110 = vmatmul.msk.bf16.gmra.mxu3 %vm436_vm1, %v3211_v40  ;;  %5208 = vmatmul.msk.bf16.gmra.mxu0 %vm436_vm1, %v3643_v29 }
 0x34d   : > { %v4007_v14 = vmul.f32 %v6552_v11, %v3939_v19  ;;  %v3644_v19 = vpack.c.bf16 %v6638_v59, %v5156_v34 }
 0x34e   : > { %v2925_v51 = vpop.f32.mrf.mxu2  ;;  %v2495_v48 = vpop.f32.mrf.mxu1 }
 0x34f   : > { %v3357_v9 = vpop.f32.mrf.mxu3  ;;  %v4075_v52 = vadd.f32 %v6558_v32, %v4007_v14  ;;  %v3076_v2 = vadd.f32 %v2925_v51, %v2644_v49  ;;  %v2645_v47 = vadd.f32 %v2495_v48, %v5990_v7 }
 0x351   : > { %v4139_v12 = vmax.f32 %v4075_v52, 0.0  ;;  %v3508_v4 = vadd.f32 %v3357_v9, %v3076_v2  ;;  %v3791_v54 = vpop.f32.mrf.mxu0 }
 0x353   : > { %4203 = vst [vmem:[%s6576_s24 + $0x28] sm:$0xff] %v4139_v12  ;;  %v3940_v61 = vadd.f32 %v3789_v44, %v3508_v4  ;;  %v3212_v44 = vpack.c.bf16 %v5059_v28, %v5058_v25  ;;  %v4963_v25 = vld [vmem:[%s5473_s8 + $0x108] sm:$0xff] }
 0x354   : > { %v5060_v28 = vld [vmem:[%s5473_s8 + $0x101] sm:$0xff] }
 0x355   : > { %v4008_v24 = vmul.f32 %v6552_v11, %v3940_v61 }
 0x356   : > { %v2927_v5 = vpop.f32.mrf.mxu2  ;;  %v2498_v0 = vpop.f32.mrf.mxu1 }
 0x357   : > { %v3359_v22 = vpop.f32.mrf.mxu3  ;;  %v4076_v40 = vadd.f32 %v6558_v32, %v4008_v24  ;;  %v3077_v29 = vadd.f32 %v2927_v5, %v2645_v47  ;;  %v2646_v6 = vadd.f32 %v2498_v0, %v5995_v23  ;;  %v5061_v24 = vld [vmem:[%s5473_s8 + $0x109] sm:$0xff] }
 0x358   : > { %v5158_v5 = vld [vmem:[%s5473_s8 + $0x102] sm:$0xff] }
 0x359   : > { %v4140_v14 = vmax.f32 %v4076_v40, 0.0  ;;  %v3509_v49 = vadd.f32 %v3359_v22, %v3077_v29  ;;  %v3794_v51 = vpop.f32.mrf.mxu0  ;;  %4915 = vmatmul.msk.bf16.gmra.mxu1 %vm436_vm1, %v2348_v37  ;;  %v6660_v22 = vld [vmem:[%s5473_s8 + $0x10a] sm:$0xff]  ;;  %v2349_v29 = vpack.c.bf16 %v5156_v34, %v6616_v33 }
 0x35b   : > { %4204 = vst [vmem:[%s6576_s24 + $0x30] sm:$0xff] %v4140_v14  ;;  %v3941_v7 = vadd.f32 %v3791_v54, %v3509_v49  ;;  %5013 = vmatmul.msk.bf16.gmra.mxu2 %vm436_vm1, %v2780_v42  ;;  %v3213_v14 = vpack.c.bf16 %v5061_v24, %v5060_v28  ;;  %v3645_v49 = vpack.c.bf16 %v6660_v22, %v5158_v5  ;;  %v5063_v28 = vld [vmem:[%s5473_s8 + $0x119] sm:$0xff] }
 0x35c   : > { %5111 = vmatmul.msk.bf16.gmra.mxu3 %vm436_vm1, %v3212_v44  ;;  %5209 = vmatmul.msk.bf16.gmra.mxu0 %vm436_vm1, %v3644_v19  ;;  %v2781_v19 = vpack.c.bf16 %v4963_v25, %v4962_v31  ;;  %v4965_v31 = vld [vmem:[%s5473_s8 + $0x118] sm:$0xff] }
 0x35d   : > { %v4009_v63 = vmul.f32 %v6552_v11, %v3941_v7  ;;  %v5062_v25 = vld [vmem:[%s5473_s8 + $0x111] sm:$0xff] }
 0x35e   : > { %v2930_v9 = vpop.f32.mrf.mxu2  ;;  %v2500_v12 = vpop.f32.mrf.mxu1 }
 0x35f   : > { %v3362_v52 = vpop.f32.mrf.mxu3  ;;  %v4077_v2 = vadd.f32 %v6558_v32, %v4009_v63  ;;  %v3078_v48 = vadd.f32 %v2930_v9, %v2646_v6  ;;  %v2647_v23 = vadd.f32 %v2500_v12, %v6010_v10 }
 0x361   : > { %v4141_v4 = vmax.f32 %v4077_v2, 0.0  ;;  %v3510_v54 = vadd.f32 %v3362_v52, %v3078_v48  ;;  %v3796_v61 = vpop.f32.mrf.mxu0 }
 0x363   : > { %4205 = vst [vmem:[%s6576_s24 + $0x38] sm:$0xff] %v4141_v4  ;;  %v3942_v43 = vadd.f32 %v3794_v51, %v3510_v54 }
 0x365   : > { %v4010_v47 = vmul.f32 %v6552_v11, %v3942_v43  ;;  %v4964_v43 = vld [vmem:[%s5473_s8 + $0x110] sm:$0xff] }
 0x366   : > { %v2932_v37 = vpop.f32.mrf.mxu2  ;;  %v2503_v44 = vpop.f32.mrf.mxu1 }
 0x367   : > { %v3364_v40 = vpop.f32.mrf.mxu3  ;;  %v4078_v0 = vadd.f32 %v6558_v32, %v4010_v47  ;;  %v3079_v42 = vadd.f32 %v2932_v37, %v2647_v23  ;;  %v2648_v34 = vadd.f32 %v2503_v44, %v6015_v26  ;;  %v5160_v47 = vld [vmem:[%s5473_s8 + $0x112] sm:$0xff]  ;;  %v6682_v23 = vld [vmem:[%s5473_s8 + $0x11a] sm:$0xff] }
 0x369   : > { %v4142_v51 = vmax.f32 %v4078_v0, 0.0  ;;  %v3511_v7 = vadd.f32 %v3364_v40, %v3079_v42  ;;  %v3799_v63 = vpop.f32.mrf.mxu0  ;;  %4916 = vmatmul.msk.bf16.gmra.mxu1 %vm436_vm1, %v2349_v29  ;;  %v2350_v29 = vpack.c.bf16 %v5158_v5, %v6638_v59 }
 0x36b   : > { %4206 = vst [vmem:[%s6576_s24 + $0x40] sm:$0xff] %v4142_v51  ;;  %v3943_v10 = vadd.f32 %v3796_v61, %v3511_v7  ;;  %5014 = vmatmul.msk.bf16.gmra.mxu2 %vm436_vm1, %v2781_v19  ;;  %v2782_v19 = vpack.c.bf16 %v4965_v31, %v4964_v43  ;;  %v5065_v43 = vld [vmem:[%s5473_s8 + $0x129] sm:$0xff] }
 0x36c   : > { %5112 = vmatmul.msk.bf16.gmra.mxu3 %vm436_vm1, %v3213_v14  ;;  %5210 = vmatmul.msk.bf16.gmra.mxu0 %vm436_vm1, %v3645_v49  ;;  %v3214_v14 = vpack.c.bf16 %v5063_v28, %v5062_v25  ;;  %v3646_v49 = vpack.c.bf16 %v6682_v23, %v5160_v47  ;;  %v5162_v25 = vld [vmem:[%s5473_s8 + $0x122] sm:$0xff]  ;;  %v6704_v28 = vld [vmem:[%s5473_s8 + $0x12a] sm:$0xff] }
 0x36d   : > { %v4011_v33 = vmul.f32 %v6552_v11, %v3943_v10 }
 0x36e   : > { %v2935_v6 = vpop.f32.mrf.mxu2  ;;  %v2505_v48 = vpop.f32.mrf.mxu1 }
 0x36f   : > { %v3367_v9 = vpop.f32.mrf.mxu3  ;;  %v4079_v52 = vadd.f32 %v6558_v32, %v4011_v33  ;;  %v3080_v2 = vadd.f32 %v2935_v6, %v2648_v34  ;;  %v2649_v26 = vadd.f32 %v2505_v48, %v6030_v1 }
 0x371   : > { %v4143_v12 = vmax.f32 %v4079_v52, 0.0  ;;  %v3512_v4 = vadd.f32 %v3367_v9, %v3080_v2  ;;  %v3801_v54 = vpop.f32.mrf.mxu0 }
 0x373   : > { %4207 = vst [vmem:[%s6576_s24 + $0x48] sm:$0xff] %v4143_v12  ;;  %v3944_v61 = vadd.f32 %v3799_v63, %v3512_v4  ;;  %v4966_v4 = vld [vmem:[%s5473_s8 + $0x120] sm:$0xff] }
 0x375   : > { %v4012_v24 = vmul.f32 %v6552_v11, %v3944_v61  ;;  %v5064_v61 = vld [vmem:[%s5473_s8 + $0x121] sm:$0xff] }
 0x376   : > { %v2937_v37 = vpop.f32.mrf.mxu2  ;;  %v2508_v44 = vpop.f32.mrf.mxu1 }
 0x377   : > { %v3369_v40 = vpop.f32.mrf.mxu3  ;;  %v4080_v0 = vadd.f32 %v6558_v32, %v4012_v24  ;;  %v3081_v42 = vadd.f32 %v2937_v37, %v2649_v26  ;;  %v2650_v5 = vadd.f32 %v2508_v44, %v6035_v57  ;;  %v2351_v37 = vpack.c.bf16 %v5160_v47, %v6660_v22 }
 0x378   : > { %v3215_v44 = vpack.c.bf16 %v5065_v43, %v5064_v61 }
 0x379   : > { %v4144_v51 = vmax.f32 %v4080_v0, 0.0  ;;  %v3513_v7 = vadd.f32 %v3369_v40, %v3081_v42  ;;  %v3804_v63 = vpop.f32.mrf.mxu0  ;;  %4917 = vmatmul.msk.bf16.gmra.mxu1 %vm436_vm1, %v2350_v29 }
 0x37b   : > { %4208 = vst [vmem:[%s6576_s24 + $0x50] sm:$0xff] %v4144_v51  ;;  %v3945_v1 = vadd.f32 %v3801_v54, %v3513_v7  ;;  %5015 = vmatmul.msk.bf16.gmra.mxu2 %vm436_vm1, %v2782_v19  ;;  %v4967_v54 = vld [vmem:[%s5473_s8 + $0x128] sm:$0xff]  ;;  %v3647_v19 = vpack.c.bf16 %v6704_v28, %v5162_v25 }
 0x37c   : > { %5113 = vmatmul.msk.bf16.gmra.mxu3 %vm436_vm1, %v3214_v14  ;;  %5211 = vmatmul.msk.bf16.gmra.mxu0 %vm436_vm1, %v3646_v49  ;;  %v2783_v42 = vpack.c.bf16 %v4967_v54, %v4966_v4  ;;  %v5164_v4 = vld [vmem:[%s5473_s8 + $0x132] sm:$0xff]  ;;  %v6726_v54 = vld [vmem:[%s5473_s8 + $0x13a] sm:$0xff] }
 0x37d   : > { %v4013_v59 = vmul.f32 %v6552_v11, %v3945_v1 }
 0x37e   : > { %v2940_v10 = vpop.f32.mrf.mxu2  ;;  %v2510_v9 = vpop.f32.mrf.mxu1 }
 0x37f   : > { %v3372_v33 = vpop.f32.mrf.mxu3  ;;  %v4081_v34 = vadd.f32 %v6558_v32, %v4013_v59  ;;  %v3082_v6 = vadd.f32 %v2940_v10, %v2650_v5  ;;  %v2651_v57 = vadd.f32 %v2510_v9, %v6050_v15  ;;  %v4968_v9 = vld [vmem:[%s5473_s8 + $0x130] sm:$0xff] }
 0x381   : > { %v4145_v52 = vmax.f32 %v4081_v34, 0.0  ;;  %v3514_v2 = vadd.f32 %v3372_v33, %v3082_v6  ;;  %v3806_v48 = vpop.f32.mrf.mxu0 }
 0x383   : > { %4209 = vst [vmem:[%s6576_s24 + $0x58] sm:$0xff] %v4145_v52  ;;  %v3946_v12 = vadd.f32 %v3804_v63, %v3514_v2  ;;  %v4969_v52 = vld [vmem:[%s5473_s8 + $0x138] sm:$0xff] }
 0x384   : > { %v5066_v2 = vld [vmem:[%s5473_s8 + $0x131] sm:$0xff] }
 0x385   : > { %v4014_v31 = vmul.f32 %v6552_v11, %v3946_v12 }
 0x386   : > { %v2942_v24 = vpop.f32.mrf.mxu2  ;;  %v2513_v0 = vpop.f32.mrf.mxu1 }
 0x387   : > { %v3374_v26 = vpop.f32.mrf.mxu3  ;;  %v4082_v40 = vadd.f32 %v6558_v32, %v4014_v31  ;;  %v3083_v29 = vadd.f32 %v2942_v24, %v2651_v57  ;;  %v2652_v47 = vadd.f32 %v2513_v0, %v6055_v46  ;;  %v2352_v31 = vpack.c.bf16 %v5162_v25, %v6682_v23 }
 0x389   : > { %v4146_v14 = vmax.f32 %v4082_v40, 0.0  ;;  %v3515_v49 = vadd.f32 %v3374_v26, %v3083_v29  ;;  %v3809_v51 = vpop.f32.mrf.mxu0  ;;  %4918 = vmatmul.msk.bf16.gmra.mxu1 %vm436_vm1, %v2351_v37  ;;  %v2784_v37 = vpack.c.bf16 %v4969_v52, %v4968_v9  ;;  %v3648_v29 = vpack.c.bf16 %v6726_v54, %v5164_v4 }
 0x38b   : > { %4210 = vst [vmem:[%s6576_s24 + $0x60] sm:$0xff] %v4146_v14  ;;  %v3947_v15 = vadd.f32 %v3806_v48, %v3515_v49  ;;  %5016 = vmatmul.msk.bf16.gmra.mxu2 %vm436_vm1, %v2783_v42  ;;  %v5067_v48 = vld [vmem:[%s5473_s8 + $0x139] sm:$0xff] }
 0x38c   : > { %5114 = vmatmul.msk.bf16.gmra.mxu3 %vm436_vm1, %v3215_v44  ;;  %5212 = vmatmul.msk.bf16.gmra.mxu0 %vm436_vm1, %v3647_v19  ;;  %v3216_v40 = vpack.c.bf16 %v5067_v48, %v5066_v2  ;;  %v2353_v2 = vpack.c.bf16 %v5164_v4, %v6704_v28 }
 0x38d   : > { %v4015_v22 = vmul.f32 %v6552_v11, %v3947_v15 }
 0x38e   : > { %v2945_v7 = vpop.f32.mrf.mxu2  ;;  %v2515_v5 = vpop.f32.mrf.mxu1 }
 0x38f   : > { %v3377_v63 = vpop.f32.mrf.mxu3  ;;  %v4083_v1 = vadd.f32 %v6558_v32, %v4015_v22  ;;  %v3084_v59 = vadd.f32 %v2945_v7, %v2652_v47  ;;  %v2653_v46 = vadd.f32 %v2515_v5, %v6070_v30  ;;  %v5068_v5 = vld [vmem:[%s5473_s8 + $0x141] sm:$0xff] }
 0x391   : > { %v4147_v10 = vmax.f32 %v4083_v1, 0.0  ;;  %v3516_v33 = vadd.f32 %v3377_v63, %v3084_v59  ;;  %v3811_v34 = vpop.f32.mrf.mxu0  ;;  %v4970_v1 = vld [vmem:[%s5473_s8 + $0x140] sm:$0xff]  ;;  %v4971_v59 = vld [vmem:[%s5473_s8 + $0x148] sm:$0xff] }
 0x393   : > { %4211 = vst [vmem:[%s6576_s24 + $0x68] sm:$0xff] %v4147_v10  ;;  %v3948_v6 = vadd.f32 %v3809_v51, %v3516_v33  ;;  %v5069_v10 = vld [vmem:[%s5473_s8 + $0x149] sm:$0xff] }
 0x395   : > { %v4016_v12 = vmul.f32 %v6552_v11, %v3948_v6  ;;  %v6748_v6 = vld [vmem:[%s5473_s8 + $0x14a] sm:$0xff] }
 0x396   : > { %v2947_v61 = vpop.f32.mrf.mxu2  ;;  %v2518_v26 = vpop.f32.mrf.mxu1 }
 0x397   : > { %v3379_v43 = vpop.f32.mrf.mxu3  ;;  %v4084_v57 = vadd.f32 %v6558_v32, %v4016_v12  ;;  %v3085_v24 = vadd.f32 %v2947_v61, %v2653_v46  ;;  %v2654_v25 = vadd.f32 %v2518_v26, %v6075_v8  ;;  %v2785_v61 = vpack.c.bf16 %v4971_v59, %v4970_v1 }
 0x399   : > { %v4148_v0 = vmax.f32 %v4084_v57, 0.0  ;;  %v3517_v42 = vadd.f32 %v3379_v43, %v3085_v24  ;;  %v3814_v44 = vpop.f32.mrf.mxu0  ;;  %4919 = vmatmul.msk.bf16.gmra.mxu1 %vm436_vm1, %v2352_v31  ;;  %v3217_v43 = vpack.c.bf16 %v5069_v10, %v5068_v5 }
 0x39b   : > { %4212 = vst [vmem:[%s6576_s24 + $0x70] sm:$0xff] %v4148_v0  ;;  %v3949_v30 = vadd.f32 %v3811_v34, %v3517_v42  ;;  %5017 = vmatmul.msk.bf16.gmra.mxu2 %vm436_vm1, %v2784_v37  ;;  %v5166_v34 = vld [vmem:[%s5473_s8 + $0x142] sm:$0xff] }
 0x39c   : > { %5115 = vmatmul.msk.bf16.gmra.mxu3 %vm436_vm1, %v3216_v40  ;;  %5213 = vmatmul.msk.bf16.gmra.mxu0 %vm436_vm1, %v3648_v29  ;;  %v3649_v31 = vpack.c.bf16 %v6748_v6, %v5166_v34  ;;  %v2354_v1 = vpack.c.bf16 %v5166_v34, %v6726_v54 }
 0x39d   : > { %v4017_v23 = vmul.f32 %v6552_v11, %v3949_v30 }
 0x39e   : > { %v2950_v19 = vpop.f32.mrf.mxu2  ;;  %v2520_v15 = vpop.f32.mrf.mxu1 }
 0x39f   : > { %v3382_v14 = vpop.f32.mrf.mxu3  ;;  %v4085_v49 = vadd.f32 %v6558_v32, %v4017_v23  ;;  %v3086_v51 = vadd.f32 %v2950_v19, %v2654_v25  ;;  %v2655_v8 = vadd.f32 %v2520_v15, %v6090_v27  ;;  %v4972_v19 = vld [vmem:[%s5473_s8 + $0x150] sm:$0xff] }
 0x3a1   : > { %v4149_v22 = vmax.f32 %v4085_v49, 0.0  ;;  %v3518_v47 = vadd.f32 %v3382_v14, %v3086_v51  ;;  %v3816_v7 = vpop.f32.mrf.mxu0  ;;  %v4973_v14 = vld [vmem:[%s5473_s8 + $0x158] sm:$0xff] }
 0x3a2   : > { %v5070_v49 = vld [vmem:[%s5473_s8 + $0x151] sm:$0xff]  ;;  %v5071_v51 = vld [vmem:[%s5473_s8 + $0x159] sm:$0xff] }
 0x3a3   : > { %4213 = vst [vmem:[%s6576_s24 + $0x78] sm:$0xff] %v4149_v22  ;;  %v3950_v63 = vadd.f32 %v3814_v44, %v3518_v47  ;;  %v5168_v22 = vld [vmem:[%s5473_s8 + $0x152] sm:$0xff]  ;;  %v6770_v47 = vld [vmem:[%s5473_s8 + $0x15a] sm:$0xff] }
 0x3a5   : > { %v4018_v33 = vmul.f32 %v6552_v11, %v3950_v63 }
 0x3a6   : > { %v2952_v9 = vpop.f32.mrf.mxu2  ;;  %v2523_v46 = vpop.f32.mrf.mxu1 }
 0x3a7   : > { %v3384_v52 = vpop.f32.mrf.mxu3  ;;  %v4086_v48 = vadd.f32 %v6558_v32, %v4018_v33  ;;  %v3087_v12 = vadd.f32 %v2952_v9, %v2655_v8  ;;  %v2656_v4 = vadd.f32 %v2523_v46, %v6095_v60  ;;  %v2786_v33 = vpack.c.bf16 %v4973_v14, %v4972_v19 }
 0x3a8   : > { %v3218_v8 = vpack.c.bf16 %v5071_v51, %v5070_v49  ;;  %v3650_v9 = vpack.c.bf16 %v6770_v47, %v5168_v22 }
 0x3a9   : > { %v4150_v57 = vmax.f32 %v4086_v48, 0.0  ;;  %v3519_v24 = vadd.f32 %v3384_v52, %v3087_v12  ;;  %v3819_v26 = vpop.f32.mrf.mxu0  ;;  %4920 = vmatmul.msk.bf16.gmra.mxu1 %vm436_vm1, %v2353_v2 }
 0x3ab   : > { %4214 = vst [vmem:[%s6576_s24 + $0x80] sm:$0xff] %v4150_v57  ;;  %v3951_v27 = vadd.f32 %v3816_v7, %v3519_v24  ;;  %5018 = vmatmul.msk.bf16.gmra.mxu2 %vm436_vm1, %v2785_v61 }
 0x3ac   : > { %5116 = vmatmul.msk.bf16.gmra.mxu3 %vm436_vm1, %v3217_v43  ;;  %5214 = vmatmul.msk.bf16.gmra.mxu0 %vm436_vm1, %v3649_v31 }
 0x3ad   : > { %v4019_v28 = vmul.f32 %v6552_v11, %v3951_v27 }
 0x3ae   : > { %v2955_v37 = vpop.f32.mrf.mxu2  ;;  %v2525_v42 = vpop.f32.mrf.mxu1 }
 0x3af   : > { %v3387_v40 = vpop.f32.mrf.mxu3  ;;  %v4087_v29 = vadd.f32 %v6558_v32, %v4019_v28  ;;  %v3088_v0 = vadd.f32 %v2955_v37, %v2656_v4  ;;  %v2657_v60 = vadd.f32 %v2525_v42, %v6110_v55  ;;  %v4974_v28 = vld [vmem:[%s5473_s8 + $0x160] sm:$0xff]  ;;  %v4975_v4 = vld [vmem:[%s5473_s8 + $0x168] sm:$0xff] }
 0x3b0   : > { %v5072_v37 = vld [vmem:[%s5473_s8 + $0x161] sm:$0xff]  ;;  %v6792_v42 = vld [vmem:[%s5473_s8 + $0x16a] sm:$0xff]  ;;  %v2787_v49 = vpack.c.bf16 %v4975_v4, %v4974_v28 }
 0x3b1   : > { %v4151_v44 = vmax.f32 %v4087_v29, 0.0  ;;  %v3520_v30 = vadd.f32 %v3387_v40, %v3088_v0  ;;  %v3821_v23 = vpop.f32.mrf.mxu0  ;;  %v5073_v40 = vld [vmem:[%s5473_s8 + $0x169] sm:$0xff] }
 0x3b2   : > { %v5170_v0 = vld [vmem:[%s5473_s8 + $0x162] sm:$0xff]  ;;  %v3219_v51 = vpack.c.bf16 %v5073_v40, %v5072_v37 }
 0x3b3   : > { %4215 = vst [vmem:[%s6576_s24 + $0x88] sm:$0xff] %v4151_v44  ;;  %v3952_v25 = vadd.f32 %v3819_v26, %v3520_v30 }
 0x3b5   : > { %v4020_v15 = vmul.f32 %v6552_v11, %v3952_v25 }
 0x3b6   : > { %v2957_v7 = vpop.f32.mrf.mxu2  ;;  %v2528_v10 = vpop.f32.mrf.mxu1 }
 0x3b7   : > { %v3389_v63 = vpop.f32.mrf.mxu3  ;;  %v4088_v59 = vadd.f32 %v6558_v32, %v4020_v15  ;;  %v3089_v5 = vadd.f32 %v2957_v7, %v2657_v60  ;;  %v2658_v34 = vadd.f32 %v2528_v10, %v6115_v21  ;;  %v3651_v15 = vpack.c.bf16 %v6792_v42, %v5170_v0 }
 0x3b9   : > { %v4152_v52 = vmax.f32 %v4088_v59, 0.0  ;;  %v3521_v2 = vadd.f32 %v3389_v63, %v3089_v5  ;;  %v3824_v48 = vpop.f32.mrf.mxu0  ;;  %4921 = vmatmul.msk.bf16.gmra.mxu1 %vm436_vm1, %v2354_v1 }
 0x3bb   : > { %4216 = vst [vmem:[%s6576_s24 + $0x90] sm:$0xff] %v4152_v52  ;;  %v3953_v55 = vadd.f32 %v3821_v23, %v3521_v2  ;;  %5019 = vmatmul.msk.bf16.gmra.mxu2 %vm436_vm1, %v2786_v33  ;;  %v2355_v23 = vpack.c.bf16 %v5168_v22, %v6748_v6 }
 0x3bc   : > { %5117 = vmatmul.msk.bf16.gmra.mxu3 %vm436_vm1, %v3218_v8  ;;  %5215 = vmatmul.msk.bf16.gmra.mxu0 %vm436_vm1, %v3650_v9 }
 0x3bd   : > { %v4021_v54 = vmul.f32 %v6552_v11, %v3953_v55  ;;  %v4977_v55 = vld [vmem:[%s5473_s8 + $0x178] sm:$0xff] }
 0x3be   : > { %v2960_v12 = vpop.f32.mrf.mxu2  ;;  %v2530_v31 = vpop.f32.mrf.mxu1 }
 0x3bf   : > { %v3392_v46 = vpop.f32.mrf.mxu3  ;;  %v4089_v61 = vadd.f32 %v6558_v32, %v4021_v54  ;;  %v3090_v43 = vadd.f32 %v2960_v12, %v2658_v34  ;;  %v2659_v21 = vadd.f32 %v2530_v31, %v6130_v18  ;;  %v5074_v54 = vld [vmem:[%s5473_s8 + $0x171] sm:$0xff]  ;;  %v5075_v34 = vld [vmem:[%s5473_s8 + $0x179] sm:$0xff] }
 0x3c0   : > { %v3220_v4 = vpack.c.bf16 %v5075_v34, %v5074_v54 }
 0x3c1   : > { %v4153_v57 = vmax.f32 %v4089_v61, 0.0  ;;  %v3522_v24 = vadd.f32 %v3392_v46, %v3090_v43  ;;  %v3826_v26 = vpop.f32.mrf.mxu0  ;;  %v5172_v46 = vld [vmem:[%s5473_s8 + $0x172] sm:$0xff]  ;;  %v6814_v61 = vld [vmem:[%s5473_s8 + $0x17a] sm:$0xff] }
 0x3c2   : > { %v3652_v37 = vpack.c.bf16 %v6814_v61, %v5172_v46 }
 0x3c3   : > { %4217 = vst [vmem:[%s6576_s24 + $0x98] sm:$0xff] %v4153_v57  ;;  %v3954_v27 = vadd.f32 %v3824_v48, %v3522_v24  ;;  %v4976_v48 = vld [vmem:[%s5473_s8 + $0x170] sm:$0xff]  ;;  %v2356_v57 = vpack.c.bf16 %v5170_v0, %v6770_v47 }
 0x3c4   : > { %v2788_v28 = vpack.c.bf16 %v4977_v55, %v4976_v48 }
 0x3c5   : > { %v4022_v29 = vmul.f32 %v6552_v11, %v3954_v27 }
 0x3c6   : > { %v2962_v44 = vpop.f32.mrf.mxu2  ;;  %v2533_v14 = vpop.f32.mrf.mxu1 }
 0x3c7   : > { %v3394_v30 = vpop.f32.mrf.mxu3  ;;  %v4090_v25 = vadd.f32 %v6558_v32, %v4022_v29  ;;  %v3091_v19 = vadd.f32 %v2962_v44, %v2659_v21  ;;  %v2660_v22 = vadd.f32 %v2533_v14, %v6135_v35 }
 0x3c9   : > { %v4154_v60 = vmax.f32 %v4090_v25, 0.0  ;;  %v3523_v7 = vadd.f32 %v3394_v30, %v3091_v19  ;;  %v3829_v63 = vpop.f32.mrf.mxu0  ;;  %4922 = vmatmul.msk.bf16.gmra.mxu1 %vm436_vm1, %v2355_v23 }
 0x3cb   : > { %4218 = vst [vmem:[%s6576_s24 + $0xa0] sm:$0xff] %v4154_v60  ;;  %v3955_v18 = vadd.f32 %v3826_v26, %v3523_v7  ;;  %5020 = vmatmul.msk.bf16.gmra.mxu2 %vm436_vm1, %v2787_v49  ;;  %v4978_v60 = vld [vmem:[%s5473_s8 + $0x180] sm:$0xff]  ;;  %v4979_v7 = vld [vmem:[%s5473_s8 + $0x188] sm:$0xff] }
 0x3cc   : > { %5118 = vmatmul.msk.bf16.gmra.mxu3 %vm436_vm1, %v3219_v51  ;;  %5216 = vmatmul.msk.bf16.gmra.mxu0 %vm436_vm1, %v3651_v15 }
 0x3cd   : > { %v4023_v6 = vmul.f32 %v6552_v11, %v3955_v18  ;;  %v5077_v18 = vld [vmem:[%s5473_s8 + $0x189] sm:$0xff] }
 0x3ce   : > { %v2965_v1 = vpop.f32.mrf.mxu2  ;;  %v2535_v33 = vpop.f32.mrf.mxu1 }
 0x3cf   : > { %v3397_v59 = vpop.f32.mrf.mxu3  ;;  %v4091_v5 = vadd.f32 %v6558_v32, %v4023_v6  ;;  %v3092_v10 = vadd.f32 %v2965_v1, %v2660_v22  ;;  %v2661_v35 = vadd.f32 %v2535_v33, %v6150_v3  ;;  %v5174_v22 = vld [vmem:[%s5473_s8 + $0x182] sm:$0xff]  ;;  %v6836_v1 = vld [vmem:[%s5473_s8 + $0x18a] sm:$0xff] }
 0x3d0   : > { %v3653_v48 = vpack.c.bf16 %v6836_v1, %v5174_v22 }
 0x3d1   : > { %v4155_v8 = vmax.f32 %v4091_v5, 0.0  ;;  %v3524_v9 = vadd.f32 %v3397_v59, %v3092_v10  ;;  %v3831_v52 = vpop.f32.mrf.mxu0  ;;  %v2357_v10 = vpack.c.bf16 %v5172_v46, %v6792_v42 }
 0x3d3   : > { %4219 = vst [vmem:[%s6576_s24 + $0xa8] sm:$0xff] %v4155_v8  ;;  %v3956_v2 = vadd.f32 %v3829_v63, %v3524_v9  ;;  %v5076_v63 = vld [vmem:[%s5473_s8 + $0x181] sm:$0xff] }
 0x3d5   : > { %v4024_v12 = vmul.f32 %v6552_v11, %v3956_v2  ;;  %v3221_v2 = vpack.c.bf16 %v5077_v18, %v5076_v63 }
 0x3d6   : > { %v2967_v43 = vpop.f32.mrf.mxu2  ;;  %v2538_v27 = vpop.f32.mrf.mxu1 }
 0x3d7   : > { %v3399_v31 = vpop.f32.mrf.mxu3  ;;  %v4092_v24 = vadd.f32 %v6558_v32, %v4024_v12  ;;  %v3093_v26 = vadd.f32 %v2967_v43, %v2661_v35  ;;  %v2662_v0 = vadd.f32 %v2538_v27, %v6155_v56 }
 0x3d9   : > { %v4156_v40 = vmax.f32 %v4092_v24, 0.0  ;;  %v3525_v29 = vadd.f32 %v3399_v31, %v3093_v26  ;;  %v3834_v21 = vpop.f32.mrf.mxu0  ;;  %4923 = vmatmul.msk.bf16.gmra.mxu1 %vm436_vm1, %v2356_v57 }
 0x3db   : > { %4220 = vst [vmem:[%s6576_s24 + $0xb0] sm:$0xff] %v4156_v40  ;;  %v3957_v3 = vadd.f32 %v3831_v52, %v3525_v29  ;;  %5021 = vmatmul.msk.bf16.gmra.mxu2 %vm436_vm1, %v2788_v28  ;;  %v2789_v52 = vpack.c.bf16 %v4979_v7, %v4978_v60  ;;  %v5078_v40 = vld [vmem:[%s5473_s8 + $0x191] sm:$0xff]  ;;  %v5079_v29 = vld [vmem:[%s5473_s8 + $0x199] sm:$0xff] }
 0x3dc   : > { %5119 = vmatmul.msk.bf16.gmra.mxu3 %vm436_vm1, %v3220_v4  ;;  %5217 = vmatmul.msk.bf16.gmra.mxu0 %vm436_vm1, %v3652_v37  ;;  %v4980_v4 = vld [vmem:[%s5473_s8 + $0x190] sm:$0xff]  ;;  %v4981_v37 = vld [vmem:[%s5473_s8 + $0x198] sm:$0xff] }
 0x3dd   : > { %v4025_v47 = vmul.f32 %v6552_v11, %v3957_v3  ;;  %v5176_v3 = vld [vmem:[%s5473_s8 + $0x192] sm:$0xff] }
 0x3de   : > { %v2970_v44 = vpop.f32.mrf.mxu2  ;;  %v2540_v19 = vpop.f32.mrf.mxu1 }
 0x3df   : > { %v3402_v30 = vpop.f32.mrf.mxu3  ;;  %v4093_v23 = vadd.f32 %v6558_v32, %v4025_v47  ;;  %v3094_v25 = vadd.f32 %v2970_v44, %v2662_v0  ;;  %v2663_v56 = vadd.f32 %v2540_v19, %v6170_v53  ;;  %v6858_v47 = vld [vmem:[%s5473_s8 + $0x19a] sm:$0xff] }
 0x3e1   : > { %v4157_v14 = vmax.f32 %v4093_v23, 0.0  ;;  %v3526_v49 = vadd.f32 %v3402_v30, %v3094_v25  ;;  %v3836_v51 = vpop.f32.mrf.mxu0  ;;  %v2358_v30 = vpack.c.bf16 %v5174_v22, %v6814_v61 }
 0x3e3   : > { %4221 = vst [vmem:[%s6576_s24 + $0xb8] sm:$0xff] %v4157_v14  ;;  %v3958_v15 = vadd.f32 %v3834_v21, %v3526_v49  ;;  %v2790_v14 = vpack.c.bf16 %v4981_v37, %v4980_v4  ;;  %v3222_v49 = vpack.c.bf16 %v5079_v29, %v5078_v40 }
 0x3e5   : > { %v4026_v6 = vmul.f32 %v6552_v11, %v3958_v15 }
 0x3e6   : > { %v2972_v59 = vpop.f32.mrf.mxu2  ;;  %v2543_v9 = vpop.f32.mrf.mxu1 }
 0x3e7   : > { %v3404_v5 = vpop.f32.mrf.mxu3  ;;  %v4094_v33 = vadd.f32 %v6558_v32, %v4026_v6  ;;  %v3095_v8 = vadd.f32 %v2972_v59, %v2663_v56  ;;  %v2664_v12 = vadd.f32 %v2543_v9, %v6175_v20  ;;  %v6878_v6 = vld [vmem:[%s7186_s3] ss:$0 sm:$0xff] }
 0x3e8   : > { %v4982_v9 = vld [vmem:[%s5473_s8 + $0x1a0] sm:$0xff] }
 0x3e9   : > { %v4158_v55 = vmax.f32 %v4094_v33, 0.0  ;;  %v3527_v54 = vadd.f32 %v3404_v5, %v3095_v8  ;;  %v3839_v34 = vpop.f32.mrf.mxu0  ;;  %4924 = vmatmul.msk.bf16.gmra.mxu1 %vm436_vm1, %v2357_v10 }
 0x3eb   : > { %4222 = vst [vmem:[%s6576_s24 + $0xc0] sm:$0xff] %v4158_v55  ;;  %v3959_v53 = vadd.f32 %v3836_v51, %v3527_v54  ;;  %5022 = vmatmul.msk.bf16.gmra.mxu2 %vm436_vm1, %v2789_v52  ;;  %v3654_v51 = vpack.c.bf16 %v6858_v47, %v5176_v3  ;;  %v5080_v52 = vld [vmem:[%s5473_s8 + $0x1a1] sm:$0xff] }
 0x3ec   : > { %5120 = vmatmul.msk.bf16.gmra.mxu3 %vm436_vm1, %v3221_v2  ;;  %5218 = vmatmul.msk.bf16.gmra.mxu0 %vm436_vm1, %v3653_v48  ;;  %v5081_v2 = vld [vmem:[%s5473_s8 + $0x1a9] sm:$0xff] }
 0x3ed   : > { %v4027_v42 = vmul.f32 %v6552_v11, %v3959_v53  ;;  %v5178_v54 = vld [vmem:[%s5473_s8 + $0x1a2] sm:$0xff] }
 0x3ee   : > { %v2975_v35 = vpop.f32.mrf.mxu2  ;;  %v2545_v57 = vpop.f32.mrf.mxu1 }
 0x3ef   : > { %v3407_v46 = vpop.f32.mrf.mxu3  ;;  %v4095_v43 = vadd.f32 %v6558_v32, %v4027_v42  ;;  %v3096_v31 = vadd.f32 %v2975_v35, %v2664_v12  ;;  %v2665_v20 = vadd.f32 %v2545_v57, %v6190_v39  ;;  %v2359_v12 = vpack.c.bf16 %v5176_v3, %v6836_v1 }
 0x3f0   : > { %v3223_v57 = vpack.c.bf16 %v5081_v2, %v5080_v52 }
 0x3f1   : > { %v4159_v24 = vmax.f32 %v4095_v43, 0.0  ;;  %v3528_v26 = vadd.f32 %v3407_v46, %v3096_v31  ;;  %v3841_v27 = vpop.f32.mrf.mxu0 }
 0x3f3   : > { %4223 = vst [vmem:[%s6576_s24 + $0xc8] sm:$0xff] %v4159_v24  ;;  %v3960_v28 = vadd.f32 %v3839_v34, %v3528_v26  ;;  %v6890_v34 = vld [vmem:[%s5473_s8 + $0x1aa] sm:$0xff] }
 0x3f4   : > { %v3655_v24 = vpack.c.bf16 %v6890_v34, %v5178_v54 }
 0x3f5   : > { %v4028_v21 = vmul.f32 %v6552_v11, %v3960_v28 }
 0x3f6   : > { %v2977_v0 = vpop.f32.mrf.mxu2  ;;  %v2548_v19 = vpop.f32.mrf.mxu1 }
 0x3f7   : > { %v3409_v44 = vpop.f32.mrf.mxu3  ;;  %v4096_v23 = vadd.f32 %v6558_v32, %v4028_v21  ;;  %v3097_v25 = vadd.f32 %v2977_v0, %v2665_v20  ;;  %v6871_v32 = vld [vmem:[%s7185_s2] ss:$0 sm:$0xff]  ;;  %v2666_v7 = vadd.f32 %v2548_v19, %v6195_v13  ;;  %v4983_v13 = vld [vmem:[%s5473_s8 + $0x1a8] sm:$0xff]  ;;  %v5082_v19 = vld [vmem:[%s5473_s8 + $0x1b1] sm:$0xff] }
 0x3f8   : > { %v2791_v31 = vpack.c.bf16 %v4983_v13, %v4982_v9 }
 0x3f9   : > { %v4160_v15 = vmax.f32 %v4096_v23, 0.0  ;;  %v3529_v11 = vadd.f32 %v3409_v44, %v3097_v25  ;;  %v3844_v60 = vpop.f32.mrf.mxu0  ;;  %4925 = vmatmul.msk.bf16.gmra.mxu1 %vm436_vm1, %v2358_v30  ;;  %v4984_v23 = vld [vmem:[%s5473_s8 + $0x1b0] sm:$0xff]  ;;  %v4985_v25 = vld [vmem:[%s5473_s8 + $0x1b8] sm:$0xff] }
 0x3fb   : > { %4224 = vst [vmem:[%s6576_s24 + $0xd0] sm:$0xff] %v4160_v15  ;;  %v3961_v39 = vadd.f32 %v3841_v27, %v3529_v11  ;;  %5023 = vmatmul.msk.bf16.gmra.mxu2 %vm436_vm1, %v2790_v14  ;;  %v5083_v14 = vld [vmem:[%s5473_s8 + $0x1b9] sm:$0xff] }
 0x3fc   : > { %5121 = vmatmul.msk.bf16.gmra.mxu3 %vm436_vm1, %v3222_v49  ;;  %5219 = vmatmul.msk.bf16.gmra.mxu0 %vm436_vm1, %v3654_v51  ;;  %v5180_v51 = vld [vmem:[%s5473_s8 + $0x1b2] sm:$0xff]  ;;  %v6912_v15 = vld [vmem:[%s5473_s8 + $0x1ba] sm:$0xff] }
 0x3fd   : > { %v4029_v61 = vmul.f32 %v6871_v32, %v3961_v39  ;;  %v2360_v39 = vpack.c.bf16 %v5178_v54, %v6858_v47 }
 0x3fe   : > { %v2980_v63 = vpop.f32.mrf.mxu2  ;;  %v2550_v59 = vpop.f32.mrf.mxu1 }
 0x3ff   : > { %v3412_v18 = vpop.f32.mrf.mxu3  ;;  %v4097_v56 = vadd.f32 %v6878_v6, %v4029_v61  ;;  %v3098_v22 = vadd.f32 %v2980_v63, %v2666_v7  ;;  %v2667_v55 = vadd.f32 %v2550_v59, %v6210_v45 }
 0x401   : > { %v4161_v5 = vmax.f32 %v4097_v56, 0.0  ;;  %v3530_v10 = vadd.f32 %v3412_v18, %v3098_v22  ;;  %v3846_v33 = vpop.f32.mrf.mxu0  ;;  %v2792_v18 = vpack.c.bf16 %v4985_v25, %v4984_v23  ;;  %v3224_v56 = vpack.c.bf16 %v5083_v14, %v5082_v19 }
 0x402   : > { %v3656_v22 = vpack.c.bf16 %v6912_v15, %v5180_v51 }
 0x403   : > { %4225 = vst [vmem:[%s6576_s24 + $0xd8] sm:$0xff] %v4161_v5  ;;  %v3962_v8 = vadd.f32 %v3844_v60, %v3530_v10 }
 0x405   : > { %v4030_v48 = vmul.f32 %v6871_v32, %v3962_v8 }
 0x406   : > { %v2982_v53 = vpop.f32.mrf.mxu2  ;;  %v2553_v43 = vpop.f32.mrf.mxu1 }
 0x407   : > { %v3414_v42 = vpop.f32.mrf.mxu3  ;;  %v4098_v35 = vadd.f32 %v6878_v6, %v4030_v48  ;;  %v3099_v46 = vadd.f32 %v2982_v53, %v2667_v55  ;;  %v2668_v4 = vadd.f32 %v2553_v43, %v6215_v17 }
 0x409   : > { %v4162_v26 = vmax.f32 %v4098_v35, 0.0  ;;  %v3531_v27 = vadd.f32 %v3414_v42, %v3099_v46  ;;  %v3849_v28 = vpop.f32.mrf.mxu0  ;;  %4926 = vmatmul.msk.bf16.gmra.mxu1 %vm436_vm1, %v2359_v12  ;;  %v4986_v42 = vld [vmem:[%s5473_s8 + $0x1c0] sm:$0xff]  ;;  %v4987_v12 = vld [vmem:[%s5473_s8 + $0x1c8] sm:$0xff] }
 0x40a   : > { %v5084_v35 = vld [vmem:[%s5473_s8 + $0x1c1] sm:$0xff]  ;;  %v5085_v46 = vld [vmem:[%s5473_s8 + $0x1c9] sm:$0xff] }
 0x40b   : > { %4226 = vst [vmem:[%s6576_s24 + $0xe0] sm:$0xff] %v4162_v26  ;;  %v3963_v45 = vadd.f32 %v3846_v33, %v3531_v27  ;;  %5024 = vmatmul.msk.bf16.gmra.mxu2 %vm436_vm1, %v2791_v31  ;;  %v5182_v31 = vld [vmem:[%s5473_s8 + $0x1c2] sm:$0xff]  ;;  %v2361_v27 = vpack.c.bf16 %v5180_v51, %v6890_v34  ;;  %v4988_v51 = vld [vmem:[%s5473_s8 + $0x1d0] sm:$0xff] }
 0x40c   : > { %5122 = vmatmul.msk.bf16.gmra.mxu3 %vm436_vm1, %v3223_v57  ;;  %5220 = vmatmul.msk.bf16.gmra.mxu0 %vm436_vm1, %v3655_v24  ;;  %v6934_v57 = vld [vmem:[%s5473_s8 + $0x1ca] sm:$0xff] }
 0x40d   : > { %v4031_v1 = vmul.f32 %v6871_v32, %v3963_v45 }
 0x40e   : > { %v2985_v37 = vpop.f32.mrf.mxu2  ;;  %v2555_v20 = vpop.f32.mrf.mxu1 }
 0x40f   : > { %v3417_v40 = vpop.f32.mrf.mxu3  ;;  %v4099_v29 = vadd.f32 %v6878_v6, %v4031_v1  ;;  %v3100_v21 = vadd.f32 %v2985_v37, %v2668_v4  ;;  %v2669_v17 = vadd.f32 %v2555_v20, %v6230_v38  ;;  %v2793_v4 = vpack.c.bf16 %v4987_v12, %v4986_v42 }
 0x410   : > { %v3225_v37 = vpack.c.bf16 %v5085_v46, %v5084_v35 }
 0x411   : > { %v4163_v3 = vmax.f32 %v4099_v29, 0.0  ;;  %v3532_v0 = vadd.f32 %v3417_v40, %v3100_v21  ;;  %v3851_v44 = vpop.f32.mrf.mxu0  ;;  %v3657_v40 = vpack.c.bf16 %v6934_v57, %v5182_v31 }
 0x413   : > { %4227 = vst [vmem:[%s6576_s24 + $0xe8] sm:$0xff] %v4163_v3  ;;  %v3964_v30 = vadd.f32 %v3849_v28, %v3532_v0 }
 0x415   : > { %v4032_v49 = vmul.f32 %v6871_v32, %v3964_v30 }
 0x416   : > { %v2987_v11 = vpop.f32.mrf.mxu2  ;;  %v2558_v63 = vpop.f32.mrf.mxu1 }
 0x417   : > { %v3419_v60 = vpop.f32.mrf.mxu3  ;;  %v4100_v61 = vadd.f32 %v6878_v6, %v4032_v49  ;;  %v3101_v7 = vadd.f32 %v2987_v11, %v2669_v17  ;;  %v2670_v33 = vadd.f32 %v2558_v63, %v6235_v16  ;;  %v4989_v11 = vld [vmem:[%s5473_s8 + $0x1d8] sm:$0xff] }
 0x418   : > { %v6956_v63 = vld [vmem:[%s5473_s8 + $0x1da] sm:$0xff] }
 0x419   : > { %v4164_v59 = vmax.f32 %v4100_v61, 0.0  ;;  %v3533_v5 = vadd.f32 %v3419_v60, %v3101_v7  ;;  %v3854_v10 = vpop.f32.mrf.mxu0  ;;  %4927 = vmatmul.msk.bf16.gmra.mxu1 %vm436_vm1, %v2360_v39  ;;  %v5086_v60 = vld [vmem:[%s5473_s8 + $0x1d1] sm:$0xff]  ;;  %v5087_v39 = vld [vmem:[%s5473_s8 + $0x1d9] sm:$0xff] }
 0x41a   : > { %v5184_v7 = vld [vmem:[%s5473_s8 + $0x1d2] sm:$0xff] }
 0x41b   : > { %4228 = vst [vmem:[%s6576_s24 + $0xf0] sm:$0xff] %v4164_v59  ;;  %v3965_v38 = vadd.f32 %v3851_v44, %v3533_v5  ;;  %5025 = vmatmul.msk.bf16.gmra.mxu2 %vm436_vm1, %v2792_v18 }
 0x41c   : > { %5123 = vmatmul.msk.bf16.gmra.mxu3 %vm436_vm1, %v3224_v56  ;;  %5221 = vmatmul.msk.bf16.gmra.mxu0 %vm436_vm1, %v3656_v22  ;;  %v2362_v22 = vpack.c.bf16 %v5182_v31, %v6912_v15  ;;  %v5088_v31 = vld [vmem:[%s5473_s8 + $0x1e1] sm:$0xff] }
 0x41d   : > { %v4033_v47 = vmul.f32 %v6871_v32, %v3965_v38  ;;  %v2794_v38 = vpack.c.bf16 %v4989_v11, %v4988_v51 }
 0x41e   : > { %v2990_v8 = vpop.f32.mrf.mxu2  ;;  %v2560_v2 = vpop.f32.mrf.mxu1 }
 0x41f   : > { %v3422_v9 = vpop.f32.mrf.mxu3  ;;  %v4101_v13 = vadd.f32 %v6878_v6, %v4033_v47  ;;  %v3102_v52 = vadd.f32 %v2990_v8, %v2670_v33  ;;  %v2671_v16 = vadd.f32 %v2560_v2, %v6250_v62  ;;  %v3226_v47 = vpack.c.bf16 %v5087_v39, %v5086_v60  ;;  %v4992_v39 = vld [vmem:[%s5473_s8 + $0x1f0] sm:$0xff] }
 0x420   : > { %v3658_v33 = vpack.c.bf16 %v6956_v63, %v5184_v7 }
 0x421   : > { %v4165_v48 = vmax.f32 %v4101_v13, 0.0  ;;  %v3534_v55 = vadd.f32 %v3422_v9, %v3102_v52  ;;  %v3856_v54 = vpop.f32.mrf.mxu0 }
 0x423   : > { %4229 = vst [vmem:[%s6576_s24 + $0xf8] sm:$0xff] %v4165_v48  ;;  %v3966_v53 = vadd.f32 %v3854_v10, %v3534_v55 }
 0x425   : > { %v4034_v43 = vmul.f32 %v6871_v32, %v3966_v53 }
 0x426   : > { %v2992_v24 = vpop.f32.mrf.mxu2  ;;  %v2563_v1 = vpop.f32.mrf.mxu1 }
 0x427   : > { %v3424_v26 = vpop.f32.mrf.mxu3  ;;  %v4102_v28 = vadd.f32 %v6878_v6, %v4034_v43  ;;  %v3103_v45 = vadd.f32 %v2992_v24, %v2671_v16  ;;  %v2672_v3 = vadd.f32 %v2563_v1, %v6255_v58  ;;  %v4990_v43 = vld [vmem:[%s5473_s8 + $0x1e0] sm:$0xff]  ;;  %v4991_v16 = vld [vmem:[%s5473_s8 + $0x1e8] sm:$0xff] }
 0x428   : > { %v5089_v24 = vld [vmem:[%s5473_s8 + $0x1e9] sm:$0xff] }
 0x429   : > { %v4166_v29 = vmax.f32 %v4102_v28, 0.0  ;;  %v3535_v21 = vadd.f32 %v3424_v26, %v3103_v45  ;;  %v3859_v20 = vpop.f32.mrf.mxu0  ;;  %4928 = vmatmul.msk.bf16.gmra.mxu1 %vm436_vm1, %v2361_v27  ;;  %v5186_v27 = vld [vmem:[%s5473_s8 + $0x1e2] sm:$0xff]  ;;  %v6978_v28 = vld [vmem:[%s5473_s8 + $0x1ea] sm:$0xff] }
 0x42b   : > { %4230 = vst [vmem:[%s6576_s24 + $0x100] sm:$0xff] %v4166_v29  ;;  %v3967_v62 = vadd.f32 %v3856_v54, %v3535_v21  ;;  %5026 = vmatmul.msk.bf16.gmra.mxu2 %vm436_vm1, %v2793_v4  ;;  %v2363_v4 = vpack.c.bf16 %v5184_v7, %v6934_v57  ;;  %v2795_v21 = vpack.c.bf16 %v4991_v16, %v4990_v43  ;;  %v5091_v7 = vld [vmem:[%s5473_s8 + $0x1f9] sm:$0xff] }
 0x42c   : > { %5124 = vmatmul.msk.bf16.gmra.mxu3 %vm436_vm1, %v3225_v37  ;;  %5222 = vmatmul.msk.bf16.gmra.mxu0 %vm436_vm1, %v3657_v40 }
 0x42d   : > { %v4035_v34 = vmul.f32 %v6871_v32, %v3967_v62  ;;  %v3659_v62 = vpack.c.bf16 %v6978_v28, %v5186_v27 }
 0x42e   : > { %v2995_v0 = vpop.f32.mrf.mxu2  ;;  %v2565_v25 = vpop.f32.mrf.mxu1 }
 0x42f   : > { %v3427_v44 = vpop.f32.mrf.mxu3  ;;  %v4103_v30 = vadd.f32 %v6878_v6, %v4035_v34  ;;  %v3104_v23 = vadd.f32 %v2995_v0, %v2672_v3  ;;  %v2673_v58 = vadd.f32 %v2565_v25, %v6270_v36 }
 0x431   : > { %v4167_v19 = vmax.f32 %v4103_v30, 0.0  ;;  %v3536_v14 = vadd.f32 %v3427_v44, %v3104_v23  ;;  %v3861_v49 = vpop.f32.mrf.mxu0  ;;  %v7282_v44 = vld [vmem:[#allocation35_spill] sm:$0xff] }
 0x433   : > { %4231 = vst [vmem:[%s6576_s24 + $0x108] sm:$0xff] %v4167_v19  ;;  %v3968_v17 = vadd.f32 %v3859_v20, %v3536_v14  ;;  %v3227_v20 = vpack.c.bf16 %v5089_v24, %v5088_v31 }
 0x435   : > { %v4036_v61 = vmul.f32 %v6871_v32, %v3968_v17 }
 0x436   : > { %v2997_v18 = vpop.f32.mrf.mxu2  ;;  %v2568_v10 = vpop.f32.mrf.mxu1 }
 0x437   : > { %v3429_v56 = vpop.f32.mrf.mxu3  ;;  %v4104_v59 = vadd.f32 %v6878_v6, %v4036_v61  ;;  %v3105_v5 = vadd.f32 %v2997_v18, %v2673_v58  ;;  %v2674_v52 = vadd.f32 %v2568_v10, %v6275_v50  ;;  %v4993_v61 = vld [vmem:[%s5473_s8 + $0x1f8] sm:$0xff] }
 0x438   : > { %v5090_v58 = vld [vmem:[%s5473_s8 + $0x1f1] sm:$0xff] }
 0x439   : > { %v4168_v8 = vmax.f32 %v4104_v59, 0.0  ;;  %v3537_v9 = vadd.f32 %v3429_v56, %v3105_v5  ;;  %v3864_v13 = vpop.f32.mrf.mxu0  ;;  %4929 = vmatmul.msk.bf16.gmra.mxu1 %vm436_vm1, %v2362_v22  ;;  %v7283_v56 = vld [vmem:[#allocation5_spill] sm:$0xff]  ;;  %v5188_v59 = vld [vmem:[%s5473_s8 + $0x1f2] sm:$0xff] }
 0x43a   : > { %v7000_v5 = vld [vmem:[%s5473_s8 + $0x1fa] sm:$0xff] }
 0x43b   : > { %4232 = vst [vmem:[%s6576_s24 + $0x110] sm:$0xff] %v4168_v8  ;;  %v3969_v36 = vadd.f32 %v3861_v49, %v3537_v9  ;;  %5027 = vmatmul.msk.bf16.gmra.mxu2 %vm436_vm1, %v2794_v38 }
 0x43c   : > { %5125 = vmatmul.msk.bf16.gmra.mxu3 %vm436_vm1, %v3226_v47  ;;  %5223 = vmatmul.msk.bf16.gmra.mxu0 %vm436_vm1, %v3658_v33  ;;  %v2364_v47 = vpack.c.bf16 %v5186_v27, %v6956_v63  ;;  %v4995_v27 = vld [vmem:[%s5473_s8 + $0x208] sm:$0xff] }
 0x43d   : > { %v4037_v15 = vmul.f32 %v6871_v32, %v3969_v36  ;;  %v3228_v36 = vpack.c.bf16 %v5091_v7, %v5090_v58 }
 0x43e   : > { %v3000_v2 = vpop.f32.mrf.mxu2  ;;  %v2570_v53 = vpop.f32.mrf.mxu1 }
 0x43f   : > { %v3432_v48 = vpop.f32.mrf.mxu3  ;;  %v4105_v55 = vadd.f32 %v6878_v6, %v4037_v15  ;;  %v3106_v54 = vadd.f32 %v3000_v2, %v2674_v52  ;;  %v2675_v50 = vadd.f32 %v2570_v53, %v6290_v41  ;;  %v3660_v15 = vpack.c.bf16 %v7000_v5, %v5188_v59 }
 0x441   : > { %v4169_v42 = vmax.f32 %v4105_v55, 0.0  ;;  %v3538_v12 = vadd.f32 %v3432_v48, %v3106_v54  ;;  %v3866_v35 = vpop.f32.mrf.mxu0  ;;  %v7284_v54 = vld [vmem:[#allocation7_spill] sm:$0xff] }
 0x443   : > { %4233 = vst [vmem:[%s6576_s24 + $0x118] sm:$0xff] %v4169_v42  ;;  %v3970_v46 = vadd.f32 %v3864_v13, %v3538_v12  ;;  %v2796_v13 = vpack.c.bf16 %v4993_v61, %v4992_v39 }
 0x445   : > { %v4038_v26 = vmul.f32 %v6871_v32, %v3970_v46 }
 0x446   : > { %v3002_v45 = vpop.f32.mrf.mxu2  ;;  %v2573_v29 = vpop.f32.mrf.mxu1 }
 0x447   : > { %v3434_v1 = vpop.f32.mrf.mxu3  ;;  %v4106_v37 = vadd.f32 %v6878_v6, %v4038_v26  ;;  %v3107_v40 = vadd.f32 %v3002_v45, %v2675_v50  ;;  %v2676_v30 = vadd.f32 %v2573_v29, %v7282_v44  ;;  %v4994_v50 = vld [vmem:[%s5473_s8 + $0x200] sm:$0xff] }
 0x448   : > { %v5092_v45 = vld [vmem:[%s5473_s8 + $0x201] sm:$0xff] }
 0x449   : > { %v4170_v34 = vmax.f32 %v4106_v37, 0.0  ;;  %v3539_v3 = vadd.f32 %v3434_v1, %v3107_v40  ;;  %v3869_v0 = vpop.f32.mrf.mxu0  ;;  %4930 = vmatmul.msk.bf16.gmra.mxu1 %vm436_vm1, %v2363_v4  ;;  %v5093_v1 = vld [vmem:[%s5473_s8 + $0x209] sm:$0xff]  ;;  %v7285_v37 = vld [vmem:[#allocation9_spill] sm:$0xff] }
 0x44a   : > { %v5190_v29 = vld [vmem:[%s5473_s8 + $0x202] sm:$0xff]  ;;  %v3229_v44 = vpack.c.bf16 %v5093_v1, %v5092_v45 }
 0x44b   : > { %4234 = vst [vmem:[%s6576_s24 + $0x120] sm:$0xff] %v4170_v34  ;;  %v3971_v41 = vadd.f32 %v3866_v35, %v3539_v3  ;;  %5028 = vmatmul.msk.bf16.gmra.mxu2 %vm436_vm1, %v2795_v21  ;;  %v7022_v21 = vld [vmem:[%s5473_s8 + $0x20a] sm:$0xff]  ;;  %v2365_v34 = vpack.c.bf16 %v5188_v59, %v6978_v28  ;;  %v4997_v59 = vld [vmem:[%s5473_s8 + $0x218] sm:$0xff] }
 0x44c   : > { %5126 = vmatmul.msk.bf16.gmra.mxu3 %vm436_vm1, %v3227_v20  ;;  %5224 = vmatmul.msk.bf16.gmra.mxu0 %vm436_vm1, %v3659_v62 }
 0x44d   : > { %v4039_v57 = vmul.f32 %v6871_v32, %v3971_v41 }
 0x44e   : > { %v3005_v23 = vpop.f32.mrf.mxu2  ;;  %v2575_v49 = vpop.f32.mrf.mxu1 }
 0x44f   : > { %v3437_v25 = vpop.f32.mrf.mxu3  ;;  %v4107_v19 = vadd.f32 %v6878_v6, %v4039_v57  ;;  %v3108_v14 = vadd.f32 %v3005_v23, %v2676_v30  ;;  %v2677_v22 = vadd.f32 %v2575_v49, %v7283_v56  ;;  %v2797_v57 = vpack.c.bf16 %v4995_v27, %v4994_v50  ;;  %v7286_v49 = vld [vmem:[#allocation11_spill] sm:$0xff] }
 0x450   : > { %v3661_v30 = vpack.c.bf16 %v7022_v21, %v5190_v29 }
 0x451   : > { %v4171_v17 = vmax.f32 %v4107_v19, 0.0  ;;  %v3540_v51 = vadd.f32 %v3437_v25, %v3108_v14  ;;  %v3871_v11 = vpop.f32.mrf.mxu0 }
 0x453   : > { %4235 = vst [vmem:[%s6576_s24 + $0x128] sm:$0xff] %v4171_v17  ;;  %v3972_v60 = vadd.f32 %v3869_v0, %v3540_v51 }
 0x455   : > { %v4040_v18 = vmul.f32 %v6871_v32, %v3972_v60 }
 0x456   : > { %v3007_v10 = vpop.f32.mrf.mxu2  ;;  %v2578_v9 = vpop.f32.mrf.mxu1 }
 0x457   : > { %v3439_v38 = vpop.f32.mrf.mxu3  ;;  %v4108_v33 = vadd.f32 %v6878_v6, %v4040_v18  ;;  %v3109_v8 = vadd.f32 %v3007_v10, %v2677_v22  ;;  %v2678_v53 = vadd.f32 %v2578_v9, %v7284_v54  ;;  %v4996_v22 = vld [vmem:[%s5473_s8 + $0x210] sm:$0xff] }
 0x458   : > { %v5094_v10 = vld [vmem:[%s5473_s8 + $0x211] sm:$0xff] }
 0x459   : > { %v4172_v52 = vmax.f32 %v4108_v33, 0.0  ;;  %v3541_v2 = vadd.f32 %v3439_v38, %v3109_v8  ;;  %v3874_v48 = vpop.f32.mrf.mxu0  ;;  %4931 = vmatmul.msk.bf16.gmra.mxu1 %vm436_vm1, %v2364_v47  ;;  %v5095_v38 = vld [vmem:[%s5473_s8 + $0x219] sm:$0xff] }
 0x45a   : > { %v7287_v33 = vld [vmem:[#allocation13_spill] sm:$0xff]  ;;  %v5192_v9 = vld [vmem:[%s5473_s8 + $0x212] sm:$0xff]  ;;  %v3230_v54 = vpack.c.bf16 %v5095_v38, %v5094_v10 }
 0x45b   : > { %4236 = vst [vmem:[%s6576_s24 + $0x130] sm:$0xff] %v4172_v52  ;;  %v3973_v55 = vadd.f32 %v3871_v11, %v3541_v2  ;;  %5029 = vmatmul.msk.bf16.gmra.mxu2 %vm436_vm1, %v2796_v13  ;;  %v5193_v13 = vld [vmem:[%s5473_s8 + $0x21a] sm:$0xff]  ;;  %v2366_v52 = vpack.c.bf16 %v5190_v29, %v7000_v5  ;;  %v4999_v29 = vld [vmem:[%s5473_s8 + $0x228] sm:$0xff] }
 0x45c   : > { %5127 = vmatmul.msk.bf16.gmra.mxu3 %vm436_vm1, %v3228_v36  ;;  %5225 = vmatmul.msk.bf16.gmra.mxu0 %vm436_vm1, %v3660_v15 }
 0x45d   : > { %v4041_v63 = vmul.f32 %v6871_v32, %v3973_v55 }
 0x45e   : > { %v3010_v42 = vpop.f32.mrf.mxu2  ;;  %v2580_v43 = vpop.f32.mrf.mxu1 }
 0x45f   : > { %v3442_v12 = vpop.f32.mrf.mxu3  ;;  %v4109_v35 = vadd.f32 %v6878_v6, %v4041_v63  ;;  %v3110_v46 = vadd.f32 %v3010_v42, %v2678_v53  ;;  %v2679_v40 = vadd.f32 %v2580_v43, %v7285_v37  ;;  %v2798_v63 = vpack.c.bf16 %v4997_v59, %v4996_v22  ;;  %v7288_v43 = vld [vmem:[#allocation15_spill] sm:$0xff] }
 0x460   : > { %v3662_v53 = vpack.c.bf16 %v5193_v13, %v5192_v9 }
 0x461   : > { %v4173_v16 = vmax.f32 %v4109_v35, 0.0  ;;  %v3542_v31 = vadd.f32 %v3442_v12, %v3110_v46  ;;  %v3876_v24 = vpop.f32.mrf.mxu0 }
 0x463   : > { %4237 = vst [vmem:[%s6576_s24 + $0x138] sm:$0xff] %v4173_v16  ;;  %v3974_v26 = vadd.f32 %v3874_v48, %v3542_v31 }
 0x465   : > { %v4042_v4 = vmul.f32 %v6871_v32, %v3974_v26 }
 0x466   : > { %v3012_v20 = vpop.f32.mrf.mxu2  ;;  %v2583_v41 = vpop.f32.mrf.mxu1 }
 0x467   : > { %v3444_v62 = vpop.f32.mrf.mxu3  ;;  %v4110_v3 = vadd.f32 %v6878_v6, %v4042_v4  ;;  %v3111_v0 = vadd.f32 %v3012_v20, %v2679_v40  ;;  %v2680_v17 = vadd.f32 %v2583_v41, %v7286_v49  ;;  %v4998_v40 = vld [vmem:[%s5473_s8 + $0x220] sm:$0xff] }
 0x468   : > { %v5096_v20 = vld [vmem:[%s5473_s8 + $0x221] sm:$0xff] }
 0x469   : > { %v4174_v23 = vmax.f32 %v4110_v3, 0.0  ;;  %v3543_v25 = vadd.f32 %v3444_v62, %v3111_v0  ;;  %v3879_v19 = vpop.f32.mrf.mxu0  ;;  %4932 = vmatmul.msk.bf16.gmra.mxu1 %vm436_vm1, %v2365_v34  ;;  %v5097_v62 = vld [vmem:[%s5473_s8 + $0x229] sm:$0xff]  ;;  %v7289_v3 = vld [vmem:[#allocation17_spill] sm:$0xff] }
 0x46a   : > { %v5194_v41 = vld [vmem:[%s5473_s8 + $0x222] sm:$0xff]  ;;  %v3231_v49 = vpack.c.bf16 %v5097_v62, %v5096_v20 }
 0x46b   : > { %4238 = vst [vmem:[%s6576_s24 + $0x140] sm:$0xff] %v4174_v23  ;;  %v3975_v14 = vadd.f32 %v3876_v24, %v3543_v25  ;;  %5030 = vmatmul.msk.bf16.gmra.mxu2 %vm436_vm1, %v2797_v57  ;;  %v5195_v57 = vld [vmem:[%s5473_s8 + $0x22a] sm:$0xff]  ;;  %v2367_v23 = vpack.c.bf16 %v5192_v9, %v7022_v21  ;;  %v7291_v9 = vld [vmem:[#allocation21_spill] sm:$0xff] }
 0x46c   : > { %5128 = vmatmul.msk.bf16.gmra.mxu3 %vm436_vm1, %v3229_v44  ;;  %5226 = vmatmul.msk.bf16.gmra.mxu0 %vm436_vm1, %v3661_v30 }
 0x46d   : > { %v4043_v28 = vmul.f32 %v6871_v32, %v3975_v14 }
 0x46e   : > { %v3015_v51 = vpop.f32.mrf.mxu2  ;;  %v2585_v61 = vpop.f32.mrf.mxu1 }
 0x46f   : > { %v3447_v11 = vpop.f32.mrf.mxu3  ;;  %v4111_v60 = vadd.f32 %v6878_v6, %v4043_v28  ;;  %v3112_v39 = vadd.f32 %v3015_v51, %v2680_v17  ;;  %v2681_v8 = vadd.f32 %v2585_v61, %v7287_v33  ;;  %v2799_v28 = vpack.c.bf16 %v4999_v29, %v4998_v40  ;;  %v7290_v61 = vld [vmem:[#allocation19_spill] sm:$0xff] }
 0x470   : > { %v3663_v17 = vpack.c.bf16 %v5195_v57, %v5194_v41 }
 0x471   : > { %v4175_v58 = vmax.f32 %v4111_v60, 0.0  ;;  %v3544_v7 = vadd.f32 %v3447_v11, %v3112_v39  ;;  %v3881_v18 = vpop.f32.mrf.mxu0 }
 0x473   : > { %4239 = vst [vmem:[%s6576_s24 + $0x148] sm:$0xff] %v4175_v58  ;;  %v3976_v56 = vadd.f32 %v3879_v19, %v3544_v7 }
 0x475   : > { %v4044_v47 = vmul.f32 %v6871_v32, %v3976_v56 }
 0x476   : > { %v3017_v36 = vpop.f32.mrf.mxu2  ;;  %v2588_v55 = vpop.f32.mrf.mxu1 }
 0x477   : > { %v3449_v15 = vpop.f32.mrf.mxu3  ;;  %v4112_v2 = vadd.f32 %v6878_v6, %v4044_v47  ;;  %v3113_v48 = vadd.f32 %v3017_v36, %v2681_v8  ;;  %v2682_v16 = vadd.f32 %v2588_v55, %v7288_v43 }
 0x479   : > { %v4176_v42 = vmax.f32 %v4112_v2, 0.0  ;;  %v3545_v12 = vadd.f32 %v3449_v15, %v3113_v48  ;;  %v3884_v35 = vpop.f32.mrf.mxu0  ;;  %4933 = vmatmul.msk.bf16.gmra.mxu1 %vm436_vm1, %v2366_v52 }
 0x47b   : > { %4240 = vst [vmem:[%s6576_s24 + $0x150] sm:$0xff] %v4176_v42  ;;  %v3977_v46 = vadd.f32 %v3881_v18, %v3545_v12  ;;  %5031 = vmatmul.msk.bf16.gmra.mxu2 %vm436_vm1, %v2798_v63  ;;  %v7292_v12 = vld [vmem:[#allocation23_spill] sm:$0xff] }
 0x47c   : > { %5129 = vmatmul.msk.bf16.gmra.mxu3 %vm436_vm1, %v3230_v54  ;;  %5227 = vmatmul.msk.bf16.gmra.mxu0 %vm436_vm1, %v3662_v53 }
 0x47d   : > { %v4045_v5 = vmul.f32 %v6871_v32, %v3977_v46 }
 0x47e   : > { %v3020_v31 = vpop.f32.mrf.mxu2  ;;  %v2590_v27 = vpop.f32.mrf.mxu1 }
 0x47f   : > { %v3452_v24 = vpop.f32.mrf.mxu3  ;;  %v4113_v26 = vadd.f32 %v6878_v6, %v4045_v5  ;;  %v3114_v50 = vadd.f32 %v3020_v31, %v2682_v16  ;;  %v2683_v0 = vadd.f32 %v2590_v27, %v7289_v3 }
 0x481   : > { %v4177_v45 = vmax.f32 %v4113_v26, 0.0  ;;  %v3546_v1 = vadd.f32 %v3452_v24, %v3114_v50  ;;  %v3886_v4 = vpop.f32.mrf.mxu0 }
 0x483   : > { %4241 = vst [vmem:[%s6576_s24 + $0x158] sm:$0xff] %v4177_v45  ;;  %v3978_v37 = vadd.f32 %v3884_v35, %v3546_v1  ;;  %v7293_v1 = vld [vmem:[#allocation25_spill] sm:$0xff] }
 0x485   : > { %v4046_v34 = vmul.f32 %v6871_v32, %v3978_v37 }
 0x486   : > { %v3022_v44 = vpop.f32.mrf.mxu2  ;;  %v2593_v14 = vpop.f32.mrf.mxu1 }
 0x487   : > { %v3454_v30 = vpop.f32.mrf.mxu3  ;;  %v4114_v25 = vadd.f32 %v6878_v6, %v4046_v34  ;;  %v3115_v19 = vadd.f32 %v3022_v44, %v2683_v0  ;;  %v2684_v58 = vadd.f32 %v2593_v14, %v7290_v61  ;;  %v7294_v44 = vld [vmem:[#allocation27_spill] sm:$0xff] }
 0x489   : > { %v4178_v51 = vmax.f32 %v4114_v25, 0.0  ;;  %v3547_v11 = vadd.f32 %v3454_v30, %v3115_v19  ;;  %v3889_v60 = vpop.f32.mrf.mxu0  ;;  %4934 = vmatmul.msk.bf16.gmra.mxu1 %vm436_vm1, %v2367_v23 }
 0x48b   : > { %4242 = vst [vmem:[%s6576_s24 + $0x160] sm:$0xff] %v4178_v51  ;;  %v3979_v39 = vadd.f32 %v3886_v4, %v3547_v11  ;;  %5032 = vmatmul.msk.bf16.gmra.mxu2 %vm436_vm1, %v2799_v28 }
 0x48c   : > { %5130 = vmatmul.msk.bf16.gmra.mxu3 %vm436_vm1, %v3231_v49  ;;  %5228 = vmatmul.msk.bf16.gmra.mxu0 %vm436_vm1, %v3663_v17 }
 0x48d   : > { %v4047_v21 = vmul.f32 %v6871_v32, %v3979_v39  ;;  %v7295_v39 = vld [vmem:[#allocation29_spill] sm:$0xff] }
 0x48e   : > { %v3025_v7 = vpop.f32.mrf.mxu2  ;;  %v2595_v59 = vpop.f32.mrf.mxu1 }
 0x48f   : > { %v3457_v18 = vpop.f32.mrf.mxu3  ;;  %v4115_v56 = vadd.f32 %v6878_v6, %v4047_v21  ;;  %v3116_v22 = vadd.f32 %v3025_v7, %v2684_v58  ;;  %v2685_v13 = vadd.f32 %v2595_v59, %v7291_v9 }
 0x491   : > { %v4179_v10 = vmax.f32 %v4115_v56, 0.0  ;;  %v3548_v38 = vadd.f32 %v3457_v18, %v3116_v22  ;;  %v3891_v47 = vpop.f32.mrf.mxu0 }
 0x493   : > { %4243 = vst [vmem:[%s6576_s24 + $0x168] sm:$0xff] %v4179_v10  ;;  %v3980_v33 = vadd.f32 %v3889_v60, %v3548_v38 }
 0x495   : > { %v4048_v8 = vmul.f32 %v6871_v32, %v3980_v33  ;;  %v7296_v33 = vld [vmem:[#allocation31_spill] sm:$0xff] }
 0x496   : > { %v3027_v36 = vpop.f32.mrf.mxu2  ;;  %v2598_v48 = vpop.f32.mrf.mxu1 }
 0x497   : > { %v3459_v15 = vpop.f32.mrf.mxu3  ;;  %v4116_v52 = vadd.f32 %v6878_v6, %v4048_v8  ;;  %v3117_v2 = vadd.f32 %v3027_v36, %v2685_v13  ;;  %v2686_v35 = vadd.f32 %v2598_v48, %v7292_v12 }
 0x499   : > { %v4180_v55 = vmax.f32 %v4116_v52, 0.0  ;;  %v3549_v63 = vadd.f32 %v3459_v15, %v3117_v2  ;;  %v3894_v54 = vpop.f32.mrf.mxu0 }
 0x49b   : > { %4244 = vst [vmem:[%s6576_s24 + $0x170] sm:$0xff] %v4180_v55  ;;  %v3981_v53 = vadd.f32 %v3891_v47, %v3549_v63 }
 0x49d   : > { %v4049_v42 = vmul.f32 %v6871_v32, %v3981_v53  ;;  %v7297_v53 = vld [vmem:[#allocation33_spill] sm:$0xff] }
 0x49e   : > { %v3030_v46 = vpop.f32.mrf.mxu2  ;;  %v2600_v31 = vpop.f32.mrf.mxu1 }
 0x49f   : > { %v3462_v5 = vpop.f32.mrf.mxu3  ;;  %v4117_v43 = vadd.f32 %v6878_v6, %v4049_v42  ;;  %v3118_v16 = vadd.f32 %v3030_v46, %v2686_v35  ;;  %v2687_v4 = vadd.f32 %v2600_v31, %v7293_v1 }
 0x4a1   : > { %v4181_v24 = vmax.f32 %v4117_v43, 0.0  ;;  %v3550_v26 = vadd.f32 %v3462_v5, %v3118_v16  ;;  %v3896_v50 = vpop.f32.mrf.mxu0 }
 0x4a3   : > { %4245 = vst [vmem:[%s6576_s24 + $0x178] sm:$0xff] %v4181_v24  ;;  %v3982_v27 = vadd.f32 %v3894_v54, %v3550_v26 }
 0x4a5   : > { %v4050_v45 = vmul.f32 %v6871_v32, %v3982_v27  ;;  %v7298_v27 = vld [vmem:[#allocation36_spill] sm:$0xff] }
 0x4a6   : > { %v3032_v37 = vpop.f32.mrf.mxu2  ;;  %v2603_v62 = vpop.f32.mrf.mxu1 }
 0x4a7   : > { %v3464_v40 = vpop.f32.mrf.mxu3  ;;  %v4118_v29 = vadd.f32 %v6878_v6, %v4050_v45  ;;  %v3119_v20 = vadd.f32 %v3032_v37, %v2687_v4  ;;  %v2688_v30 = vadd.f32 %v2603_v62, %v7294_v44 }
 0x4a9   : > { %v4182_v34 = vmax.f32 %v4118_v29, 0.0  ;;  %v3551_v3 = vadd.f32 %v3464_v40, %v3119_v20  ;;  %v3899_v0 = vpop.f32.mrf.mxu0 }
 0x4ab   : > { %4246 = vst [vmem:[%s6576_s24 + $0x180] sm:$0xff] %v4182_v34  ;;  %v3983_v41 = vadd.f32 %v3896_v50, %v3551_v3 }
 0x4ad   : > { %v4051_v57 = vmul.f32 %v6871_v32, %v3983_v41  ;;  %v7299_v41 = vld [vmem:[#allocation6_spill] sm:$0xff] }
 0x4ae   : > { %v3035_v23 = vpop.f32.mrf.mxu2  ;;  %v2605_v28 = vpop.f32.mrf.mxu1 }
 0x4af   : > { %v3467_v25 = vpop.f32.mrf.mxu3  ;;  %v4119_v19 = vadd.f32 %v6878_v6, %v4051_v57  ;;  %v3120_v14 = vadd.f32 %v3035_v23, %v2688_v30  ;;  %v2689_v21 = vadd.f32 %v2605_v28, %v7295_v39 }
 0x4b1   : > { %v4183_v49 = vmax.f32 %v4119_v19, 0.0  ;;  %v3552_v17 = vadd.f32 %v3467_v25, %v3120_v14  ;;  %v3901_v51 = vpop.f32.mrf.mxu0 }
 0x4b3   : > { %4247 = vst [vmem:[%s6576_s24 + $0x188] sm:$0xff] %v4183_v49  ;;  %v3984_v11 = vadd.f32 %v3899_v0, %v3552_v17 }
 0x4b5   : > { %v4052_v60 = vmul.f32 %v6871_v32, %v3984_v11  ;;  %v7300_v11 = vld [vmem:[#allocation8_spill] sm:$0xff] }
 0x4b6   : > { %v3037_v61 = vpop.f32.mrf.mxu2  ;;  %v2608_v56 = vpop.f32.mrf.mxu1 }
 0x4b7   : > { %v3469_v58 = vpop.f32.mrf.mxu3  ;;  %v4120_v7 = vadd.f32 %v6878_v6, %v4052_v60  ;;  %v3121_v18 = vadd.f32 %v3037_v61, %v2689_v21  ;;  %v2690_v8 = vadd.f32 %v2608_v56, %v7296_v33 }
 0x4b9   : > { %v4184_v22 = vmax.f32 %v4120_v7, 0.0  ;;  %v3553_v59 = vadd.f32 %v3469_v58, %v3121_v18  ;;  %v3904_v10 = vpop.f32.mrf.mxu0 }
 0x4bb   : > { %4248 = vst [vmem:[%s6576_s24 + $0x190] sm:$0xff] %v4184_v22  ;;  %v3985_v38 = vadd.f32 %v3901_v51, %v3553_v59 }
 0x4bd   : > { %v4053_v47 = vmul.f32 %v6871_v32, %v3985_v38  ;;  %v7301_v38 = vld [vmem:[#allocation10_spill] sm:$0xff] }
 0x4be   : > { %v3040_v9 = vpop.f32.mrf.mxu2  ;;  %v2610_v52 = vpop.f32.mrf.mxu1 }
 0x4bf   : > { %v3472_v13 = vpop.f32.mrf.mxu3  ;;  %v4121_v36 = vadd.f32 %v6878_v6, %v4053_v47  ;;  %v3122_v15 = vadd.f32 %v3040_v9, %v2690_v8  ;;  %v2691_v42 = vadd.f32 %v2610_v52, %v7297_v53 }
 0x4c1   : > { %v4185_v2 = vmax.f32 %v4121_v36, 0.0  ;;  %v3554_v48 = vadd.f32 %v3472_v13, %v3122_v15  ;;  %v3906_v55 = vpop.f32.mrf.mxu0 }
 0x4c3   : > { %4249 = vst [vmem:[%s6576_s24 + $0x198] sm:$0xff] %v4185_v2  ;;  %v3986_v63 = vadd.f32 %v3904_v10, %v3554_v48 }
 0x4c5   : > { %v4054_v54 = vmul.f32 %v6871_v32, %v3986_v63  ;;  %v7302_v63 = vld [vmem:[#allocation12_spill] sm:$0xff] }
 0x4c6   : > { %v3042_v12 = vpop.f32.mrf.mxu2  ;;  %v2613_v43 = vpop.f32.mrf.mxu1 }
 0x4c7   : > { %v3474_v35 = vpop.f32.mrf.mxu3  ;;  %v4122_v46 = vadd.f32 %v6878_v6, %v4054_v54  ;;  %v3123_v5 = vadd.f32 %v3042_v12, %v2691_v42  ;;  %v2692_v45 = vadd.f32 %v2613_v43, %v7298_v27 }
 0x4c9   : > { %v4186_v16 = vmax.f32 %v4122_v46, 0.0  ;;  %v3555_v31 = vadd.f32 %v3474_v35, %v3123_v5  ;;  %v3909_v24 = vpop.f32.mrf.mxu0 }
 0x4cb   : > { %4250 = vst [vmem:[%s6576_s24 + $0x1a0] sm:$0xff] %v4186_v16  ;;  %v3987_v26 = vadd.f32 %v3906_v55, %v3555_v31 }
 0x4cd   : > { %v4055_v50 = vmul.f32 %v6871_v32, %v3987_v26  ;;  %v7303_v26 = vld [vmem:[#allocation14_spill] sm:$0xff] }
 0x4ce   : > { %v3045_v1 = vpop.f32.mrf.mxu2  ;;  %v2615_v29 = vpop.f32.mrf.mxu1 }
 0x4cf   : > { %v3477_v4 = vpop.f32.mrf.mxu3  ;;  %v4123_v37 = vadd.f32 %v6878_v6, %v4055_v50  ;;  %v3124_v40 = vadd.f32 %v3045_v1, %v2692_v45  ;;  %v2693_v57 = vadd.f32 %v2615_v29, %v7299_v41 }
 0x4d1   : > { %v4187_v20 = vmax.f32 %v4123_v37, 0.0  ;;  %v3556_v62 = vadd.f32 %v3477_v4, %v3124_v40  ;;  %v3911_v34 = vpop.f32.mrf.mxu0 }
 0x4d3   : > { %4251 = vst [vmem:[%s6576_s24 + $0x1a8] sm:$0xff] %v4187_v20  ;;  %v3988_v3 = vadd.f32 %v3909_v24, %v3556_v62 }
 0x4d5   : > { %v4056_v0 = vmul.f32 %v6871_v32, %v3988_v3  ;;  %v7304_v3 = vld [vmem:[#allocation16_spill] sm:$0xff] }
 0x4d6   : > { %v3047_v44 = vpop.f32.mrf.mxu2  ;;  %v2618_v19 = vpop.f32.mrf.mxu1 }
 0x4d7   : > { %v3479_v30 = vpop.f32.mrf.mxu3  ;;  %v4124_v23 = vadd.f32 %v6878_v6, %v4056_v0  ;;  %v3125_v25 = vadd.f32 %v3047_v44, %v2693_v57  ;;  %v2694_v60 = vadd.f32 %v2618_v19, %v7300_v11 }
 0x4d9   : > { %v4188_v14 = vmax.f32 %v4124_v23, 0.0  ;;  %v3557_v28 = vadd.f32 %v3479_v30, %v3125_v25  ;;  %v3914_v49 = vpop.f32.mrf.mxu0 }
 0x4db   : > { %4252 = vst [vmem:[%s6576_s24 + $0x1b0] sm:$0xff] %v4188_v14  ;;  %v3989_v17 = vadd.f32 %v3911_v34, %v3557_v28  ;;  %v5299_v28 = vld [vmem:[%s7185_s2] ss:$0 sm:$0xff] }
 0x4dd   : > { %v4057_v51 = vmul.f32 %v6871_v32, %v3989_v17  ;;  %v7305_v17 = vld [vmem:[#allocation18_spill] sm:$0xff] }
 0x4de   : > { %v3050_v39 = vpop.f32.mrf.mxu2  ;;  %v2620_v7 = vpop.f32.mrf.mxu1 }
 0x4df   : > { %v3482_v21 = vpop.f32.mrf.mxu3  ;;  %v4125_v61 = vadd.f32 %v6878_v6, %v4057_v51  ;;  %v3126_v58 = vadd.f32 %v3050_v39, %v2694_v60  ;;  %v2695_v47 = vadd.f32 %v2620_v7, %v7301_v38 }
 0x4e1   : > { %v4189_v18 = vmax.f32 %v4125_v61, 0.0  ;;  %v3558_v56 = vadd.f32 %v3482_v21, %v3126_v58  ;;  %v3916_v22 = vpop.f32.mrf.mxu0 }
 0x4e3   : > { %4253 = vst [vmem:[%s6576_s24 + $0x1b8] sm:$0xff] %v4189_v18  ;;  %v3990_v59 = vadd.f32 %v3914_v49, %v3558_v56 }
 0x4e5   : > { %v4058_v10 = vmul.f32 %v6871_v32, %v3990_v59 }
 0x4e6   : > { %v3052_v33 = vpop.f32.mrf.mxu2  ;;  %v2623_v36 = vpop.f32.mrf.mxu1 }
 0x4e7   : > { %v3484_v8 = vpop.f32.mrf.mxu3  ;;  %v4126_v9 = vadd.f32 %v6878_v6, %v4058_v10  ;;  %v3127_v13 = vadd.f32 %v3052_v33, %v2695_v47  ;;  %v2696_v54 = vadd.f32 %v2623_v36, %v7302_v63 }
 0x4e9   : > { %v4190_v15 = vmax.f32 %v4126_v9, 0.0  ;;  %v3559_v52 = vadd.f32 %v3484_v8, %v3127_v13  ;;  %v3919_v2 = vpop.f32.mrf.mxu0 }
 0x4eb   : > { %4254 = vst [vmem:[%s6576_s24 + $0x1c0] sm:$0xff] %v4190_v15  ;;  %v3991_v48 = vadd.f32 %v3916_v22, %v3559_v52  ;;  %v7306_v22 = vld [vmem:[#allocation20_spill] sm:$0xff] }
 0x4ed   : > { %v4059_v55 = vmul.f32 %v6871_v32, %v3991_v48 }
 0x4ee   : > { %v3055_v53 = vpop.f32.mrf.mxu2  ;;  %v2625_v46 = vpop.f32.mrf.mxu1 }
 0x4ef   : > { %v3487_v42 = vpop.f32.mrf.mxu3  ;;  %v4127_v12 = vadd.f32 %v6878_v6, %v4059_v55  ;;  %v3128_v35 = vadd.f32 %v3055_v53, %v2696_v54  ;;  %v2697_v50 = vadd.f32 %v2625_v46, %v7303_v26 }
 0x4f1   : > { %v4191_v5 = vmax.f32 %v4127_v12, 0.0  ;;  %v3560_v43 = vadd.f32 %v3487_v42, %v3128_v35  ;;  %v3921_v16 = vpop.f32.mrf.mxu0 }
 0x4f3   : > { %4255 = vst [vmem:[%s6576_s24 + $0x1c8] sm:$0xff] %v4191_v5  ;;  %v3992_v31 = vadd.f32 %v3919_v2, %v3560_v43  ;;  %v7307_v2 = vld [vmem:[#allocation22_spill] sm:$0xff] }
 0x4f5   : > { %v4060_v24 = vmul.f32 %v6871_v32, %v3992_v31 }
 0x4f6   : > { %v3057_v27 = vpop.f32.mrf.mxu2  ;;  %v2628_v37 = vpop.f32.mrf.mxu1 }
 0x4f7   : > { %v3489_v45 = vpop.f32.mrf.mxu3  ;;  %v4128_v1 = vadd.f32 %v6878_v6, %v4060_v24  ;;  %v3129_v4 = vadd.f32 %v3057_v27, %v2697_v50  ;;  %v2698_v0 = vadd.f32 %v2628_v37, %v7304_v3 }
 0x4f9   : > { %v4192_v40 = vmax.f32 %v4128_v1, 0.0  ;;  %v3561_v29 = vadd.f32 %v3489_v45, %v3129_v4  ;;  %v3924_v62 = vpop.f32.mrf.mxu0 }
 0x4fb   : > { %4256 = vst [vmem:[%s6576_s24 + $0x1d0] sm:$0xff] %v4192_v40  ;;  %v3993_v20 = vadd.f32 %v3921_v16, %v3561_v29 }
 0x4fd   : > { %v4061_v34 = vmul.f32 %v6871_v32, %v3993_v20 }
 0x4fe   : > { %v3060_v41 = vpop.f32.mrf.mxu2  ;;  %v2630_v23 = vpop.f32.mrf.mxu1 }
 0x4ff   : > { %v3492_v57 = vpop.f32.mrf.mxu3  ;;  %v4129_v44 = vadd.f32 %v6878_v6, %v4061_v34  ;;  %v3130_v30 = vadd.f32 %v3060_v41, %v2698_v0  ;;  %v2699_v32 = vadd.f32 %v2630_v23, %v7305_v17  ;;  %v5300_v6 = vld [vmem:[%s7186_s3] ss:$0 sm:$0xff] }
 0x501   : > { %v4193_v25 = vmax.f32 %v4129_v44, 0.0  ;;  %v3562_v19 = vadd.f32 %v3492_v57, %v3130_v30  ;;  %v3926_v51 = vpop.f32.mrf.mxu0 }
 0x503   : > { %4257 = vst [vmem:[%s6576_s24 + $0x1d8] sm:$0xff] %v4193_v25  ;;  %v3994_v14 = vadd.f32 %v3924_v62, %v3562_v19 }
 0x505   : > { %v4062_v49 = vmul.f32 %v5299_v28, %v3994_v14 }
 0x506   : > { %v3062_v11 = vpop.f32.mrf.mxu2  ;;  %v2633_v61 = vpop.f32.mrf.mxu1 }
 0x507   : > { %v3494_v60 = vpop.f32.mrf.mxu3  ;;  %v4130_v39 = vadd.f32 %v5300_v6, %v4062_v49  ;;  %v3131_v21 = vadd.f32 %v3062_v11, %v2699_v32  ;;  %v2700_v59 = vadd.f32 %v2633_v61, %v7306_v22 }
 0x509   : > { %v4194_v58 = vmax.f32 %v4130_v39, 0.0  ;;  %v3563_v7 = vadd.f32 %v3494_v60, %v3131_v21  ;;  %v3929_v8 = vpop.f32.mrf.mxu0 }
 0x50b   : > { %4258 = vst [vmem:[%s6576_s24 + $0x1e0] sm:$0xff] %v4194_v58  ;;  %v3995_v18 = vadd.f32 %v3926_v51, %v3563_v7 }
 0x50d   : > { %v4063_v56 = vmul.f32 %v5299_v28, %v3995_v18 }
 0x50e   : > { %v3065_v10 = vpop.f32.mrf.mxu2  ;;  %v2635_v36 = vpop.f32.mrf.mxu1 }
 0x50f   : > { %v3497_v38 = vpop.f32.mrf.mxu3  ;;  %v4131_v47 = vadd.f32 %v5300_v6, %v4063_v56  ;;  %v3132_v33 = vadd.f32 %v3065_v10, %v2700_v59  ;;  %v2701_v48 = vadd.f32 %v2635_v36, %v7307_v2 }
 0x511   : > { %v4195_v9 = vmax.f32 %v4131_v47, 0.0  ;;  %v3564_v13 = vadd.f32 %v3497_v38, %v3132_v33  ;;  %v3931_v35 = vpop.f32.mrf.mxu0 }
 0x513   : > { %4259 = vst [vmem:[%s6576_s24 + $0x1e8] sm:$0xff] %v4195_v9  ;;  %v3996_v15 = vadd.f32 %v3929_v8, %v3564_v13 }
 0x515   : > { %v4064_v52 = vmul.f32 %v5299_v28, %v3996_v15 }
 0x516   : > { %v3067_v55 = vpop.f32.mrf.mxu2 }
 0x517   : > { %v4132_v63 = vadd.f32 %v5300_v6, %v4064_v52  ;;  %v3133_v54 = vadd.f32 %v3067_v55, %v2701_v48  ;;  %v3499_v53 = vpop.f32.mrf.mxu3 }
 0x519   : > { %v4196_v42 = vmax.f32 %v4132_v63, 0.0  ;;  %v3565_v12 = vadd.f32 %v3499_v53, %v3133_v54 }
 0x51b   : > { %4260 = vst [vmem:[%s6576_s24 + $0x1f0] sm:$0xff] %v4196_v42  ;;  %v3997_v46 = vadd.f32 %v3931_v35, %v3565_v12 }
 0x51d   : > { %v4065_v5 = vmul.f32 %v5299_v28, %v3997_v46 }
 0x51f   : > { %v4133_v43 = vadd.f32 %v5300_v6, %v4065_v5 }
 0x521   : > { %v4197_v16 = vmax.f32 %v4133_v43, 0.0 }
 0x523   : > { %4261 = vst [vmem:[%s6576_s24 + $0x1f8] sm:$0xff] %v4197_v16 }
 0x524   : > { %5328 = shalt.err (!%p5325_p3)
}
 0x525   : > { %s5381_s13 = smov 128   ;;  %s5382_s24 = smov 8  }
 0x526   : > { %5238 = dma.vmem_to_hbm [thread:$0]  (%p5448_p4), %s4277_s21, 8192, %s4279_s22, %s4263_s26, %s5381_s13, %s5381_s13, %s5382_s24  }
 0x527 PF: > { %p5244_p5 = scmp.ge.s32.totalorder %s5379_s20, 2  ;;  %s4293_s9 = sand.u32 1, %s5359_s15  }
 0x528   : > { %s4294_s10 = scalar_lea.sflag [#allocation3], %s4293_s9 }
 0x529   : > { %p5241_p6 = pnand %p5244_p5, %p5455_p8 }
 0x52b   : > { %p5242_p7 = pneg %p5241_p6 }
 0x52d   : > { %5354 = dma.done.wait (%p5242_p7), %s4294_s10, 8192  }
 0x52e   : > { %5356 = vsyncadd (%p5242_p7), %s4294_s10, 4294959104  ;;  %s17_s20 = sadd.s32 1, %s5379_s20   ;;  %s7308_s15 = smov %s5363_s16 }
 0x52f   : > { %p14_p9 = scmp.ge.s32.totalorder %s17_s20, 4   ;;  %s7309_s16 = smov %s5367_s17 }
 0x530   : > { %s7310_s17 = smov %s5461_s28  ;;  %s7311_s18 = smov %s5375_s19 }
 0x531   : > { %s7312_s19 = smov %s7314_s23  ;;  %16 = sbr.rel (!%p14_p9) target bundleno = 4 (0x4), region = 94 }
 0x536   :  { %4300 = vsyncpa [#allocation3], 1 }
 0x537   :  { %4302 = vsyncpa [#allocation3 + $0x1], 1 }

</bundles_post_ra>
